<compile_context>
chip_gen: v7x
topology: tpu7x:2x2x1
jax: 0.10.0
libtpu: 0.0.40
codegen_flags: <defaults>
</compile_context>

<pallas_src>
import functools
import math

import jax
import jax.numpy as jnp
from jax.experimental import pallas as pl
from jax.experimental.pallas import tpu as pltpu

_LOG2 = math.log(2.0)  # ShiftedSoftplus.shift
_PI = math.pi


def _update_e_kernel(vj_ref, emb_ref, dist_ref,
                     wlin_ref, w1_ref, b1_ref, w2_ref, b2_ref,
                     o_ref, *, cutoff):
    f32 = jnp.float32

    # --- filter-generating MLP on the distance embedding -------------------
    emb = emb_ref[...].astype(f32)                              # (TE, G)
    h = jnp.dot(emb, w1_ref[...].astype(f32),
                preferred_element_type=f32) + b1_ref[...].astype(f32)
    # shifted softplus, numerically stable, f32 math
    h = jnp.maximum(h, 0.0) + jnp.log1p(jnp.exp(-jnp.abs(h))) - _LOG2
    w = jnp.dot(h, w2_ref[...].astype(f32),
                preferred_element_type=f32) + b2_ref[...].astype(f32)

    # --- cosine cutoff ------------------------------------------------------
    d = dist_ref[...].astype(f32)                               # (TE, 1)
    c = 0.5 * (jnp.cos(d * (_PI / cutoff)) + 1.0)
    w = w * c                                                   # (TE, F)

    # --- bias-free node projection (already gathered rows) ------------------
    vlin = jnp.dot(vj_ref[...].astype(f32), wlin_ref[...].astype(f32),
                   preferred_element_type=f32)                  # (TE, F)

    o_ref[...] = (vlin * w).astype(o_ref.dtype)


def update_e(v, dist, dist_emb, edge_index, params, cutoff, *,
             block_edges=1024):
    """Fused Pallas implementation of SchNet UpdateE.forward.

    Args:
      v:          (num_nodes, hidden_channels)
      dist:       (num_edges,)
      dist_emb:   (num_edges, num_gaussians)
      edge_index: (2, num_edges) int32 — row 0 is `j`
      params: dict with
        'lin_w'  : (hidden_channels, num_filters)   (no bias)
        'mlp0_w' : (num_gaussians,  num_filters)
        'mlp0_b' : (num_filters,)
        'mlp2_w' : (num_filters,    num_filters)
        'mlp2_b' : (num_filters,)
      cutoff: python float
    Returns:
      e: (num_edges, num_filters), dtype of v.
    """
    num_edges = dist.shape[0]
    hidden = v.shape[1]
    num_gauss = dist_emb.shape[1]
    num_filters = params["lin_w"].shape[1]
    out_dtype = v.dtype

    # Data-dependent gather done by XLA (see TODO above); everything else fused.
    j = edge_index[0]
    vj = jnp.take(v, j, axis=0)                                 # (E, H)

    dist2d = dist.reshape(num_edges, 1)                         # zero-copy
    b1 = params["mlp0_b"].reshape(1, num_filters)
    b2 = params["mlp2_b"].reshape(1, num_filters)

    # Edge-tile rows: multiple of 8 (sublane), capped by the problem size.
    te = max(8, min(block_edges, pl.cdiv(num_edges, 8) * 8))
    te = (te // 8) * 8
    grid = (pl.cdiv(num_edges, te),)

    edge_spec = lambda cols: pl.BlockSpec((te, cols), lambda i: (i, 0))
    full_spec = lambda r, c: pl.BlockSpec((r, c), lambda i: (0, 0))

    out = pl.pallas_call(
        functools.partial(_update_e_kernel, cutoff=float(cutoff)),
        out_shape=jax.ShapeDtypeStruct((num_edges, num_filters), out_dtype),
        grid_spec=pltpu.PrefetchScalarGridSpec(
            num_scalar_prefetch=0,
            grid=grid,
            in_specs=[
                edge_spec(hidden),                 # vj        (TE, H)
                edge_spec(num_gauss),              # dist_emb  (TE, G)
                edge_spec(1),                      # dist      (TE, 1)
                full_spec(hidden, num_filters),    # lin_w     (H, F)  resident
                full_spec(num_gauss, num_filters), # mlp0_w    (G, F)  resident
                full_spec(1, num_filters),         # mlp0_b    (1, F)  resident
                full_spec(num_filters, num_filters),  # mlp2_w (F, F)  resident
                full_spec(1, num_filters),         # mlp2_b    (1, F)  resident
            ],
            out_specs=pl.BlockSpec((te, num_filters), lambda i: (i, 0)),
        ),
        compiler_params=pltpu.CompilerParams(
            dimension_semantics=("parallel",),
        ),
    )(vj, dist_emb, dist2d,
      params["lin_w"], params["mlp0_w"], b1, params["mlp2_w"], b2)
    return out


def update_e_ref(v, dist, dist_emb, edge_index, params, cutoff):
    """Plain-JAX reference matching the PyTorch module."""
    j = edge_index[0]
    c = 0.5 * (jnp.cos(dist * _PI / cutoff) + 1.0)
    h = dist_emb @ params["mlp0_w"] + params["mlp0_b"]
    h = jax.nn.softplus(h) - _LOG2
    w = (h @ params["mlp2_w"] + params["mlp2_b"]) * c[:, None]
    vlin = v @ params["lin_w"]
    return vlin[j] * w


if __name__ == "__main__":
    key = jax.random.PRNGKey(0)
    k1, k2, k3, k4, k5, k6, k7 = jax.random.split(key, 7)

    # Small SchNet-like shapes.
    num_nodes = 16
    hidden_channels = 32
    num_filters = 64
    num_gaussians = 50
    num_edges = 200          # not a multiple of the tile -> exercises ragged path
    cutoff = 10.0

    def xavier(k, shape):
        fan_in, fan_out = shape
        lim = (6.0 / (fan_in + fan_out)) ** 0.5
        return jax.random.uniform(k, shape, jnp.float32, -lim, lim)

    v = jax.random.normal(k1, (num_nodes, hidden_channels), dtype=jnp.float32)
    dist = jax.random.uniform(k2, (num_edges,), jnp.float32, 0.1, cutoff)
    dist_emb = jax.random.normal(k3, (num_edges, num_gaussians),
                                 dtype=jnp.float32)
    edge_index = jax.random.randint(k4, (2, num_edges), 0, num_nodes,
                                    dtype=jnp.int32)

    params = {
        "lin_w": xavier(k5, (hidden_channels, num_filters)),
        "mlp0_w": xavier(k6, (num_gaussians, num_filters)),
        "mlp0_b": jnp.zeros((num_filters,), jnp.float32),
        "mlp2_w": xavier(k7, (num_filters, num_filters)),
        "mlp2_b": jnp.zeros((num_filters,), jnp.float32),
    }

    out = update_e(v, dist, dist_emb, edge_index, params, cutoff,
                   block_edges=128)   # -> 2 grid steps, last one partial
    out = jax.block_until_ready(out)

    ref = update_e_ref(v, dist, dist_emb, edge_index, params, cutoff)

    assert out.shape == (num_edges, num_filters)
    assert out.dtype == v.dtype
    max_err = float(jnp.max(jnp.abs(out - ref)))
    assert max_err < 1e-2, f"max abs error too large: {max_err}"

    print("KERNEL_OK")
</pallas_src>

<mosaic_0001>
module attributes {stable_mosaic.version = 11 : i64} {
  func.func @_update_e_kernel(%arg0: i32, %arg1: memref<128x32xf32, #tpu.memory_space<vmem>>, %arg2: memref<128x50xf32, #tpu.memory_space<vmem>>, %arg3: memref<128x1xf32, #tpu.memory_space<vmem>>, %arg4: memref<32x64xf32, #tpu.memory_space<vmem>>, %arg5: memref<50x64xf32, #tpu.memory_space<vmem>>, %arg6: memref<1x64xf32, #tpu.memory_space<vmem>>, %arg7: memref<64x64xf32, #tpu.memory_space<vmem>>, %arg8: memref<1x64xf32, #tpu.memory_space<vmem>>, %arg9: memref<128x64xf32, #tpu.memory_space<vmem>>) attributes {dimension_semantics = [#tpu.dimension_semantics<parallel>], iteration_bounds = array<i64: 2>, scalar_prefetch = 0 : i64, scratch_operands = 0 : i64, tpu.core_type = #tpu.core_type<tc>, window_params = [{transform_indices = @transform_0, window_bounds = array<i64: 128, 32>}, {transform_indices = @transform_1, window_bounds = array<i64: 128, 50>}, {transform_indices = @transform_2, window_bounds = array<i64: 128, 1>}, {pipeline_mode = #tpu.pipeline_mode<synchronous>, transform_indices = @transform_3, window_bounds = array<i64: 32, 64>}, {pipeline_mode = #tpu.pipeline_mode<synchronous>, transform_indices = @transform_4, window_bounds = array<i64: 50, 64>}, {pipeline_mode = #tpu.pipeline_mode<synchronous>, transform_indices = @transform_5, window_bounds = array<i64: 1, 64>}, {pipeline_mode = #tpu.pipeline_mode<synchronous>, transform_indices = @transform_6, window_bounds = array<i64: 64, 64>}, {pipeline_mode = #tpu.pipeline_mode<synchronous>, transform_indices = @transform_7, window_bounds = array<i64: 1, 64>}, {transform_indices = @transform_8, window_bounds = array<i64: 128, 64>}]} {
    %c0 = arith.constant 0 : index
    %c0_0 = arith.constant 0 : index
    %0 = vector.load %arg2[%c0, %c0_0] : memref<128x50xf32, #tpu.memory_space<vmem>>, vector<128x50xf32>
    %c0_1 = arith.constant 0 : index
    %c0_2 = arith.constant 0 : index
    %1 = vector.load %arg5[%c0_1, %c0_2] : memref<50x64xf32, #tpu.memory_space<vmem>>, vector<50x64xf32>
    %cst = arith.constant dense<0.000000e+00> : vector<128x64xf32>
    %2 = tpu.matmul %0, %1, %cst {dimension_numbers = #tpu.dot_dimension_numbers<[1], [0], [0], [1], [0, 0, 1, 1], [], []>} : vector<128x50xf32>, vector<50x64xf32>, vector<128x64xf32> -> vector<128x64xf32>
    %c0_3 = arith.constant 0 : index
    %c0_4 = arith.constant 0 : index
    %3 = vector.load %arg6[%c0_3, %c0_4] : memref<1x64xf32, #tpu.memory_space<vmem>>, vector<1x64xf32>
    %4 = vector.broadcast %3 : vector<1x64xf32> to vector<128x64xf32>
    %5 = arith.addf %2, %4 : vector<128x64xf32>
    %cst_5 = arith.constant 0.000000e+00 : f32
    %6 = vector.broadcast %cst_5 : f32 to vector<128x64xf32>
    %7 = arith.maximumf %5, %6 : vector<128x64xf32>
    %8 = math.absf %5 : vector<128x64xf32>
    %cst_6 = arith.constant 0.000000e+00 : f32
    %9 = vector.broadcast %cst_6 : f32 to vector<128x64xf32>
    %10 = arith.subf %9, %8 : vector<128x64xf32>
    %11 = math.exp %10 : vector<128x64xf32>
    %12 = math.log1p %11 : vector<128x64xf32>
    %13 = arith.addf %7, %12 : vector<128x64xf32>
    %cst_7 = arith.constant 0.693147182 : f32
    %14 = vector.broadcast %cst_7 : f32 to vector<128x64xf32>
    %15 = arith.subf %13, %14 : vector<128x64xf32>
    %c0_8 = arith.constant 0 : index
    %c0_9 = arith.constant 0 : index
    %16 = vector.load %arg7[%c0_8, %c0_9] : memref<64x64xf32, #tpu.memory_space<vmem>>, vector<64x64xf32>
    %cst_10 = arith.constant dense<0.000000e+00> : vector<128x64xf32>
    %17 = tpu.matmul %15, %16, %cst_10 {dimension_numbers = #tpu.dot_dimension_numbers<[1], [0], [0], [1], [0, 0, 1, 1], [], []>} : vector<128x64xf32>, vector<64x64xf32>, vector<128x64xf32> -> vector<128x64xf32>
    %c0_11 = arith.constant 0 : index
    %c0_12 = arith.constant 0 : index
    %18 = vector.load %arg8[%c0_11, %c0_12] : memref<1x64xf32, #tpu.memory_space<vmem>>, vector<1x64xf32>
    %19 = vector.broadcast %18 : vector<1x64xf32> to vector<128x64xf32>
    %20 = arith.addf %17, %19 : vector<128x64xf32>
    %c0_13 = arith.constant 0 : index
    %c0_14 = arith.constant 0 : index
    %21 = vector.load %arg3[%c0_13, %c0_14] : memref<128x1xf32, #tpu.memory_space<vmem>>, vector<128x1xf32>
    %cst_15 = arith.constant 0.314159274 : f32
    %22 = vector.broadcast %cst_15 : f32 to vector<128x1xf32>
    %23 = arith.mulf %21, %22 : vector<128x1xf32>
    %24 = math.cos %23 : vector<128x1xf32>
    %cst_16 = arith.constant 1.000000e+00 : f32
    %25 = vector.broadcast %cst_16 : f32 to vector<128x1xf32>
    %26 = arith.addf %24, %25 : vector<128x1xf32>
    %cst_17 = arith.constant 5.000000e-01 : f32
    %27 = vector.broadcast %cst_17 : f32 to vector<128x1xf32>
    %28 = arith.mulf %27, %26 : vector<128x1xf32>
    %29 = vector.broadcast %28 : vector<128x1xf32> to vector<128x64xf32>
    %30 = arith.mulf %20, %29 : vector<128x64xf32>
    %c0_18 = arith.constant 0 : index
    %c0_19 = arith.constant 0 : index
    %31 = vector.load %arg1[%c0_18, %c0_19] : memref<128x32xf32, #tpu.memory_space<vmem>>, vector<128x32xf32>
    %c0_20 = arith.constant 0 : index
    %c0_21 = arith.constant 0 : index
    %32 = vector.load %arg4[%c0_20, %c0_21] : memref<32x64xf32, #tpu.memory_space<vmem>>, vector<32x64xf32>
    %cst_22 = arith.constant dense<0.000000e+00> : vector<128x64xf32>
    %33 = tpu.matmul %31, %32, %cst_22 {dimension_numbers = #tpu.dot_dimension_numbers<[1], [0], [0], [1], [0, 0, 1, 1], [], []>} : vector<128x32xf32>, vector<32x64xf32>, vector<128x64xf32> -> vector<128x64xf32>
    %34 = arith.mulf %33, %30 : vector<128x64xf32>
    %c0_23 = arith.constant 0 : index
    %c0_24 = arith.constant 0 : index
    %35 = vector.load %arg9[%c0_23, %c0_24] : memref<128x64xf32, #tpu.memory_space<vmem>>, vector<128x64xf32>
    tpu.vector_store %arg9[%c0_23, %c0_24], %34 {strides = array<i32>} : memref<128x64xf32, #tpu.memory_space<vmem>>, vector<128x64xf32>,
    return
  }
  func.func @transform_0(%arg0: i32) -> (i32, i32) {
    %c0_i32 = arith.constant 0 : i32
    %c0_i32_0 = arith.constant 0 : i32
    return %arg0, %c0_i32 : i32, i32
  }
  func.func @transform_1(%arg0: i32) -> (i32, i32) {
    %c0_i32 = arith.constant 0 : i32
    %c0_i32_0 = arith.constant 0 : i32
    return %arg0, %c0_i32 : i32, i32
  }
  func.func @transform_2(%arg0: i32) -> (i32, i32) {
    %c0_i32 = arith.constant 0 : i32
    %c0_i32_0 = arith.constant 0 : i32
    return %arg0, %c0_i32 : i32, i32
  }
  func.func @transform_3(%arg0: i32) -> (i32, i32) {
    %c0_i32 = arith.constant 0 : i32
    %c0_i32_0 = arith.constant 0 : i32
    %c0_i32_1 = arith.constant 0 : i32
    return %c0_i32, %c0_i32_0 : i32, i32
  }
  func.func @transform_4(%arg0: i32) -> (i32, i32) {
    %c0_i32 = arith.constant 0 : i32
    %c0_i32_0 = arith.constant 0 : i32
    %c0_i32_1 = arith.constant 0 : i32
    return %c0_i32, %c0_i32_0 : i32, i32
  }
  func.func @transform_5(%arg0: i32) -> (i32, i32) {
    %c0_i32 = arith.constant 0 : i32
    %c0_i32_0 = arith.constant 0 : i32
    %c0_i32_1 = arith.constant 0 : i32
    return %c0_i32, %c0_i32_0 : i32, i32
  }
  func.func @transform_6(%arg0: i32) -> (i32, i32) {
    %c0_i32 = arith.constant 0 : i32
    %c0_i32_0 = arith.constant 0 : i32
    %c0_i32_1 = arith.constant 0 : i32
    return %c0_i32, %c0_i32_0 : i32, i32
  }
  func.func @transform_7(%arg0: i32) -> (i32, i32) {
    %c0_i32 = arith.constant 0 : i32
    %c0_i32_0 = arith.constant 0 : i32
    %c0_i32_1 = arith.constant 0 : i32
    return %c0_i32, %c0_i32_0 : i32, i32
  }
  func.func @transform_8(%arg0: i32) -> (i32, i32) {
    %c0_i32 = arith.constant 0 : i32
    %c0_i32_0 = arith.constant 0 : i32
    return %arg0, %c0_i32 : i32, i32
  }
}

</mosaic_0001>

<bundles_post_ra>
// kernel: tpu_custom_call.1
= control target key start
LH: loop header
LB: loop body
LE: loop exit
PB: predicated region body
PF: predicated region fallthrough
CT: control target
= control target key end

     0   :  { %s4269_s27 = smov 0   ;;  %s4271_s28 = smov 0   ;;  %s6343_s0 = inlined_call_operand.vmem [shape: f32[200,32], index: 0, kind: input, shape index: {}]   ;;  %s6344_s1 = inlined_call_operand.vmem [shape: f32[200,50], index: 1, kind: input, shape index: {}]   ;;  %s6345_s2 = inlined_call_operand.vmem [shape: f32[200,1], index: 2, kind: input, shape index: {}]   ;;  %s6346_s3 = inlined_call_operand.vmem [shape: f32[32,64], index: 3, kind: input, shape index: {}]   ;;  %s6347_s4 = inlined_call_operand.vmem [shape: f32[50,64], index: 4, kind: input, shape index: {}]   ;;  %s6348_s5 = inlined_call_operand.vmem [shape: f32[1,64], index: 5, kind: input, shape index: {}]   ;;  %s6349_s6 = inlined_call_operand.vmem [shape: f32[64,64], index: 6, kind: input, shape index: {}]   ;;  %s6350_s7 = inlined_call_operand.vmem [shape: f32[1,64], index: 7, kind: input, shape index: {}]   ;;  %s6351_s8 = inlined_call_operand.vmem [shape: f32[200,64], index: 8, kind: output, shape index: {}]  }
   0x1   :  { %s4273_s29 = smov 0  }
   0x2 LB: > { %s4282_s30 = sadd.s32 4294967295, %s4183_s29   ;;  %s4284_s9 = sadd.s32 1, %s4183_s29   ;;  %s4183_s29 = sphi %s4273_s29, %s6489_s29   ;;  %s4179_s28 = sphi %s4271_s28, %s6488_s28   ;;  %s4175_s27 = sphi %s4269_s27, %s6487_s27  }
   0x3   : > { %s205_s10 = ssub.s32 %s4183_s29, %s4284_s9  ;;  %s208_s11 = sadd.s32 1, %s4179_s28 }
   0x4   : > { %p206_p0 = scmp.eq.s32.totalorder %s205_s10, 0  ;;  %p218_p1 = scmp.ne.s32.totalorder %s4179_s28, %s4175_s27 }
   0x5   : > { %p219_p2 = scmp.eq.s32.totalorder %s4282_s30, 1  ;;  %p3460_p3 = scmp.ge.s32.totalorder %s4183_s29, 1 }
   0x6   : > { %s4292_s12 = scalar_select %p206_p0, %s4179_s28, %s208_s11  }
   0x7   : > { %p4294_p4 = por %p219_p2, %p218_p1  ;;  %p309_p5 = scmp.lt.s32.totalorder %s4183_s29, 3 }
   0x9   : > { %p310_p6 = pnand %p3460_p3, %p309_p5 }
   0xb   : > { %313 = sbr.rel (%p310_p6) target bundleno = 881 (0x371), region = 52 }
  0x12   : > { %v427_v0 = vld [vmem:[%s6347_s4] sm:$0xff]  ;;  %v428_v1 = vld [vmem:[%s6347_s4 + $0x8] sm:$0xff]  ;;  %v429_v2 = vld [vmem:[%s6347_s4 + $0x10] sm:$0xff]  ;;  %s4308_s20 = sshll.u32 %s4282_s30, 4  ;;  %vm441_vm0 = vcmask 408576   ;;  %vm490_vm1 = vcmask 1041408  }
  0x13   : > { %v3796_v3 = vpack.c.bf16 %v428_v1, %v427_v0  ;;  %v430_v4 = vld [vmem:[%s6347_s4 + $0x18] sm:$0xff]  ;;  %p369_p7 = scmp.lt.s32.totalorder %s4308_s20, 24  ;;  %v431_v6 = vld [vmem:[%s6347_s4 + $0x20] sm:$0xff]  ;;  %v432_v7 = vld [vmem:[%s6347_s4 + $0x28] sm:$0xff]  ;;  %v6355_v58 = vmov 2102212464  }
  0x14   : > { %v3800_v5 = vpack.c.bf16 %v430_v4, %v429_v2  ;;  %v3804_v8 = vpack.c.bf16 %v432_v7, %v431_v6  ;;  %v433_v11 = vld [vmem:[%s6347_s4 + $0x30] sm:$0x3]  ;;  %v895_v39 = vld [vmem:[%s6349_s6] sm:$0xff]  ;;  %v896_v40 = vld [vmem:[%s6349_s6 + $0x8] sm:$0xff]  ;;  %v6361_v60 = vmov 920167782  }
  0x15   : > { %3797 = vmatprep.subr.bf16.mxu0 %v3796_v3  ;;  %3832 = vmatprep.subr.bf16.mxu1 %v3796_v3  ;;  %s370_s29 = scalar_select %p369_p7, %s4308_s20, 24  ;;  %v3808_v44 = vpack.c.bf16 %v896_v40, %v895_v39  ;;  %v897_v48 = vld [vmem:[%s6349_s6 + $0x10] sm:$0xff]  ;;  %v898_v49 = vld [vmem:[%s6349_s6 + $0x18] sm:$0xff]  ;;  %v899_v56 = vld [vmem:[%s6349_s6 + $0x20] sm:$0xff]  ;;  %v6359_v1 = vmov 683565275  }
  0x16   : > { %3799 = vmatpush3.bf16.msra.mxu0 %v3796_v3  ;;  %3836 = vmatpush3.bf16.msra.mxu1 %v3796_v3  ;;  %v3812_v51 = vpack.c.bf16 %v898_v49, %v897_v48  ;;  %v900_v57 = vld [vmem:[%s6349_s6 + $0x28] sm:$0xff]  ;;  %v6357_v3 = vmov 2475754826   ;;  %v2928_v6 = vld [vmem:[%s6346_s3] sm:$0xff]  ;;  %vm2932_vm8 = vcmask 261120   ;;  %s361_s25 = sand.u32 1, %s4175_s27  }
  0x17   : > { %3801 = vmatprep.subr.bf16.mxu0 %v3800_v5  ;;  %3833 = vmatprep.subr.bf16.mxu1 %v3800_v5  ;;  %s4321_s10 = sshll.u32 %s370_s29, 3  ;;  %v3816_v62 = vpack.c.bf16 %v900_v57, %v899_v56  ;;  %v2929_v7 = vld [vmem:[%s6346_s3 + $0x8] sm:$0xff]  ;;  %s3461_s26 = sshll.u32 %s361_s25, 7 }
  0x18   : > { %s4327_s15 = scalar_lea.vmem %s6344_s1, %s4321_s10  ;;  %s4368_s21 = scalar_lea.vmem %s6345_s2, %s4321_s10 }
  0x19   : > { %v411_v9 = vld [vmem:[%s4327_s15] sm:$0xff]  ;;  %v412_v12 = vld [vmem:[%s4327_s15 + $0x8] sm:$0xff]  ;;  %v413_v14 = vld [vmem:[%s4327_s15 + $0x10] sm:$0xff]  ;;  %s4455_s22 = scalar_lea.vmem %s6343_s0, %s4321_s10  ;;  %s6197_s27 = scalar_lea.vmem [#allocation2], %s3461_s26  }
  0x1a   : > { %v419_v10 = vld [vmem:[%s4327_s15 + $0x40] sm:$0xff]  ;;  %3803 = vmatpush3.bf16.msra.mxu0 %v3800_v5  ;;  %3837 = vmatpush3.bf16.msra.mxu1 %v3800_v5  ;;  %v420_v13 = vld [vmem:[%s4327_s15 + $0x48] sm:$0xff]  ;;  %v421_v15 = vld [vmem:[%s4327_s15 + $0x50] sm:$0xff]  ;;  %s3166_s29 = ssub.s32 (%p4294_p4), 25, %s4308_s20  ;;  %s3616_s11 = sshll.u32 (%p4294_p4), %s4282_s30, 7 }
  0x1b   : > { %3805 = vmatprep.subr.bf16.mxu0 %v3804_v8  ;;  %3834 = vmatprep.subr.bf16.mxu1 %v3804_v8  ;;  %v414_v16 = vld [vmem:[%s4327_s15 + $0x18] sm:$0xff]  ;;  %v415_v18 = vld [vmem:[%s4327_s15 + $0x20] sm:$0xff]  ;;  %v416_v20 = vld [vmem:[%s4327_s15 + $0x28] sm:$0xff]  ;;  %p3167_p8 = scmp.lt.s32.totalorder (%p4294_p4), %s3166_s29, 16  ;;  %s6250_s16 = scalar_lea.vmem (%p4294_p4), %s6351_s8, %s3616_s11  }
  0x1c   : > { %3700 = vmatprep.mubr.msk.f32.mxu0 %vm441_vm0, %v411_v9  ;;  %3712 = vmatprep.mubr.msk.f32.mxu1 %vm441_vm0, %v419_v10  ;;  %v422_v17 = vld [vmem:[%s4327_s15 + $0x58] sm:$0xff]  ;;  %v423_v19 = vld [vmem:[%s4327_s15 + $0x60] sm:$0xff]  ;;  %v424_v21 = vld [vmem:[%s4327_s15 + $0x68] sm:$0xff]  ;;  %v6353_v9 = vmov 2131351028  }
  0x1d   : > { %v417_v22 = vld [vmem:[%s4327_s15 + $0x30] sm:$0xff]  ;;  %v418_v24 = vld [vmem:[%s4327_s15 + $0x38] sm:$0xff]  ;;  %v1104_v27 = vld [vmem:[%s4368_s21] sm:$0xff] }
  0x1e   : > { %3807 = vmatpush3.bf16.msra.mxu0 %v3804_v8  ;;  %3838 = vmatpush3.bf16.msra.mxu1 %v3804_v8  ;;  %v425_v23 = vld [vmem:[%s4327_s15 + $0x70] sm:$0xff]  ;;  %v426_v25 = vld [vmem:[%s4327_s15 + $0x78] sm:$0xff]  ;;  %v4374_v29 = vmul.f32 0.31415927, %v1104_v27  ;;  %v2913_v57 = vld [vmem:[%s4455_s22 + $0x8] sm:$0xff] }
  0x1f   : > { %3698 = vmatprep.subr.msk.mxu0 %vm490_vm1, %v433_v11  ;;  %3835 = vmatprep.subr.msk.mxu1 %vm490_vm1, %v433_v11  ;;  %v1106_v26 = vld [vmem:[%s4368_s21 + $0x10] sm:$0xff]  ;;  %v1107_v32 = vld [vmem:[%s4368_s21 + $0x18] sm:$0xff] }
  0x20   : > { %v4372_v28 = vmul.f32 0.31415927, %v1106_v26  ;;  %v1139_v31 = vand.u32 2139095040, %v4374_v29  ;;  %v4379_v35 = vmul.f32 0.31415927, %v1107_v32 }
  0x22   : > { %3699 = vmatpush3.msk.msra.mxu0 %vm490_vm1, %v433_v11  ;;  %3839 = vmatpush3.msk.msra.mxu1 %vm490_vm1, %v433_v11  ;;  %v1345_v30 = vand.u32 2139095040, %v4372_v28  ;;  %v1140_v34 = vshrl.u32 %v1139_v31, 23  ;;  %v1448_v38 = vand.u32 2139095040, %v4379_v35  ;;  %v1342_v55 = vand.u32 2147483647, %v4372_v28 }
  0x23   : > { %3701 = vmatmul.mubr.msk.f32.vlgmr.msra.gmra.mrb[0].mxu0 %vm441_vm0, %v412_v12  ;;  %3713 = vmatmul.mubr.msk.f32.vlgmr.msra.gmra.mrb[0].mxu1 %vm441_vm0, %v420_v13  ;;  %v3824_v13 = vpack.c.bf16 %v2929_v7, %v2928_v6 }
  0x24   : > { %3703 = vmatprep.mubr.msk.f32.mxu0 %vm441_vm0, %v413_v14  ;;  %3715 = vmatprep.mubr.msk.f32.mxu1 %vm441_vm0, %v421_v15  ;;  %v1346_v33 = vshrl.u32 %v1345_v30, 23  ;;  %v3519_v37 = vadd.s32 4294967169, %v1140_v34  ;;  %v1449_v43 = vshrl.u32 %v1448_v38, 23  ;;  %v1349_v63 = vand.u32 8388607, %v1342_v55  ;;  %v901_v14 = vld [vmem:[%s6349_s6 + $0x30] sm:$0xff] }
  0x25   : > { %3809 = vmatprep.subr.bf16.mxu1 %v3808_v44  ;;  %v902_v15 = vld [vmem:[%s6349_s6 + $0x38] sm:$0xff]  ;;  %3825 = vmatprep.subr.bf16.mxu0 %v3824_v13 }
  0x26   : > { %v3527_v36 = vadd.s32 4294967169, %v1346_v33  ;;  %v1146_v42 = vadd.s32 1, %v3519_v37  ;;  %v3531_v45 = vadd.s32 4294967169, %v1449_v43  ;;  %3811 = vmatpush3.bf16.msra.mxu1 %v3808_v44  ;;  %v1350_v8 = vor.u32 8388608, %v1349_v63  ;;  %3827 = vmatpush3.bf16.msra.mxu0 %v3824_v13 }
  0x27   : > { %3704 = vmatmul.mubr.msk.f32.gmra.mrb[2].mxu0 %vm441_vm0, %v414_v16  ;;  %3716 = vmatmul.mubr.msk.f32.gmra.mrb[2].mxu1 %vm441_vm0, %v422_v17  ;;  %v1136_v44 = vand.u32 2147483647, %v4374_v29 }
  0x28   : > { %3706 = vmatprep.mubr.msk.f32.mxu0 %vm441_vm0, %v415_v18  ;;  %3718 = vmatprep.mubr.msk.f32.mxu1 %vm441_vm0, %v423_v19  ;;  %v1352_v41 = vadd.s32 1, %v3527_v36  ;;  %vm1147_vm3 = vcmp.gt.s32.totalorder %v1146_v42, 0  ;;  %v4399_v54 = vadd.s32 1, %v3531_v45  ;;  %v3820_v19 = vpack.c.bf16 %v902_v15, %v901_v14  ;;  %v2915_v14 = vld [vmem:[%s4455_s22 + $0x18] sm:$0xff] }
  0x29   : > { %v4388_v47 = vsel %vm1147_vm3, %v1146_v42, 0  ;;  %3813 = vmatprep.subr.bf16.mxu1 %v3812_v51  ;;  %v1390_v36 = vshll.u32 %v1350_v8, 8 }
  0x2a   : > { %vm1353_vm2 = vcmp.gt.s32.totalorder %v1352_v41, 0  ;;  %v4397_v53 = vand.u32 31, %v4388_v47  ;;  %3815 = vmatpush3.bf16.msra.mxu1 %v3812_v51  ;;  %vm1456_vm9 = vcmp.gt.s32.totalorder %v4399_v54, 0 }
  0x2b   : > { %3707 = vmatmul.mubr.msk.f32.gmra.mrb[4].mxu0 %vm441_vm0, %v416_v20  ;;  %3719 = vmatmul.mubr.msk.f32.gmra.mrb[4].mxu1 %vm441_vm0, %v424_v21  ;;  %v1354_v46 = vsel %vm1353_vm2, %v1352_v41, 0 }
  0x2c   : > { %3709 = vmatprep.mubr.msk.f32.mxu0 %vm441_vm0, %v417_v22  ;;  %3721 = vmatprep.mubr.msk.f32.mxu1 %vm441_vm0, %v425_v23  ;;  %v1356_v50 = vand.u32 31, %v1354_v46  ;;  %v1355_v0 = vshrl.u32 %v1354_v46, 5  ;;  %v6363_v22 = vmov 1326507024   ;;  %v1151_v40 = vsub.s32 32, %v4397_v53 }
  0x2d   : > { %3817 = vmatprep.subr.bf16.mxu1 %v3816_v62  ;;  %v1153_v63 = vshll.u32 %v6359_v1, %v4397_v53  ;;  %v1162_v8 = vshll.u32 %v6355_v58, %v4397_v53 }
  0x2e   : > { %v1357_v52 = vsub.s32 32, %v1356_v50  ;;  %v1368_v59 = vshll.u32 %v6355_v58, %v1356_v50  ;;  %v1359_v2 = vshll.u32 %v6359_v1, %v1356_v50  ;;  %v1362_v5 = vshll.u32 %v6357_v3, %v1356_v50  ;;  %3819 = vmatpush3.bf16.msra.mxu1 %v3816_v62 }
  0x2f   : > { %3710 = vmatmul.mubr.msk.f32.gmra.mrb[6].mxu0 %vm441_vm0, %v418_v24  ;;  %3722 = vmatmul.mubr.msk.f32.gmra.mrb[6].mxu1 %vm441_vm0, %v426_v25  ;;  %v1365_v11 = vshll.u32 %v6353_v9, %v1356_v50  ;;  %v1371_v18 = vshll.u32 %v6361_v60, %v1356_v50  ;;  %vm1374_vm4 = vcmp.lt.s32.totalorder %v1355_v0, 1  ;;  %vm1375_vm5 = vcmp.lt.s32.totalorder %v1355_v0, 2  ;;  %v2930_v24 = vld [vmem:[%s6346_s3 + $0x10] sm:$0xff]  ;;  %v2931_v25 = vld [vmem:[%s6346_s3 + $0x18] sm:$0xff]  ;;  %v2912_v50 = vld [vmem:[%s4455_s22] sm:$0xff] }
  0x30   : > { %v1369_v61 = vshrl.u32 %v6361_v60, %v1357_v52  ;;  %v1360_v4 = vshrl.u32 %v6357_v3, %v1357_v52  ;;  %v1363_v10 = vshrl.u32 %v6353_v9, %v1357_v52  ;;  %v1366_v12 = vshrl.u32 %v6355_v58, %v1357_v52  ;;  %3821 = vmatprep.subr.bf16.mxu1 %v3820_v19 }
  0x31   : > { %v1372_v23 = vshrl.u32 %v6363_v22, %v1357_v52  ;;  %vm1376_vm6 = vcmp.lt.s32.totalorder %v1355_v0, 3  ;;  %vm1377_vm7 = vcmp.lt.s32.totalorder %v1355_v0, 4  ;;  %v3828_v32 = vpack.c.bf16 %v2931_v25, %v2930_v24  ;;  %3772 = vmatprep.mubr.msk.f32.mxu0 %vm2932_vm8, %v2912_v50  ;;  %v2916_v24 = vld [vmem:[%s4455_s22 + $0x20] sm:$0xff] }
  0x32   : > { %v1361_v16 = vor.u32 %v1360_v4, %v1359_v2  ;;  %v1370_v17 = vor.u32 %v1369_v61, %v1368_v59  ;;  %v1364_v20 = vor.u32 %v1363_v10, %v1362_v5  ;;  %v1367_v21 = vor.u32 %v1366_v12, %v1365_v11  ;;  %3823 = vmatpush3.bf16.msra.mxu1 %v3820_v19  ;;  %v2914_v10 = vld [vmem:[%s4455_s22 + $0x10] sm:$0xff] }
  0x33   : > { %v1373_v26 = vor.u32 %v1372_v23, %v1371_v18  ;;  %v1358_v33 = vshrl.u32 %v6359_v1, %v1357_v52  ;;  %3829 = vmatprep.subr.bf16.mxu0 %v3828_v32  ;;  %v1143_v59 = vand.u32 8388607, %v1136_v44  ;;  %v1149_v61 = vshrl.u32 %v4388_v47, 5 }
  0x34   : > { %v1382_v27 = vsel %vm1374_vm4, %v1361_v16, %v1364_v20  ;;  %v1383_v30 = vsel %vm1377_vm7, %v1370_v17, 920167782  ;;  %v1386_v31 = vsel %vm1374_vm4, %v1364_v20, %v1367_v21  ;;  %v1379_v37 = vsel %vm1377_vm7, %v1367_v21, 2102212464  ;;  %3831 = vmatpush3.bf16.msra.mxu0 %v3828_v32 }
  0x35   : > { %v1384_v34 = vsel %vm1376_vm6, %v1367_v21, %v1383_v30  ;;  %v1387_v39 = vsel %vm1377_vm7, %v1373_v26, 1326507024  ;;  %v1378_v41 = vsel %vm1374_vm4, %v1358_v33, %v1361_v16  ;;  %v1380_v42 = vsel %vm1376_vm6, %v1364_v20, %v1379_v37  ;;  %v2917_v30 = vld [vmem:[%s4455_s22 + $0x28] sm:$0xff] }
  0x36   : > { %v1385_v38 = vsel %vm1375_vm5, %v1382_v27, %v1384_v34  ;;  %v1388_v43 = vsel %vm1376_vm6, %v1370_v17, %v1387_v39  ;;  %v1381_v45 = vsel %vm1375_vm5, %v1378_v41, %v1380_v42  ;;  %v1152_v62 = vshrl.u32 %v6359_v1, %v1151_v40  ;;  %v2918_v39 = vld [vmem:[%s4455_s22 + $0x30] sm:$0xff] }
  0x37   : > { %v1389_v46 = vsel %vm1375_vm5, %v1386_v31, %v1388_v43  ;;  %v4459_v48 = vmul.u32.u64.low %v1390_v36, %v1385_v38  ;;  %v4460_v49 = vmul.u32.u64.high %v1390_v36, %v1385_v38, %v4459_v48  ;;  %v1397_v56 = vmul.u32 %v1390_v36, %v1381_v45  ;;  %3773 = vmatmul.mubr.msk.f32.vlgmr.msra.gmra.mrb[8].mxu0 %vm2932_vm8, %v2913_v57  ;;  %v1105_v43 = vld [vmem:[%s4368_s21 + $0x8] sm:$0xff] }
  0x38   : > { %v4464_v51 = vmul.u32.u64.low %v1390_v36, %v1389_v46  ;;  %v4465_v52 = vmul.u32.u64.high %v1390_v36, %v1389_v46, %v4464_v51  ;;  %v1154_v0 = vshrl.u32 %v6357_v3, %v1151_v40  ;;  %v1156_v2 = vshll.u32 %v6357_v3, %v4397_v53  ;;  %3775 = vmatprep.mubr.msk.f32.mxu0 %vm2932_vm8, %v2914_v10 }
  0x39   : > { %v1157_v4 = vshrl.u32 %v6353_v9, %v1151_v40  ;;  %v1159_v47 = vshll.u32 %v6353_v9, %v4397_v53  ;;  %v1400_v5 = vadd.s32 1, %v4460_v49  ;;  %v1144_v6 = vor.u32 8388608, %v1143_v59 }
  0x3a   : > { %v1160_v7 = vshrl.u32 %v6355_v58, %v1151_v40  ;;  %vm1399_vm10 = vc.u32 %v4465_v52, %v4459_v48  ;;  %v1155_v11 = vor.u32 %v1154_v0, %v1153_v63  ;;  %v1163_v13 = vshrl.u32 %v6361_v60, %v1151_v40  ;;  %v2921_v63 = vld [vmem:[%s4455_s22 + $0x48] sm:$0xff] }
  0x3b   : > { %v1158_v12 = vor.u32 %v1157_v4, %v1156_v2  ;;  %v1401_v15 = vsel %vm1399_vm10, %v1400_v5, %v4460_v49  ;;  %v1165_v17 = vshll.u32 %v6361_v60, %v4397_v53  ;;  %v1166_v18 = vshrl.u32 %v6363_v22, %v1151_v40  ;;  %3776 = vmatmul.mubr.msk.f32.gmra.mrb[10].mxu0 %vm2932_vm8, %v2915_v14  ;;  %v2919_v40 = vld [vmem:[%s4455_s22 + $0x38] sm:$0xff] }
  0x3c   : > { %v1161_v16 = vor.u32 %v1160_v7, %v1159_v47  ;;  %v1402_v19 = vadd.s32 %v1401_v15, %v1397_v56  ;;  %v1164_v20 = vor.u32 %v1163_v13, %v1162_v8  ;;  %vm1168_vm11 = vcmp.lt.s32.totalorder %v1149_v61, 1  ;;  %3778 = vmatprep.mubr.msk.f32.mxu0 %vm2932_vm8, %v2916_v24  ;;  %v2923_v7 = vld [vmem:[%s4455_s22 + $0x58] sm:$0xff] }
  0x3d   : > { %vm1169_vm12 = vcmp.lt.s32.totalorder %v1149_v61, 2  ;;  %v1167_v21 = vor.u32 %v1166_v18, %v1165_v17  ;;  %vm1170_vm13 = vcmp.lt.s32.totalorder %v1149_v61, 3  ;;  %vm1171_vm14 = vcmp.lt.s32.totalorder %v1149_v61, 4  ;;  %v2920_v61 = vld [vmem:[%s4455_s22 + $0x40] sm:$0xff]  ;;  %v2925_v17 = vld [vmem:[%s4455_s22 + $0x68] sm:$0xff] }
  0x3e   : > { %v1172_v23 = vsel %vm1168_vm11, %v1152_v62, %v1155_v11  ;;  %v1403_v25 = vadd.s32 536870912, %v1402_v19  ;;  %v1173_v26 = vsel %vm1171_vm14, %v1161_v16, 2102212464  ;;  %v1176_v27 = vsel %vm1168_vm11, %v1155_v11, %v1158_v12 }
  0x3f   : > { %v1177_v53 = vsel %vm1171_vm14, %v1164_v20, 920167782  ;;  %v1174_v31 = vsel %vm1170_vm13, %v1158_v12, %v1173_v26  ;;  %v1180_v33 = vsel %vm1168_vm11, %v1158_v12, %v1161_v16  ;;  %v1181_v34 = vsel %vm1171_vm14, %v1167_v21, 1326507024  ;;  %3779 = vmatmul.mubr.msk.f32.gmra.mrb[12].mxu0 %vm2932_vm8, %v2917_v30 }
  0x40   : > { %v1178_v32 = vsel %vm1170_vm13, %v1161_v16, %v1177_v53  ;;  %v4504_v36 = vshrl.u32 %v1403_v25, 30  ;;  %v1182_v38 = vsel %vm1170_vm13, %v1164_v20, %v1181_v34  ;;  %v1184_v42 = vshll.u32 %v1144_v6, 8  ;;  %3781 = vmatprep.mubr.msk.f32.mxu0 %vm2932_vm8, %v2918_v39  ;;  %v2922_v6 = vld [vmem:[%s4455_s22 + $0x50] sm:$0xff]  ;;  %v2924_v16 = vld [vmem:[%s4455_s22 + $0x60] sm:$0xff] }
  0x41   : > { %v1179_v37 = vsel %vm1169_vm12, %v1176_v27, %v1178_v32  ;;  %v1183_v41 = vsel %vm1169_vm12, %v1180_v33, %v1182_v38  ;;  %v1175_v46 = vsel %vm1169_vm12, %v1172_v23, %v1174_v31  ;;  %v1457_v49 = vsel %vm1456_vm9, %v4399_v54, 0  ;;  %v2926_v31 = vld [vmem:[%s4455_s22 + $0x70] sm:$0xff] }
  0x42   : > { %v1405_v45 = vshll.u32 %v4504_v36, 30  ;;  %v4518_v50 = vmul.u32.u64.low %v1184_v42, %v1183_v41  ;;  %v4519_v51 = vmul.u32.u64.high %v1184_v42, %v1183_v41, %v4518_v50  ;;  %v4528_v62 = vmul.f32 0.31415927, %v1105_v43 }
  0x43   : > { %v4521_v56 = vmul.u32.u64.low %v1184_v42, %v1179_v37  ;;  %v4522_v57 = vmul.u32.u64.high %v1184_v42, %v1179_v37, %v4521_v56  ;;  %3782 = vmatmul.mubr.msk.f32.gmra.mrb[14].mxu0 %vm2932_vm8, %v2919_v40  ;;  %v1191_v0 = vmul.u32 %v1184_v42, %v1175_v46  ;;  %v1459_v2 = vand.u32 31, %v1457_v49 }
  0x44   : > { %v4526_v59 = vsub.s32 %v1402_v19, %v1405_v45  ;;  %6379 = vst [vmem:[#allocation3_spill] sm:$0xff] %v4528_v62  ;;  %3784 = vmatprep.mubr.msk.f32.mxu0 %vm2932_vm8, %v2920_v61  ;;  %v1242_v5 = vand.u32 2139095040, %v4528_v62  ;;  %v6365_v18 = vand.u32 2147483647, %v4379_v35  ;;  %v4550_v19 = vshrl.u32 %v1457_v49, 5 }
  0x45   : > { %vm1193_vm15 = vc.u32 %v4519_v51, %v4521_v56  ;;  %v1194_v4 = vadd.s32 1, %v4522_v57  ;;  %v4544_v12 = vsub.s32 32, %v1459_v2  ;;  %v1462_v20 = vshll.u32 %v6359_v1, %v1459_v2 }
  0x46   : > { %v1408_v54 = vsub.s32 0, %v4526_v59  ;;  %v1243_v15 = vshrl.u32 %v1242_v5, 23  ;;  %v1465_v21 = vshll.u32 %v6357_v3, %v1459_v2  ;;  %v1474_v24 = vshll.u32 %v6361_v60, %v1459_v2 }
  0x47   : > { %3785 = vmatmul.mubr.msk.f32.gmra.mrb[16].mxu0 %vm2932_vm8, %v2921_v63  ;;  %v1195_v8 = vsel %vm1193_vm15, %v1194_v4, %v4522_v57  ;;  %v1475_v25 = vshrl.u32 %v6363_v22, %v4544_v12  ;;  %v1398_v26 = vadd.s32 %v4459_v48, %v4465_v52  ;;  %v1471_v53 = vshll.u32 %v6355_v58, %v1459_v2  ;;  %v2927_v48 = vld [vmem:[%s4455_s22 + $0x78] sm:$0xff] }
  0x48   : > { %v3528_v47 = vmin.u32 %v1408_v54, %v4526_v59  ;;  %3787 = vmatprep.mubr.msk.f32.mxu0 %vm2932_vm8, %v2922_v6  ;;  %v1196_v11 = vadd.s32 %v1195_v8, %v1191_v0  ;;  %v1472_v30 = vshrl.u32 %v6361_v60, %v4544_v12  ;;  %v1463_v32 = vshrl.u32 %v6357_v3, %v4544_v12 }
  0x49   : > { %v1466_v33 = vshrl.u32 %v6353_v9, %v4544_v12  ;;  %v1468_v34 = vshll.u32 %v6353_v9, %v1459_v2  ;;  %v4223_v52 = vmov 0   ;;  %v1469_v40 = vshrl.u32 %v6355_v58, %v4544_v12 }
  0x4a   : > { %v1410_v10 = vclz %v3528_v47  ;;  %v1197_v14 = vadd.s32 536870912, %v1196_v11  ;;  %4000 = vset.pattern.permute.xlu1 %v4223_v52  ;;  %3999 = vset.pattern.permute.xlu0 %v4223_v52  ;;  %v1452_v42 = vand.u32 8388607, %v6365_v18  ;;  %v1476_v43 = vor.u32 %v1475_v25, %v1474_v24 }
  0x4b   : > { %3788 = vmatmul.mubr.msk.f32.gmra.mrb[18].mxu0 %vm2932_vm8, %v2923_v7  ;;  %v1473_v49 = vor.u32 %v1472_v30, %v1471_v53  ;;  %vm1480_vm1 = vcmp.lt.s32.totalorder %v4550_v19, 4  ;;  %v1464_v57 = vor.u32 %v1463_v32, %v1462_v20  ;;  %v1467_v54 = vor.u32 %v1466_v33, %v1465_v21 }
  0x4c   : > { %v3529_v13 = vadd.s32 4294967294, %v1410_v10  ;;  %3790 = vmatprep.mubr.msk.f32.mxu0 %vm2932_vm8, %v2924_v16  ;;  %v4555_v23 = vshrl.u32 %v1197_v14, 30  ;;  %v1470_v0 = vor.u32 %v1469_v40, %v1468_v34  ;;  %vm1477_vm2 = vcmp.lt.s32.totalorder %v4550_v19, 1 }
  0x4d   : > { %vm1479_vm3 = vcmp.lt.s32.totalorder %v4550_v19, 3  ;;  %v1490_v4 = vsel %vm1480_vm1, %v1476_v43, 1326507024  ;;  %v1453_v6 = vor.u32 8388608, %v1452_v42  ;;  %v1486_v7 = vsel %vm1480_vm1, %v1473_v49, 920167782 }
  0x4e   : > { %vm3530_vm0 = vcmp.lt.s32.totalorder %v3529_v13, 0  ;;  %v1199_v41 = vshll.u32 %v4555_v23, 30  ;;  %vm1478_vm4 = vcmp.lt.s32.totalorder %v4550_v19, 2  ;;  %v1489_v14 = vsel %vm1477_vm2, %v1467_v54, %v1470_v0 }
  0x4f   : > { %v1413_v27 = vsel %vm3530_vm0, 0, %v3529_v13  ;;  %3791 = vmatmul.mubr.msk.f32.gmra.mrb[20].mxu0 %vm2932_vm8, %v2925_v17  ;;  %v1485_v13 = vsel %vm1477_vm2, %v1464_v57, %v1467_v54  ;;  %v1428_v16 = vsub.s32 4, %v4504_v36  ;;  %v1222_v20 = vsub.s32 4, %v4555_v23 }
  0x50   : > { %3793 = vmatprep.mubr.msk.f32.mxu0 %vm2932_vm8, %v2926_v31  ;;  %v1414_v37 = vsub.s32 32, %v1413_v27  ;;  %v1415_v38 = vshll.u32 %v4526_v59, %v1413_v27  ;;  %v1418_v39 = vsub.s32 4294967266, %v1413_v27  ;;  %v4582_v50 = vsub.s32 %v1196_v11, %v1199_v41 }
  0x51   : > { %v3523_v59 = vadd.s32 4294967169, %v1243_v15  ;;  %v1491_v15 = vsel %vm1479_vm3, %v1473_v49, %v1490_v4  ;;  %v1487_v21 = vsel %vm1479_vm3, %v1470_v0, %v1486_v7  ;;  %v1461_v25 = vshrl.u32 %v6359_v1, %v4544_v12 }
  0x52   : > { %v1416_v45 = vshrl.u32 %v1398_v26, %v1414_v37  ;;  %v1419_v46 = vadd.s32 127, %v1418_v39  ;;  %v1202_v2 = vsub.s32 0, %v4582_v50  ;;  %v4605_v26 = vshll.u32 %v1453_v6, 8 }
  0x53   : > { %3794 = vmatmul.mubr.msk.f32.gmra.mrb[22].mxu0 %vm2932_vm8, %v2927_v48  ;;  %v1249_v10 = vadd.s32 1, %v3523_v59  ;;  %v1482_v27 = vsel %vm1480_vm1, %v1470_v0, 2102212464  ;;  %v1492_v53 = vsel %vm1478_vm4, %v1489_v14, %v1491_v15  ;;  %vm1344_vm5 = vcmp.lt.s32.totalorder %v4372_v28, 0 }
  0x54   : > { %v1417_v61 = vor.u32 %v1416_v45, %v1415_v38  ;;  %v1420_v63 = vshll.u32 %v1419_v46, 23  ;;  %v3520_v8 = vmin.u32 %v1202_v2, %v4582_v50  ;;  %vm1138_vm6 = vcmp.lt.s32.totalorder %v4374_v29, 0  ;;  %v1109_v45 = vld [vmem:[%s4368_s21 + $0x28] sm:$0xff]  ;;  %v1108_v46 = vld [vmem:[%s4368_s21 + $0x20] sm:$0xff] }
  0x55   : > { %v1488_v31 = vsel %vm1478_vm4, %v1485_v13, %v1487_v21  ;;  %v1429_v12 = vsel %vm1344_vm5, %v1428_v16, %v4504_v36  ;;  %v1223_v33 = vsel %vm1138_vm6, %v1222_v20, %v4555_v23  ;;  %vm1250_vm7 = vcmp.gt.s32.totalorder %v1249_v10, 0 }
  0x56   : > { %v1421_v47 = vor.u32 4788187, %v1420_v63  ;;  %v1424_v5 = vcvt.s32.f32 %v1417_v61  ;;  %v1204_v17 = vclz %v3520_v8  ;;  %v1481_v34 = vsel %vm1477_vm2, %v1461_v25, %v1464_v57  ;;  %v4667_v63 = vld [vmem:[%s6348_s5] ss:$0 sm:$0xff] }
  0x57   : > { %v1483_v48 = vsel %vm1479_vm3, %v1467_v54, %v1482_v27  ;;  %v4626_v52 = vmul.u32.u64.low %v4605_v26, %v1492_v53  ;;  %v4627_v37 = vmul.u32.u64.high %v4605_v26, %v1492_v53, %v4626_v52  ;;  %vm4631_vm8 = vcmp.le.f32.partialorder %v1342_v55, 0.7853982 }
  0x58   : > { %v1422_v11 = vand.u32 2147483647, %v1421_v47  ;;  %v3521_v30 = vadd.s32 4294967294, %v1204_v17  ;;  %vm4637_vm9 = vcmp.le.f32.partialorder %v1136_v44, 0.7853982  ;;  %v1431_v40 = vsel %vm4631_vm8, 0, %v1429_v12 }
  0x59   : > { %v4642_v38 = vmul.u32.u64.low %v4605_v26, %v1488_v31  ;;  %v4643_v39 = vmul.u32.u64.high %v4605_v26, %v1488_v31, %v4642_v38  ;;  %v1225_v55 = vsel %vm4637_vm9, 0, %v1223_v33  ;;  %v6352_v41 = vand.u32 2147483647, %v4528_v62 }
  0x5a   : > { %v1425_v24 = vmul.f32 %v1424_v5, %v1422_v11  ;;  %vm3522_vm10 = vcmp.lt.s32.totalorder %v3521_v30, 0  ;;  %v4654_v44 = vsel %vm1478_vm4, %v1481_v34, %v1483_v48  ;;  %v1251_v43 = vsel %vm1250_vm7, %v1249_v10, 0 }
  0x5b   : > { %v4658_v49 = vand.u32 3, %v1431_v40  ;;  %v1192_v57 = vadd.s32 %v4521_v56, %v4519_v51  ;;  %v1207_v59 = vsel %vm3522_vm10, 0, %v3521_v30  ;;  %v4662_v61 = vand.u32 3, %v1225_v55 }
  0x5c   : > { %v1426_v32 = vxor.u32 2147483648, %v1425_v24  ;;  %v1500_v54 = vmul.u32 %v4605_v26, %v4654_v44  ;;  %v4676_v0 = vand.u32 8388607, %v6352_v41  ;;  %v4678_v51 = vand.u32 31, %v1251_v43 }
  0x5d   : > { %v1208_v56 = vsub.s32 32, %v1207_v59  ;;  %v4680_v2 = vshrl.u32 %v1251_v43, 5  ;;  %v4682_v4 = vmul.f32 0.31415927, %v1109_v45  ;;  %v4684_v47 = vmul.f32 0.31415927, %v1108_v46 }
  0x5e   : > { %v1427_v42 = vsel %vm1344_vm5, %v1426_v32, %v1425_v24  ;;  %6384 = vst [vmem:[#allocation4_spill] sm:$0xff] %v4676_v0  ;;  %v1209_v7 = vshll.u32 %v4582_v50, %v1207_v59  ;;  %v1212_v8 = vsub.s32 4294967266, %v1207_v59  ;;  %v4688_v10 = vadd.s32 %v4642_v38, %v4627_v37 }
  0x5f   : > { %v1430_v19 = vsel %vm4631_vm8, %v4372_v28, %v1427_v42  ;;  %6385 = vst [vmem:[#allocation5_spill] sm:$0xff] %v4682_v4  ;;  %6386 = vst [vmem:[#allocation6_spill] sm:$0xff] %v4684_v47  ;;  %vm1502_vm11 = vc.u32 %v4627_v37, %v4642_v38  ;;  %v1503_v16 = vadd.s32 1, %v4643_v39  ;;  %v4706_v21 = vsub.s32 32, %v4678_v51 }
  0x60   : > { %4001 = vcosq.f32 %v1430_v19  ;;  %v1210_v26 = vshrl.u32 %v1192_v57, %v1208_v56  ;;  %v1213_v30 = vadd.s32 127, %v1212_v8  ;;  %v4714_v31 = vshll.u32 %v6359_v1, %v4678_v51 }
  0x61   : > { %4003 = vsinq.f32 %v1430_v19  ;;  %v1504_v48 = vsel %vm1502_vm11, %v1503_v16, %v4643_v39  ;;  %v4721_v52 = vshrl.u32 %v6359_v1, %v4706_v21  ;;  %v1257_v43 = vshrl.u32 %v6357_v3, %v4706_v21 }
  0x62   : > { %v4737_v59 = vor.u32 %v1210_v26, %v1209_v7  ;;  %v1259_v19 = vshll.u32 %v6357_v3, %v4678_v51  ;;  %v1214_v8 = vshll.u32 %v1213_v30, 23  ;;  %v1260_v30 = vshrl.u32 %v6353_v9, %v4706_v21 }
  0x63   : > { %v4787_v3 = vor.u32 %v1257_v43, %v4714_v31  ;;  %vm910_vm12 = vcmask 523264   ;;  %vm1437_vm2 = vcmp.eq.s32.totalorder %v4658_v49, 0  ;;  %vm1440_vm3 = vcmp.eq.s32.totalorder %v4658_v49, 2 }
  0x64   : > { %vm1436_vm4 = vcmp.lt.s32.totalorder %v4658_v49, 2  ;;  %vm1434_vm7 = vweird.f32 %v4372_v28 }
  0x6a   : > { %v4747_v7 = vpop.eup %4001 }
  0xf6   : > { %v3702_v5 = vpop.f32.mrb[0].mxu0  ;;  %v3714_v6 = vpop.f32.mrb[0].mxu1 }
  0xf7   : > { %v4692_v11 = vadd.f32 %v3702_v5, %v4667_v63  ;;  %v4695_v13 = vadd.f32 %v3714_v6, %v4667_v63  ;;  %v560_v14 = vpop.f32.mrb[1].mxu0  ;;  %v600_v15 = vpop.f32.mrb[1].mxu1 }
  0xf8   : > { %v4699_v17 = vadd.f32 %v4667_v63, %v560_v14  ;;  %v4702_v50 = vadd.f32 %v4667_v63, %v600_v15 }
  0xf9   : > { %v656_v24 = vand.u32 2147483647, %v4692_v11  ;;  %v664_v25 = vand.u32 2147483647, %v4695_v13 }
  0xfa   : > { %v655_v27 = vand.u32 2147483647, %v4699_v17  ;;  %v663_v53 = vand.u32 2147483647, %v4702_v50  ;;  %v3705_v33 = vpop.f32.mrb[2].mxu0  ;;  %v3717_v34 = vpop.f32.mrb[2].mxu1 }
  0xfb   : > { %v672_v32 = vsub.f32 0.0, %v656_v24  ;;  %v680_v12 = vsub.f32 0.0, %v664_v25  ;;  %v4724_v40 = vadd.f32 %v3705_v33, %v4667_v63  ;;  %v4727_v55 = vadd.f32 %v3717_v34, %v4667_v63  ;;  %v570_v42 = vpop.f32.mrb[3].mxu0  ;;  %v610_v44 = vpop.f32.mrb[3].mxu1 }
  0xfc   : > { %v671_v36 = vsub.f32 0.0, %v655_v27  ;;  %v4732_v37 = vadd.f32 %v4667_v63, %v570_v42  ;;  %v4735_v38 = vadd.f32 %v4667_v63, %v610_v44  ;;  %v679_v57 = vsub.f32 0.0, %v663_v53 }
  0xfd   : > { %6387 = vst [vmem:[#allocation7_spill] sm:$0xff] %v4727_v55  ;;  %v689_v45 = vmul.f32 1.442695, %v672_v32  ;;  %v705_v46 = vmul.f32 1.442695, %v680_v12  ;;  %v4745_v24 = vadd.s32 %v1504_v48, %v1500_v54  ;;  %v1262_v54 = vshll.u32 %v6353_v9, %v4678_v51  ;;  %v4760_v48 = vpop.eup %4003 }
  0xfe   : > { %v687_v39 = vmul.f32 1.442695, %v671_v36  ;;  %v658_v56 = vand.u32 2147483647, %v4724_v40  ;;  %v666_v5 = vand.u32 2147483647, %v4727_v55 }
  0xff   : > { %4005 = vpow2.f32 %v689_v45  ;;  %v3708_v6 = vpop.f32.mrb[4].mxu0  ;;  %v657_v14 = vand.u32 2147483647, %v4732_v37  ;;  %v665_v15 = vand.u32 2147483647, %v4735_v38  ;;  %v3720_v16 = vpop.f32.mrb[4].mxu1 }
 0x100   : > { %4007 = vpow2.f32 %v705_v46  ;;  %v674_v25 = vsub.f32 0.0, %v658_v56  ;;  %v4750_v26 = vadd.f32 %v3708_v6, %v4667_v63  ;;  %v580_v27 = vpop.f32.mrb[5].mxu0  ;;  %v620_v53 = vpop.f32.mrb[5].mxu1  ;;  %v703_v32 = vmul.f32 1.442695, %v679_v57 }
 0x101   : > { %4009 = vpow2.f32 %v687_v39  ;;  %v682_v12 = vsub.f32 0.0, %v666_v5  ;;  %v673_v33 = vsub.f32 0.0, %v657_v14  ;;  %v681_v44 = vsub.f32 0.0, %v665_v15 }
 0x102   : > { %v4754_v34 = vpop.f32.mrb[6].mxu0  ;;  %v4756_v36 = vpop.f32.mrb[6].mxu1  ;;  %v693_v42 = vmul.f32 1.442695, %v674_v25  ;;  %v1215_v46 = vor.u32 4788187, %v1214_v8  ;;  %v1263_v39 = vshrl.u32 %v6355_v58, %v4706_v21  ;;  %v1265_v6 = vshll.u32 %v6355_v58, %v4678_v51 }
 0x103   : > { %v4762_v45 = vpop.f32.mrb[7].mxu0  ;;  %v691_v57 = vmul.f32 1.442695, %v673_v33  ;;  %v660_v56 = vand.u32 2147483647, %v4750_v26  ;;  %v1506_v5 = vadd.s32 536870912, %v4745_v24  ;;  %v1266_v15 = vshrl.u32 %v6361_v60, %v4706_v21 }
 0x104   : > { %4011 = vpow2.f32 %v693_v42  ;;  %v4770_v14 = vpop.f32.mrb[7].mxu1  ;;  %v4776_v8 = vshll.u32 %v6361_v60, %v4678_v51  ;;  %v4780_v25 = vshrl.u32 %v6363_v22, %v4706_v21  ;;  %v709_v33 = vmul.f32 1.442695, %v682_v12 }
 0x105   : > { %4013 = vpow2.f32 %v703_v32  ;;  %v676_v41 = vsub.f32 0.0, %v660_v56  ;;  %v4783_v9 = vadd.f32 %v3720_v16, %v4667_v63  ;;  %v707_v42 = vmul.f32 1.442695, %v681_v44 }
 0x106   : > { %6388 = vst [vmem:[#allocation8_spill] sm:$0xff] %v4776_v8  ;;  %6389 = vst [vmem:[#allocation9_spill] sm:$0xff] %v4780_v25  ;;  %4015 = vpow2.f32 %v691_v57  ;;  %v1218_v58 = vcvt.s32.f32 %v4737_v59  ;;  %v1216_v1 = vand.u32 2147483647, %v1215_v46  ;;  %v4789_v51 = vshrl.u32 %v1506_v5, 30 }
 0x107   : > { %6390 = vst [vmem:[#allocation10_spill] sm:$0xff] %v4783_v9  ;;  %v4791_v60 = vor.u32 %v1260_v30, %v1259_v19  ;;  %v4793_v21 = vor.u32 %v1263_v39, %v1262_v54  ;;  %v697_v16 = vmul.f32 1.442695, %v676_v41  ;;  %v4798_v56 = vor.u32 %v1266_v15, %v1265_v6 }
 0x108   : > { %4017 = vpow2.f32 %v709_v33  ;;  %v668_v19 = vand.u32 2147483647, %v4783_v9  ;;  %v4812_v46 = vadd.f32 %v4667_v63, %v580_v27  ;;  %v4816_v5 = vmul.f32 %v1218_v58, %v1216_v1 }
 0x109   : > { %6391 = vst [vmem:[#allocation11_spill] sm:$0xff] %v4791_v60  ;;  %v4795_v32 = vpop.eup %4005  ;;  %6392 = vst [vmem:[#allocation12_spill] sm:$0xff] %v4798_v56  ;;  %4019 = vpow2.f32 %v707_v42  ;;  %v4821_v33 = vadd.f32 %v4667_v63, %v620_v53  ;;  %v4843_v1 = vadd.f32 %v4754_v34, %v4667_v63  ;;  %v4855_v62 = vadd.f32 %v4756_v36, %v4667_v63 }
 0x10a   : > { %v4802_v44 = vpop.eup %4007  ;;  %v728_v31 = vadd.f32 1.0, %v4795_v32  ;;  %v731_v20 = vmul.f32 -0.5, %v4795_v32  ;;  %v659_v59 = vand.u32 2147483647, %v4812_v46  ;;  %v734_v57 = vand.u32 2147483647, %v4795_v32 }
 0x10b   : > { %v4807_v30 = vpop.eup %4009  ;;  %v800_v6 = vadd.f32 1.0, %v4802_v44  ;;  %6393 = vst [vmem:[#allocation13_spill] sm:$0xff] %v4821_v33  ;;  %v667_v58 = vand.u32 2147483647, %v4821_v33  ;;  %v803_v43 = vmul.f32 -0.5, %v4802_v44 }
 0x10c   : > { %4021 = vlog2.f32 %v728_v31  ;;  %v719_v39 = vadd.f32 1.0, %v4807_v30  ;;  %v684_v31 = vsub.f32 0.0, %v668_v19  ;;  %v722_v53 = vmul.f32 -0.5, %v4807_v30 }
 0x10d   : > { %4023 = vpow2.f32 %v697_v16  ;;  %v732_v42 = vadd.f32 1.0, %v731_v20  ;;  %v806_v41 = vand.u32 2147483647, %v4802_v44  ;;  %vm4863_vm13 = vcmp.lt.f32.partialorder %v734_v57, 0.0004427343 }
 0x10e   : > { %4025 = vlog2.f32 %v719_v39  ;;  %v4825_v22 = vpop.eup %4011  ;;  %v713_v27 = vmul.f32 1.442695, %v684_v31  ;;  %v723_v12 = vadd.f32 1.0, %v722_v53  ;;  %v4860_v31 = vsub.f32 0.0, %v667_v58 }
 0x10f   : > { %v4831_v16 = vpop.eup %4013  ;;  %v746_v39 = vadd.f32 1.0, %v4825_v22  ;;  %4027 = vlog2.f32 %v800_v6  ;;  %v675_v6 = vsub.f32 0.0, %v659_v59  ;;  %v749_v20 = vmul.f32 -0.5, %v4825_v22 }
 0x110   : > { %v4837_v18 = vpop.eup %4015  ;;  %v791_v19 = vadd.f32 1.0, %v4831_v16  ;;  %v794_v34 = vmul.f32 -0.5, %v4831_v16  ;;  %v804_v53 = vadd.f32 1.0, %v803_v43  ;;  %v725_v33 = vand.u32 2147483647, %v4807_v30 }
 0x111   : > { %4029 = vlog2.f32 %v746_v39  ;;  %v737_v15 = vadd.f32 1.0, %v4837_v18  ;;  %v733_v55 = vmul.f32 %v4795_v32, %v732_v42  ;;  %vm4872_vm14 = vcmp.lt.f32.partialorder %v806_v41, 0.0004427343 }
 0x112   : > { %v4849_v54 = vpop.eup %4017  ;;  %v724_v57 = vmul.f32 %v4807_v30, %v723_v12  ;;  %v795_v0 = vadd.f32 1.0, %v794_v34  ;;  %v750_v32 = vadd.f32 1.0, %v749_v20  ;;  %vm726_vm15 = vcmp.lt.f32.partialorder %v725_v33, 0.0004427343 }
 0x113   : > { %v4857_v9 = vpop.eup %4019  ;;  %4031 = vlog2.f32 %v737_v15  ;;  %v797_v15 = vand.u32 2147483647, %v4831_v16  ;;  %v818_v43 = vadd.f32 1.0, %v4849_v54  ;;  %v752_v41 = vand.u32 2147483647, %v4825_v22 }
 0x114   : > { %4033 = vpow2.f32 %v713_v27  ;;  %v740_v27 = vmul.f32 -0.5, %v4837_v18  ;;  %v809_v42 = vadd.f32 1.0, %v4857_v9  ;;  %v6398_v30 = vmax.f32 %v4692_v11, 0.0 }
 0x115   : > { %4035 = vlog2.f32 %v791_v19  ;;  %v805_v56 = vmul.f32 %v4802_v44, %v804_v53  ;;  %v4892_v33 = vmul.f32 %v4831_v16, %v795_v0  ;;  %vm4894_vm0 = vcmp.lt.f32.partialorder %v797_v15, 0.0004427343 }
 0x116   : > { %v4022_v39 = vpop.eup %4021  ;;  %4037 = vlog2.f32 %v818_v43  ;;  %vm4900_vm1 = vcmp.lt.f32.partialorder %v752_v41, 0.0004427343  ;;  %v670_v53 = vand.u32 2147483647, %v4855_v62 }
 0x117   : > { %v4868_v36 = vpop.eup %4023  ;;  %v730_v4 = vmul.f32 0.6931472, %v4022_v39  ;;  %4039 = vlog2.f32 %v809_v42 }
 0x118   : > { %v4026_v58 = vpop.eup %4025  ;;  %v764_v19 = vadd.f32 1.0, %v4868_v36  ;;  %v767_v42 = vmul.f32 -0.5, %v4868_v36 }
 0x119   : > { %v736_v39 = vsel %vm4863_vm13, %v733_v55, %v730_v4  ;;  %v721_v8 = vmul.f32 0.6931472, %v4026_v58  ;;  %v4028_v12 = vpop.eup %4027  ;;  %v821_v4 = vmul.f32 -0.5, %v4849_v54  ;;  %v6399_v55 = vmax.f32 %v4699_v17, 0.0 }
 0x11a   : > { %v864_v34 = vadd.f32 %v736_v39, %v6398_v30  ;;  %v741_v58 = vadd.f32 1.0, %v740_v27  ;;  %v751_v39 = vmul.f32 %v4825_v22, %v750_v32  ;;  %4041 = vlog2.f32 %v764_v19 }
 0x11b   : > { %v727_v60 = vsel %vm726_vm15, %v724_v57, %v721_v8  ;;  %v4030_v47 = vpop.eup %4029  ;;  %v743_v8 = vand.u32 2147483647, %v4837_v18  ;;  %v802_v16 = vmul.f32 0.6931472, %v4028_v12  ;;  %v695_v22 = vmul.f32 1.442695, %v675_v6 }
 0x11c   : > { %v863_v20 = vadd.f32 %v727_v60, %v6399_v55  ;;  %v748_v11 = vmul.f32 0.6931472, %v4030_v47  ;;  %v812_v60 = vmul.f32 -0.5, %v4857_v9  ;;  %v3487_v17 = vadd.f32 -0.6931472, %v864_v34 }
 0x11d   : > { %v4032_v0 = vpop.eup %4031  ;;  %v742_v27 = vmul.f32 %v4837_v18, %v741_v58  ;;  %v815_v32 = vand.u32 2147483647, %v4857_v9  ;;  %v822_v19 = vadd.f32 1.0, %v821_v4  ;;  %vm744_vm5 = vcmp.lt.f32.partialorder %v743_v8, 0.0004427343 }
 0x11e   : > { %v3486_v44 = vadd.f32 -0.6931472, %v863_v20  ;;  %v754_v15 = vsel %vm4900_vm1, %v751_v39, %v748_v11  ;;  %v4909_v57 = vpop.eup %4033  ;;  %v739_v43 = vmul.f32 0.6931472, %v4032_v0  ;;  %4043 = vpow2.f32 %v695_v22 }
 0x11f   : > { %v4036_v41 = vpop.eup %4035  ;;  %v711_v6 = vmul.f32 1.442695, %v4860_v31  ;;  %v6404_v12 = vmax.f32 %v4724_v40, 0.0  ;;  %v824_v18 = vand.u32 2147483647, %v4849_v54  ;;  %v813_v47 = vadd.f32 1.0, %v812_v60 }
 0x120   : > { %3740 = vmatprep.mubr.msk.f32.mxu1 %vm910_vm12, %v3486_v44  ;;  %v745_v34 = vsel %vm744_vm5, %v742_v27, %v739_v43  ;;  %v808_v55 = vsel %vm4872_vm14, %v805_v56, %v802_v16  ;;  %v6405_v4 = vmax.f32 %v4732_v37, 0.0  ;;  %v6406_v31 = vand.u32 2147483647, %v4843_v1  ;;  %v4038_v60 = vpop.eup %4037 }
 0x121   : > { %3741 = vmatmul.mubr.msk.f32.vlgmr.msra.gmra.mrb[8].mxu1 %vm910_vm12, %v3487_v17  ;;  %v866_v30 = vadd.f32 %v754_v15, %v6404_v12  ;;  %4045 = vpow2.f32 %v711_v6  ;;  %v793_v11 = vmul.f32 0.6931472, %v4036_v41  ;;  %vm4928_vm8 = vcmp.lt.f32.partialorder %v815_v32, 0.0004427343  ;;  %v4040_v22 = vpop.eup %4039 }
 0x122   : > { %v865_v20 = vadd.f32 %v745_v34, %v6405_v4  ;;  %v678_v58 = vsub.f32 0.0, %v6406_v31  ;;  %v768_v39 = vadd.f32 1.0, %v767_v42  ;;  %v770_v8 = vand.u32 2147483647, %v4868_v36 }
 0x123   : > { %v836_v44 = vadd.f32 1.0, %v4909_v57  ;;  %v4935_v59 = vmul.f32 %v4849_v54, %v822_v19  ;;  %v3489_v0 = vadd.f32 -0.6931472, %v866_v30  ;;  %v4940_v17 = vadd.f32 %v4667_v63, %v4762_v45 }
 0x124   : > { %v3488_v56 = vadd.f32 -0.6931472, %v865_v20  ;;  %v701_v37 = vmul.f32 1.442695, %v678_v58  ;;  %v4944_v16 = vadd.f32 %v4667_v63, %v4770_v14  ;;  %v1438_v15 = vxor.u32 2147483648, %v4760_v48  ;;  %v4042_v45 = vpop.eup %4041 }
 0x125   : > { %v6409_v54 = vmax.f32 %v4695_v13, 0.0  ;;  %vm4949_vm10 = vcmp.lt.f32.partialorder %v824_v18, 0.0004427343  ;;  %v814_v32 = vmul.f32 %v4857_v9, %v813_v47  ;;  %v686_v42 = vsub.f32 0.0, %v670_v53 }
 0x126   : > { %4047 = vpow2.f32 %v701_v37  ;;  %3743 = vmatprep.mubr.msk.f32.mxu1 %vm910_vm12, %v3488_v56  ;;  %v799_v63 = vsel %vm4894_vm0, %v4892_v33, %v793_v11  ;;  %vm4958_vm11 = vcmp.lt.f32.partialorder %v770_v8, 0.0004427343  ;;  %v661_v13 = vand.u32 2147483647, %v4940_v17 }
 0x127   : > { %v872_v43 = vadd.f32 %v808_v55, %v6409_v54  ;;  %v669_v41 = vand.u32 2147483647, %v4944_v16  ;;  %3744 = vmatmul.mubr.msk.f32.gmra.mrb[10].mxu1 %vm910_vm12, %v3489_v0  ;;  %v769_v9 = vmul.f32 %v4868_v36, %v768_v39  ;;  %4049 = vlog2.f32 %v836_v44 }
 0x128   : > { %v717_v19 = vmul.f32 1.442695, %v686_v42  ;;  %v1439_v6 = vsel %vm1437_vm2, %v4747_v7, %v1438_v15  ;;  %v677_v25 = vsub.f32 0.0, %v661_v13  ;;  %v6414_v12 = vxor.u32 2147483648, %v4747_v7  ;;  %v4975_v34 = vpop.eup %4043 }
 0x129   : > { %v685_v33 = vsub.f32 0.0, %v669_v41  ;;  %v1220_v18 = vxor.u32 2147483648, %v4816_v5  ;;  %v811_v47 = vmul.f32 0.6931472, %v4040_v22  ;;  %v766_v36 = vmul.f32 0.6931472, %v4042_v45 }
 0x12a   : > { %v1442_v30 = vsel %vm1440_vm3, %v6414_v12, %v4760_v48  ;;  %4051 = vpow2.f32 %v717_v19  ;;  %v6415_v4 = vmax.f32 %v4702_v50, 0.0  ;;  %v839_v31 = vmul.f32 -0.5, %v4909_v57 }
 0x12b   : > { %v1443_v55 = vsel %vm1436_vm4, %v1439_v6, %v1442_v30  ;;  %v755_v7 = vadd.f32 1.0, %v4975_v34  ;;  %v1508_v58 = vshll.u32 %v4789_v51, 30  ;;  %v4046_v48 = vpop.eup %4045  ;;  %v699_v11 = vmul.f32 1.442695, %v677_v25 }
 0x12c   : > { %v871_v20 = vadd.f32 %v799_v63, %v6415_v4  ;;  %v715_v39 = vmul.f32 1.442695, %v685_v33  ;;  %v1444_v8 = vsel %vm1434_vm7, nan, %v1443_v55  ;;  %v1221_v49 = vsel %vm1138_vm6, %v1220_v18, %v4816_v5 }
 0x12d   : > { %v4989_v44 = vadd.f32 -0.6931472, %v872_v43  ;;  %v4991_v50 = vmul.f32 0.6931472, %v4038_v60  ;;  %v842_v56 = vand.u32 2147483647, %v4909_v57  ;;  %4053 = vlog2.f32 %v755_v7 }
 0x12e   : > { %v817_v37 = vsel %vm4928_vm8, %v814_v32, %v811_v47  ;;  %v772_v53 = vsel %vm4958_vm11, %v769_v9, %v766_v36  ;;  %v827_v0 = vadd.f32 1.0, %v4046_v48  ;;  %4055 = vpow2.f32 %v699_v11 }
 0x12f   : > { %v758_v28 = vmul.f32 -0.5, %v4975_v34  ;;  %4057 = vpow2.f32 %v715_v39  ;;  %v2786_v15 = vadd.f32 1.0, %v1444_v8  ;;  %v1224_v5 = vsel %vm4637_vm9, %v4374_v29, %v1221_v49 }
 0x130   : > { %v4048_v60 = vpop.eup %4047  ;;  %v5002_v22 = vadd.f32 -0.6931472, %v871_v20  ;;  %v840_v54 = vadd.f32 1.0, %v839_v31  ;;  %v830_v43 = vmul.f32 -0.5, %v4046_v48  ;;  %vm1447_vm6 = vcmp.lt.s32.totalorder %v4379_v35, 0 }
 0x131   : > { %v5006_v40 = vsub.s32 %v4745_v24, %v1508_v58  ;;  %v826_v32 = vsel %vm4949_vm10, %v4935_v59, %v4991_v50  ;;  %4059 = vlog2.f32 %v827_v0  ;;  %v782_v42 = vadd.f32 1.0, %v4048_v60  ;;  %v4050_v23 = vpop.eup %4049  ;;  %v6447_v59 = vld [vmem:[#allocation13_spill] sm:$0xff] }
 0x132   : > { %v2802_v45 = vmul.f32 0.5, %v2786_v15  ;;  %v6416_v63 = vmax.f32 %v4735_v38, 0.0  ;;  %v6417_v13 = vmax.f32 %v4750_v26, 0.0  ;;  %4061 = vcosq.f32 %v1224_v5 }
 0x133   : > { %v1511_v9 = vsub.s32 0, %v5006_v40  ;;  %v759_v24 = vadd.f32 1.0, %v758_v28  ;;  %v761_v19 = vand.u32 2147483647, %v4975_v34  ;;  %4063 = vlog2.f32 %v782_v42 }
 0x134   : > { %v873_v14 = vadd.f32 %v817_v37, %v6416_v63  ;;  %v868_v41 = vadd.f32 %v772_v53, %v6417_v13  ;;  %v785_v6 = vmul.f32 -0.5, %v4048_v60  ;;  %2828 = vperm.xlu1 %4000, %v2802_v45   ;;  %v5018_v25 = vpop.eup %4051  ;;  %v831_v33 = vadd.f32 1.0, %v830_v43 }
 0x135   : > { %v833_v12 = vand.u32 2147483647, %v4046_v48  ;;  %4065 = vsinq.f32 %v1224_v5  ;;  %vm1234_vm9 = vcmp.eq.s32.totalorder %v4662_v61, 2  ;;  %v3532_v38 = vmin.u32 %v1511_v9, %v5006_v40 }
 0x136   : > { %v5023_v26 = vmul.f32 %v4909_v57, %v840_v54  ;;  %v788_v30 = vand.u32 2147483647, %v4048_v60  ;;  %v654_v18 = vmax.f32 %v4855_v62, 0.0  ;;  %v1531_v47 = vsub.s32 4, %v4789_v51 }
 0x137   : > { %v5027_v36 = vadd.f32 -0.6931472, %v873_v14  ;;  %v3491_v55 = vadd.f32 -0.6931472, %v868_v41  ;;  %v854_v4 = vadd.f32 1.0, %v5018_v25  ;;  %vm1231_vm13 = vcmp.eq.s32.totalorder %v4662_v61, 0  ;;  %v4054_v31 = vpop.eup %4053 }
 0x138   : > { %v1513_v20 = vclz %v3532_v38  ;;  %v5031_v7 = vmul.f32 0.6931472, %v4050_v23  ;;  %vm5033_vm14 = vcmp.lt.f32.partialorder %v761_v19, 0.0004427343  ;;  %v786_v11 = vadd.f32 1.0, %v785_v6  ;;  %v4056_v8 = vpop.eup %4055 }
 0x139   : > { %v645_v39 = vmax.f32 %v4940_v17, 0.0  ;;  %vm1230_vm15 = vcmp.lt.s32.totalorder %v4662_v61, 2  ;;  %v757_v49 = vmul.f32 0.6931472, %v4054_v31  ;;  %v760_v37 = vmul.f32 %v4975_v34, %v759_v24  ;;  %v5047_v28 = vpop.eup %4057 }
 0x13a   : > { %v5040_v53 = vmul.f32 %v4046_v48, %v831_v33  ;;  %vm5042_vm0 = vcmp.lt.f32.partialorder %v833_v12, 0.0004427343  ;;  %vm1228_vm1 = vweird.f32 %v4374_v29  ;;  %vm5049_vm2 = vcmp.lt.f32.partialorder %v788_v30, 0.0004427343 }
 0x13b   : > { %v857_v5 = vmul.f32 -0.5, %v5018_v25  ;;  %v773_v54 = vadd.f32 1.0, %v4056_v8  ;;  %v5057_v34 = vsel %vm1447_vm6, %v1531_v47, %v4789_v51  ;;  %vm1271_vm3 = vcmp.lt.s32.totalorder %v4680_v2, 1  ;;  %v4060_v45 = vpop.eup %4059 }
 0x13c   : > { %v763_v48 = vsel %vm5033_vm14, %v760_v37, %v757_v49  ;;  %4067 = vlog2.f32 %v854_v4  ;;  %v845_v43 = vadd.f32 1.0, %v5047_v28  ;;  %v3533_v42 = vadd.s32 4294967294, %v1513_v20  ;;  %v4062_v41 = vpop.eup %4061 }
 0x13d   : > { %v6424_v23 = vmax.f32 %v4812_v46, 0.0  ;;  %v787_v14 = vmul.f32 %v4048_v60, %v786_v11  ;;  %v860_v13 = vand.u32 2147483647, %v5018_v25  ;;  %4069 = vlog2.f32 %v773_v54  ;;  %v4064_v24 = vpop.eup %4063 }
 0x13e   : > { %v776_v51 = vmul.f32 -0.5, %v4056_v8  ;;  %v848_v9 = vmul.f32 -0.5, %v5047_v28  ;;  %vm1272_vm4 = vcmp.lt.s32.totalorder %v4680_v2, 2  ;;  %vm1273_vm5 = vcmp.lt.s32.totalorder %v4680_v2, 3 }
 0x13f   : > { %v867_v63 = vadd.f32 %v763_v48, %v6424_v23  ;;  %vm1274_vm7 = vcmp.lt.s32.totalorder %v4680_v2, 4  ;;  %v858_v6 = vadd.f32 1.0, %v857_v5  ;;  %4071 = vlog2.f32 %v845_v43  ;;  %v4066_v33 = vpop.eup %4065 }
 0x140   : > { %v1235_v46 = vxor.u32 2147483648, %v4062_v41  ;;  %v784_v60 = vmul.f32 0.6931472, %v4064_v24  ;;  %v779_v12 = vand.u32 2147483647, %v4056_v8  ;;  %vm3534_vm8 = vcmp.lt.s32.totalorder %v3533_v42, 0 }
 0x141   : > { %v3490_v19 = vadd.f32 -0.6931472, %v867_v63  ;;  %v1275_v38 = vsel %vm1271_vm3, %v4721_v52, %v4787_v3  ;;  %v5074_v30 = vmul.f32 0.6931472, %v4060_v45  ;;  %v1232_v47 = vxor.u32 2147483648, %v4066_v33 }
 0x142   : > { %v1236_v4 = vsel %vm1234_vm9, %v1235_v46, %v4066_v33  ;;  %v1516_v20 = vsel %vm3534_vm8, 0, %v3533_v42  ;;  %v777_v31 = vadd.f32 1.0, %v776_v51  ;;  %v849_v58 = vadd.f32 1.0, %v848_v9  ;;  %v6435_v9 = vld [vmem:[#allocation11_spill] sm:$0xff] }
 0x143   : > { %3746 = vmatprep.mubr.msk.f32.mxu1 %vm910_vm12, %v3490_v19  ;;  %v1517_v11 = vsub.s32 32, %v1516_v20  ;;  %v1518_v49 = vshll.u32 %v5006_v40, %v1516_v20  ;;  %v5082_v37 = vmul.f32 %v5018_v25, %v858_v6  ;;  %v1233_v52 = vsel %vm1231_vm13, %v4062_v41, %v1232_v47 }
 0x144   : > { %3747 = vmatmul.mubr.msk.f32.gmra.mrb[12].mxu1 %vm910_vm12, %v3491_v55  ;;  %v1521_v5 = vsub.s32 4294967266, %v1516_v20  ;;  %v1276_v54 = vsel %vm1274_vm7, %v4793_v21, 2102212464  ;;  %vm5091_vm11 = vcmp.lt.f32.partialorder %v842_v56, 0.0004427343  ;;  %v790_v40 = vsel %vm5049_vm2, %v787_v14, %v784_v60  ;;  %v6437_v20 = vld [vmem:[#allocation9_spill] sm:$0xff] }
 0x145   : > { %v851_v25 = vand.u32 2147483647, %v5047_v28  ;;  %v1237_v55 = vsel %vm1230_vm15, %v1233_v52, %v1236_v4  ;;  %v1519_v43 = vshrl.u32 %v4688_v10, %v1517_v11  ;;  %v835_v42 = vsel %vm5042_vm0, %v5040_v53, %v5074_v30 }
 0x146   : > { %vm5105_vm9 = vcmp.lt.f32.partialorder %v860_v13, 0.0004427343  ;;  %vm5109_vm13 = vcmp.lt.f32.partialorder %v779_v12, 0.0004427343  ;;  %v1238_v15 = vsel %vm1228_vm1, nan, %v1237_v55  ;;  %v1522_v61 = vadd.s32 127, %v1521_v5  ;;  %v4068_v45 = vpop.eup %4067 }
 0x147   : > { %v778_v23 = vmul.f32 %v4056_v8, %v777_v31  ;;  %v5116_v10 = vmul.f32 %v5047_v28, %v849_v58  ;;  %v2784_v63 = vadd.f32 1.0, %v1238_v15  ;;  %v1520_v0 = vor.u32 %v1519_v43, %v1518_v49  ;;  %v4070_v53 = vpop.eup %4069  ;;  %v6436_v28 = vld [vmem:[#allocation12_spill] sm:$0xff] }
 0x148   : > { %v6431_v14 = vmax.f32 %v4843_v1, 0.0  ;;  %v6432_v41 = vand.u32 2147483647, %v4379_v35  ;;  %v1523_v29 = vshll.u32 %v1522_v61, 23  ;;  %v1279_v8 = vsel %vm1271_vm3, %v4787_v3, %v6435_v9  ;;  %v6438_v31 = vld [vmem:[#allocation8_spill] sm:$0xff] }
 0x149   : > { %v1280_v24 = vsel %vm1274_vm7, %v6436_v28, 920167782  ;;  %v775_v19 = vmul.f32 0.6931472, %v4070_v53  ;;  %v2800_v6 = vmul.f32 0.5, %v2784_v63  ;;  %v1277_v1 = vsel %vm1273_vm5, %v6435_v9, %v1276_v54  ;;  %v4072_v33 = vpop.eup %4071  ;;  %v6440_v49 = vld [vmem:[#allocation4_spill] sm:$0xff] }
 0x14a   : > { %v870_v13 = vadd.f32 %v790_v40, %v6431_v14  ;;  %vm5122_vm14 = vcmp.le.f32.partialorder %v6432_v41, 0.7853982  ;;  %v1281_v46 = vsel %vm1273_vm5, %v4793_v21, %v1280_v24  ;;  %v856_v60 = vmul.f32 0.6931472, %v4068_v45  ;;  %v6442_v63 = vld [vmem:[#allocation7_spill] sm:$0xff]  ;;  %v6446_v14 = vld [vmem:[#allocation5_spill] sm:$0xff] }
 0x14b   : > { %v1524_v12 = vor.u32 4788187, %v1523_v29  ;;  %v1527_v30 = vcvt.s32.f32 %v1520_v0  ;;  %v1282_v3 = vsel %vm1272_vm4, %v1279_v8, %v1281_v46  ;;  %v781_v47 = vsel %vm5109_vm13, %v778_v23, %v775_v19  ;;  %2818 = vperm.xlu0 %3999, %v2800_v6   ;;  %v6450_v6 = vld [vmem:[#allocation10_spill] sm:$0xff] }
 0x14c   : > { %v1283_v4 = vsel %vm1271_vm3, %v6435_v9, %v4793_v21  ;;  %v6439_v58 = vor.u32 %v6437_v20, %v6438_v31  ;;  %v6441_v52 = vor.u32 8388608, %v6440_v49  ;;  %v869_v54 = vadd.f32 %v781_v47, %v645_v39 }
 0x14d   : > { %v1525_v40 = vand.u32 2147483647, %v1524_v12  ;;  %v1278_v55 = vsel %vm1272_vm4, %v1275_v38, %v1277_v1  ;;  %v847_v43 = vmul.f32 0.6931472, %v4072_v33  ;;  %v6443_v0 = vmax.f32 %v6442_v63, 0.0 }
 0x14e   : > { %v1284_v11 = vsel %vm1274_vm7, %v6439_v58, 1326507024  ;;  %v1287_v5 = vshll.u32 %v6441_v52, 8  ;;  %v3492_v45 = vadd.f32 -0.6931472, %v869_v54  ;;  %v844_v29 = vsel %vm5091_vm11, %v5023_v26, %v5031_v7 }
 0x14f   : > { %v1285_v21 = vsel %vm1273_vm5, %v6436_v28, %v1284_v11  ;;  %v1528_v23 = vmul.f32 %v1527_v30, %v1525_v40  ;;  %v874_v38 = vadd.f32 %v826_v32, %v6443_v0  ;;  %v3493_v53 = vadd.f32 -0.6931472, %v870_v13  ;;  %v1111_v11 = vld [vmem:[%s4368_s21 + $0x38] sm:$0xff] }
 0x150   : > { %v1286_v56 = vsel %vm1272_vm4, %v1283_v4, %v1285_v21  ;;  %v5163_v15 = vmul.u32.u64.low %v1287_v5, %v1282_v3  ;;  %v5164_v61 = vmul.u32.u64.high %v1287_v5, %v1282_v3, %v5163_v15  ;;  %vm5177_vm15 = vcmp.lt.f32.partialorder %v851_v25, 0.0004427343  ;;  %3749 = vmatprep.mubr.msk.f32.mxu1 %vm910_vm12, %v3492_v45 }
 0x151   : > { %v5167_v17 = vmul.u32.u64.low %v1287_v5, %v1286_v56  ;;  %v5168_v39 = vmul.u32.u64.high %v1287_v5, %v1286_v56, %v5167_v17  ;;  %v1651_v41 = vand.u32 2147483647, %v6446_v14  ;;  %v1529_v9 = vxor.u32 2147483648, %v1528_v23  ;;  %3750 = vmatmul.mubr.msk.f32.gmra.mrb[14].mxu1 %vm910_vm12, %v3493_v53 }
 0x152   : > { %v1294_v27 = vmul.u32 %v1287_v5, %v1278_v55  ;;  %v1654_v8 = vand.u32 2139095040, %v6446_v14  ;;  %v6448_v50 = vmax.f32 %v6447_v59, 0.0  ;;  %v862_v25 = vsel %vm5105_vm9, %v5082_v37, %v856_v60  ;;  %3752 = vmatprep.mubr.msk.f32.mxu1 %vm910_vm12, %v5002_v22 }
 0x153   : > { %v1534_v48 = vsel %vm5122_vm14, 0, %v5057_v34  ;;  %v1297_v26 = vadd.s32 1, %v5164_v61  ;;  %v853_v7 = vsel %vm5177_vm15, %v5116_v10, %v847_v43  ;;  %vm1296_vm10 = vc.u32 %v5168_v39, %v5163_v15  ;;  %v6449_v10 = vld [vmem:[#allocation6_spill] sm:$0xff] }
 0x154   : > { %v875_v32 = vadd.f32 %v835_v42, %v6448_v50  ;;  %v1530_v42 = vsel %vm1447_vm6, %v1529_v9, %v1528_v23  ;;  %v1655_v37 = vshrl.u32 %v1654_v8, 23  ;;  %v1658_v13 = vand.u32 8388607, %v1651_v41  ;;  %v6456_v8 = vld [vmem:[#allocation3_spill] sm:$0xff] }
 0x155   : > { %v1533_v34 = vsel %vm5122_vm14, %v4379_v35, %v1530_v42  ;;  %v1298_v57 = vsel %vm1296_vm10, %v1297_v26, %v5164_v61  ;;  %v1548_v28 = vand.u32 2147483647, %v6449_v10  ;;  %v1551_v19 = vand.u32 2139095040, %v6449_v10  ;;  %3753 = vmatmul.mubr.msk.f32.gmra.mrb[16].mxu1 %vm910_vm12, %v4989_v44 }
 0x156   : > { %4073 = vcosq.f32 %v1533_v34  ;;  %v1299_v22 = vadd.s32 %v1298_v57, %v1294_v27  ;;  %v3539_v24 = vadd.s32 4294967169, %v1655_v37  ;;  %v6451_v1 = vmax.f32 %v6450_v6, 0.0  ;;  %3755 = vmatprep.mubr.msk.f32.mxu1 %vm910_vm12, %v5027_v36 }
 0x157   : > { %v653_v33 = vmax.f32 %v4944_v16, 0.0  ;;  %4075 = vsinq.f32 %v1533_v34  ;;  %v5220_v51 = vand.u32 3, %v1534_v48  ;;  %v3497_v60 = vadd.f32 -0.6931472, %v874_v38 }
 0x158   : > { %v876_v46 = vadd.f32 %v844_v29, %v6451_v1  ;;  %v1300_v12 = vadd.s32 536870912, %v1299_v22  ;;  %v1661_v30 = vadd.s32 1, %v3539_v24  ;;  %v3498_v3 = vadd.f32 -0.6931472, %v875_v32 }
 0x159   : > { %v878_v47 = vadd.f32 %v862_v25, %v654_v18  ;;  %v877_v4 = vadd.f32 %v853_v7, %v653_v33  ;;  %v1659_v20 = vor.u32 8388608, %v1658_v13  ;;  %v1552_v44 = vshrl.u32 %v1551_v19, 23  ;;  %3756 = vmatmul.mubr.msk.f32.gmra.mrb[18].mxu1 %vm910_vm12, %v3497_v60 }
 0x15a   : > { %v5226_v16 = vshrl.u32 %v1300_v12, 30  ;;  %vm1662_vm6 = vcmp.gt.s32.totalorder %v1661_v30, 0  ;;  %v5230_v31 = vand.u32 8388607, %v1548_v28  ;;  %v3499_v58 = vadd.f32 -0.6931472, %v876_v46  ;;  %3758 = vmatprep.mubr.msk.f32.mxu1 %vm910_vm12, %v3498_v3 }
 0x15b   : > { %vm1537_vm0 = vweird.f32 %v4379_v35  ;;  %vm1539_vm1 = vcmp.lt.s32.totalorder %v5220_v51, 2  ;;  %v1663_v62 = vsel %vm1662_vm6, %v1661_v30, 0  ;;  %vm1540_vm2 = vcmp.eq.s32.totalorder %v5220_v51, 0 }
 0x15c   : > { %vm1543_vm3 = vcmp.eq.s32.totalorder %v5220_v51, 2  ;;  %v1302_v18 = vshll.u32 %v5226_v16, 30  ;;  %v1665_v36 = vand.u32 31, %v1663_v62  ;;  %v3501_v49 = vadd.f32 -0.6931472, %v878_v47 }
 0x15d   : > { %v3500_v52 = vadd.f32 -0.6931472, %v877_v4  ;;  %v5242_v5 = vadd.s32 %v5163_v15, %v5168_v39  ;;  %v5244_v54 = vshll.u32 %v1659_v20, 8  ;;  %v3535_v21 = vadd.s32 4294967169, %v1552_v44  ;;  %3759 = vmatmul.mubr.msk.f32.gmra.mrb[20].mxu1 %vm910_vm12, %v3499_v58 }
 0x15e   : > { %v5246_v40 = vsub.s32 %v1299_v22, %v1302_v18  ;;  %v1666_v55 = vsub.s32 32, %v1665_v36  ;;  %v1556_v43 = vor.u32 8388608, %v5230_v31  ;;  %v5250_v56 = vshrl.u32 %v1663_v62, 5 }
 0x15f   : > { %v6452_v61 = vmov 683565275   ;;  %v6453_v23 = vmov 2475754826   ;;  %v5254_v63 = vmul.f32 0.31415927, %v1111_v11  ;;  %3761 = vmatprep.mubr.msk.f32.mxu1 %vm910_vm12, %v3500_v52 }
 0x160   : > { %v1668_v45 = vshll.u32 %v6452_v61, %v1665_v36  ;;  %v1671_v17 = vshll.u32 %v6453_v23, %v1665_v36  ;;  %v4074_v15 = vpop.eup %4073  ;;  %v1305_v39 = vsub.s32 0, %v5246_v40  ;;  %v1669_v0 = vshrl.u32 %v6453_v23, %v1666_v55 }
 0x161   : > { %v6454_v38 = vmov 2131351028   ;;  %v6455_v2 = vmov 2102212464   ;;  %v4076_v9 = vpop.eup %4075  ;;  %v1544_v27 = vxor.u32 2147483648, %v4074_v15  ;;  %vm1241_vm4 = vcmp.lt.s32.totalorder %v6456_v8, 0  ;;  %3762 = vmatmul.mubr.msk.f32.gmra.mrb[22].mxu1 %vm910_vm12, %v3501_v49 }
 0x162   : > { %v1674_v53 = vshll.u32 %v6454_v38, %v1665_v36  ;;  %v1677_v29 = vshll.u32 %v6455_v2, %v1665_v36  ;;  %v1672_v59 = vshrl.u32 %v6454_v38, %v1666_v55  ;;  %v1675_v50 = vshrl.u32 %v6455_v2, %v1666_v55 }
 0x163   : > { %v6457_v32 = vmov 920167782   ;;  %v1541_v48 = vxor.u32 2147483648, %v4076_v9  ;;  %v3524_v26 = vmin.u32 %v1305_v39, %v5246_v40  ;;  %v1325_v7 = vsub.s32 4, %v5226_v16 }
 0x164   : > { %v1678_v25 = vshrl.u32 %v6457_v32, %v1666_v55  ;;  %v1558_v42 = vadd.s32 1, %v3535_v21  ;;  %v1545_v37 = vsel %vm1543_vm3, %v1544_v27, %v4076_v9  ;;  %v1667_v34 = vshrl.u32 %v6452_v61, %v1666_v55 }
 0x165   : > { %v1670_v57 = vor.u32 %v1669_v0, %v1668_v45  ;;  %v1673_v13 = vor.u32 %v1672_v59, %v1671_v17  ;;  %v1542_v22 = vsel %vm1540_vm2, %v4074_v15, %v1541_v48  ;;  %v1307_v24 = vclz %v3524_v26 }
 0x166   : > { %v1676_v19 = vor.u32 %v1675_v50, %v1674_v53  ;;  %v1679_v6 = vor.u32 %v1678_v25, %v1677_v29  ;;  %v1546_v1 = vsel %vm1539_vm1, %v1542_v22, %v1545_v37  ;;  %v1680_v46 = vshll.u32 %v6457_v32, %v1665_v36 }
 0x167   : > { %v6458_v33 = vmov 1326507024   ;;  %vm1683_vm5 = vcmp.lt.s32.totalorder %v5250_v56, 1  ;;  %v1547_v12 = vsel %vm1537_vm0, nan, %v1546_v1  ;;  %v3525_v30 = vadd.s32 4294967294, %v1307_v24 }
 0x168   : > { %v1681_v60 = vshrl.u32 %v6458_v33, %v1666_v55  ;;  %vm1684_vm7 = vcmp.lt.s32.totalorder %v5250_v56, 2  ;;  %vm1685_vm8 = vcmp.lt.s32.totalorder %v5250_v56, 3  ;;  %v2787_v3 = vadd.f32 1.0, %v1547_v12 }
 0x169   : > { %vm1686_vm11 = vcmp.lt.s32.totalorder %v5250_v56, 4  ;;  %v1687_v51 = vsel %vm1683_vm5, %v1667_v34, %v1670_v57  ;;  %vm3526_vm9 = vcmp.lt.s32.totalorder %v3525_v30, 0  ;;  %v1691_v35 = vsel %vm1683_vm5, %v1670_v57, %v1673_v13 }
 0x16a   : > { %v1682_v47 = vor.u32 %v1681_v60, %v1680_v46  ;;  %v1688_v4 = vsel %vm1686_vm11, %v1676_v19, 2102212464  ;;  %v1692_v20 = vsel %vm1686_vm11, %v1679_v6, 920167782  ;;  %v2803_v44 = vmul.f32 0.5, %v2787_v3 }
 0x16b   : > { %v1310_v58 = vsel %vm3526_vm9, 0, %v3525_v30  ;;  %v1689_v62 = vsel %vm1685_vm8, %v1673_v13, %v1688_v4  ;;  %v1693_v18 = vsel %vm1685_vm8, %v1676_v19, %v1692_v20  ;;  %v5299_v52 = vsel %vm1241_vm4, %v1325_v7, %v5226_v16 }
 0x16c   : > { %v1311_v36 = vsub.s32 32, %v1310_v58  ;;  %v1312_v11 = vshll.u32 %v5246_v40, %v1310_v58  ;;  %v1315_v49 = vsub.s32 4294967266, %v1310_v58  ;;  %2833 = vperm.xlu1 %4000, %v2803_v44   ;;  %v1690_v55 = vsel %vm1684_vm7, %v1687_v51, %v1689_v62 }
 0x16d   : > { %v1694_v21 = vsel %vm1684_vm7, %v1691_v35, %v1693_v18  ;;  %v1695_v45 = vsel %vm1683_vm5, %v1673_v13, %v1676_v19  ;;  %v1696_v17 = vsel %vm1686_vm11, %v1682_v47, 1326507024  ;;  %vm1559_vm13 = vcmp.gt.s32.totalorder %v1558_v42, 0 }
 0x16e   : > { %v1313_v40 = vshrl.u32 %v5242_v5, %v1311_v36  ;;  %v1316_v15 = vadd.s32 127, %v1315_v49  ;;  %v1697_v16 = vsel %vm1685_vm8, %v1679_v6, %v1696_v17  ;;  %v1560_v29 = vsel %vm1559_vm13, %v1558_v42, 0 }
 0x16f   : > { %v1698_v39 = vsel %vm1684_vm7, %v1695_v45, %v1697_v16  ;;  %v5315_v0 = vmul.u32.u64.low %v5244_v54, %v1694_v21  ;;  %v5316_v53 = vmul.u32.u64.high %v5244_v54, %v1694_v21, %v5315_v0  ;;  %v6459_v5 = vand.u32 2147483647, %v6456_v8 }
 0x170   : > { %v1314_v9 = vor.u32 %v1313_v40, %v1312_v11  ;;  %v1317_v27 = vshll.u32 %v1316_v15, 23  ;;  %v5320_v59 = vmul.u32.u64.low %v5244_v54, %v1698_v39  ;;  %v5321_v50 = vmul.u32.u64.high %v5244_v54, %v1698_v39, %v5320_v59 }
 0x171   : > { %vm5325_vm14 = vcmp.le.f32.partialorder %v6459_v5, 0.7853982  ;;  %v1562_v56 = vand.u32 31, %v1560_v29  ;;  %v5331_v48 = vshll.u32 %v1556_v43, 8  ;;  %v1857_v26 = vand.u32 2147483647, %v5254_v63 }
 0x172   : > { %v1318_v7 = vor.u32 4788187, %v1317_v27  ;;  %v1321_v42 = vcvt.s32.f32 %v1314_v9  ;;  %v1706_v37 = vmul.u32 %v5244_v54, %v1690_v55  ;;  %v1860_v34 = vand.u32 2139095040, %v5254_v63 }
 0x173   : > { %v1328_v57 = vsel %vm5325_vm14, 0, %v5299_v52  ;;  %v1709_v13 = vadd.s32 1, %v5316_v53  ;;  %v1563_v22 = vsub.s32 32, %v1562_v56  ;;  %v1565_v24 = vshll.u32 %v6452_v61, %v1562_v56 }
 0x174   : > { %v1319_v31 = vand.u32 2147483647, %v1318_v7  ;;  %vm1708_vm15 = vc.u32 %v5321_v50, %v5315_v0  ;;  %v1561_v43 = vshrl.u32 %v1560_v29, 5  ;;  %v1568_v19 = vshll.u32 %v6453_v23, %v1562_v56 }
 0x175   : > { %v1710_v54 = vsel %vm1708_vm15, %v1709_v13, %v5316_v53  ;;  %v1566_v6 = vshrl.u32 %v6453_v23, %v1563_v22  ;;  %v1569_v1 = vshrl.u32 %v6454_v38, %v1563_v22  ;;  %v1571_v46 = vshll.u32 %v6454_v38, %v1562_v56 }
 0x176   : > { %v1322_v60 = vmul.f32 %v1321_v42, %v1319_v31  ;;  %v1711_v12 = vadd.s32 %v1710_v54, %v1706_v37  ;;  %v1572_v30 = vshrl.u32 %v6455_v2, %v1563_v22  ;;  %v1574_v3 = vshll.u32 %v6455_v2, %v1562_v56 }
 0x177   : > { %v1564_v47 = vshrl.u32 %v6452_v61, %v1563_v22  ;;  %v1567_v51 = vor.u32 %v1566_v6, %v1565_v24  ;;  %v1575_v4 = vshrl.u32 %v6457_v32, %v1563_v22  ;;  %v1577_v35 = vshll.u32 %v6457_v32, %v1562_v56 }
 0x178   : > { %v1323_v20 = vxor.u32 2147483648, %v1322_v60  ;;  %v1712_v44 = vadd.s32 536870912, %v1711_v12  ;;  %v1570_v58 = vor.u32 %v1569_v1, %v1568_v19  ;;  %v1578_v62 = vshrl.u32 %v6458_v33, %v1563_v22  ;;  %v1110_v22 = vld [vmem:[%s4368_s21 + $0x30] sm:$0xff] }
 0x179   : > { %v1573_v18 = vor.u32 %v1572_v30, %v1571_v46  ;;  %v1576_v36 = vor.u32 %v1575_v4, %v1574_v3  ;;  %vm1580_vm10 = vcmp.lt.s32.totalorder %v1561_v43, 1  ;;  %v1861_v11 = vshrl.u32 %v1860_v34, 23 }
 0x17a   : > { %v1324_v49 = vsel %vm1241_vm4, %v1323_v20, %v1322_v60  ;;  %v1713_v52 = vshrl.u32 %v1712_v44, 30  ;;  %v1579_v55 = vor.u32 %v1578_v62, %v1577_v35  ;;  %vm1583_vm6 = vcmp.lt.s32.totalorder %v1561_v43, 4 }
 0x17b   : > { %v1327_v21 = vsel %vm5325_vm14, %v6456_v8, %v1324_v49  ;;  %vm1581_vm0 = vcmp.lt.s32.totalorder %v1561_v43, 2  ;;  %vm1582_vm1 = vcmp.lt.s32.totalorder %v1561_v43, 3  ;;  %v1585_v45 = vsel %vm1583_vm6, %v1573_v18, 2102212464 }
 0x17c   : > { %4077 = vcosq.f32 %v1327_v21  ;;  %v1714_v17 = vshll.u32 %v1713_v52, 30  ;;  %v1584_v40 = vsel %vm1580_vm10, %v1564_v47, %v1567_v51  ;;  %v1588_v15 = vsel %vm1580_vm10, %v1567_v51, %v1570_v58 }
 0x17d   : > { %4079 = vsinq.f32 %v1327_v21  ;;  %v1586_v16 = vsel %vm1582_vm1, %v1570_v58, %v1585_v45  ;;  %v1589_v39 = vsel %vm1583_vm6, %v1576_v36, 920167782  ;;  %v1592_v53 = vsel %vm1580_vm10, %v1570_v58, %v1573_v18 }
 0x17e   : > { %v5363_v29 = vsub.s32 %v1711_v12, %v1714_v17  ;;  %v1590_v9 = vsel %vm1582_vm1, %v1573_v18, %v1589_v39  ;;  %v1593_v27 = vsel %vm1583_vm6, %v1579_v55, 1326507024  ;;  %v1864_v59 = vand.u32 8388607, %v1857_v26 }
 0x17f   : > { %v1332_v5 = vand.u32 3, %v1328_v57  ;;  %v1737_v25 = vsub.s32 4, %v1713_v52  ;;  %v1591_v56 = vsel %vm1581_vm0, %v1588_v15, %v1590_v9  ;;  %v1594_v7 = vsel %vm1582_vm1, %v1576_v36, %v1593_v27 }
 0x180   : > { %v1717_v42 = vsub.s32 0, %v5363_v29  ;;  %v1587_v37 = vsel %vm1581_vm0, %v1584_v40, %v1586_v16  ;;  %v1595_v34 = vsel %vm1581_vm0, %v1592_v53, %v1594_v7  ;;  %v3547_v13 = vadd.s32 4294967169, %v1861_v11 }
 0x181   : > { %v5375_v24 = vmul.u32.u64.low %v5331_v48, %v1595_v34  ;;  %v5376_v31 = vmul.u32.u64.high %v5331_v48, %v1595_v34, %v5375_v24  ;;  %v5379_v19 = vmul.u32.u64.low %v5331_v48, %v1591_v56  ;;  %v5380_v57 = vmul.u32.u64.high %v5331_v48, %v1591_v56, %v5379_v19 }
 0x182   : > { %vm1331_vm2 = vweird.f32 %v6456_v8  ;;  %v3540_v54 = vmin.u32 %v1717_v42, %v5363_v29  ;;  %vm5386_vm3 = vcmp.le.f32.partialorder %v1651_v41, 0.7853982  ;;  %vm1653_vm4 = vcmp.lt.s32.totalorder %v6446_v14, 0 }
 0x183   : > { %v1867_v43 = vadd.s32 1, %v3547_v13  ;;  %v5391_v1 = vmul.f32 0.31415927, %v1110_v22  ;;  %vm1333_vm5 = vcmp.lt.s32.totalorder %v1332_v5, 2  ;;  %v1603_v60 = vmul.u32 %v5331_v48, %v1587_v37 }
 0x184   : > { %v1719_v46 = vclz %v3540_v54  ;;  %v1865_v12 = vor.u32 8388608, %v1864_v59  ;;  %v5396_v30 = vsel %vm1653_vm4, %v1737_v25, %v1713_v52  ;;  %vm1605_vm7 = vc.u32 %v5376_v31, %v5379_v19 }
 0x185   : > { %v1606_v41 = vadd.s32 1, %v5380_v57  ;;  %vm1868_vm8 = vcmp.gt.s32.totalorder %v1867_v43, 0  ;;  %vm1334_vm11 = vcmp.eq.s32.totalorder %v1332_v5, 0  ;;  %vm1337_vm9 = vcmp.eq.s32.totalorder %v1332_v5, 2 }
 0x186   : > { %v4078_v3 = vpop.eup %4077  ;;  %v3541_v47 = vadd.s32 4294967294, %v1719_v46  ;;  %v1869_v51 = vsel %vm1868_vm8, %v1867_v43, 0  ;;  %v1707_v48 = vadd.s32 %v5315_v0, %v5321_v50  ;;  %v1740_v62 = vsel %vm5386_vm3, 0, %v5396_v30 }
 0x187   : > { %v4080_v4 = vpop.eup %4079  ;;  %v1338_v35 = vxor.u32 2147483648, %v4078_v3  ;;  %v1607_v20 = vsel %vm1605_vm7, %v1606_v41, %v5380_v57  ;;  %v1871_v44 = vand.u32 31, %v1869_v51  ;;  %v5406_v52 = vshll.u32 %v1865_v12, 8 }
 0x188   : > { %v1335_v58 = vxor.u32 2147483648, %v4080_v4  ;;  %vm3542_vm13 = vcmp.lt.s32.totalorder %v3541_v47, 0  ;;  %v1608_v18 = vadd.s32 %v1607_v20, %v1603_v60  ;;  %v5412_v17 = vadd.s32 %v5379_v19, %v5376_v31 }
 0x189   : > { %v1339_v36 = vsel %vm1337_vm9, %v1338_v35, %v4080_v4  ;;  %v1722_v11 = vsel %vm3542_vm13, 0, %v3541_v47  ;;  %v1872_v49 = vsub.s32 32, %v1871_v44  ;;  %v1757_v15 = vand.u32 2139095040, %v5391_v1 }
 0x18a   : > { %v1336_v55 = vsel %vm1334_vm11, %v4078_v3, %v1335_v58  ;;  %v1723_v21 = vsub.s32 32, %v1722_v11  ;;  %v1724_v0 = vshll.u32 %v5363_v29, %v1722_v11  ;;  %v1727_v50 = vsub.s32 4294967266, %v1722_v11 }
 0x18b   : > { %v1340_v45 = vsel %vm1333_vm5, %v1336_v55, %v1339_v36  ;;  %v1609_v40 = vadd.s32 536870912, %v1608_v18  ;;  %v1870_v9 = vshrl.u32 %v1869_v51, 5  ;;  %v1874_v29 = vshll.u32 %v6452_v61, %v1871_v44 }
 0x18c   : > { %v1341_v16 = vsel %vm1331_vm2, nan, %v1340_v45  ;;  %v1725_v39 = vshrl.u32 %v1707_v48, %v1723_v21  ;;  %v1728_v53 = vadd.s32 127, %v1727_v50  ;;  %v1875_v5 = vshrl.u32 %v6453_v23, %v1872_v49 }
 0x18d   : > { %v2785_v27 = vadd.f32 1.0, %v1341_v16  ;;  %v5417_v59 = vshrl.u32 %v1609_v40, 30  ;;  %v1877_v7 = vshll.u32 %v6453_v23, %v1871_v44  ;;  %v1878_v42 = vshrl.u32 %v6454_v38, %v1872_v49 }
 0x18e   : > { %v1726_v25 = vor.u32 %v1725_v39, %v1724_v0  ;;  %v1729_v56 = vshll.u32 %v1728_v53, 23  ;;  %v1880_v34 = vshll.u32 %v6454_v38, %v1871_v44  ;;  %v1881_v13 = vshrl.u32 %v6455_v2, %v1872_v49 }
 0x18f   : > { %v2801_v37 = vmul.f32 0.5, %v2785_v27  ;;  %v1611_v8 = vshll.u32 %v5417_v59, 30  ;;  %v1883_v31 = vshll.u32 %v6455_v2, %v1871_v44  ;;  %v1758_v19 = vshrl.u32 %v1757_v15, 23 }
 0x190   : > { %v1730_v22 = vor.u32 4788187, %v1729_v56  ;;  %v1733_v24 = vcvt.s32.f32 %v1726_v25  ;;  %v1873_v54 = vshrl.u32 %v6452_v61, %v1872_v49  ;;  %v1884_v43 = vshrl.u32 %v6457_v32, %v1872_v49 }
 0x191   : > { %2823 = vperm.xlu0 %3999, %v2801_v37   ;;  %v5427_v57 = vsub.s32 %v1608_v18, %v1611_v8  ;;  %v1886_v46 = vshll.u32 %v6457_v32, %v1871_v44  ;;  %v1876_v12 = vor.u32 %v1875_v5, %v1874_v29  ;;  %v1879_v41 = vor.u32 %v1878_v42, %v1877_v7 }
 0x192   : > { %v1731_v60 = vand.u32 2147483647, %v1730_v22  ;;  %v1887_v3 = vshrl.u32 %v6458_v33, %v1872_v49  ;;  %v1882_v51 = vor.u32 %v1881_v13, %v1880_v34  ;;  %v1885_v4 = vor.u32 %v1884_v43, %v1883_v31  ;;  %v1113_v31 = vld [vmem:[%s4368_s21 + $0x48] sm:$0xff] }
 0x193   : > { %v1614_v47 = vsub.s32 0, %v5427_v57  ;;  %vm1889_vm14 = vcmp.lt.s32.totalorder %v1870_v9, 1  ;;  %vm1892_vm15 = vcmp.lt.s32.totalorder %v1870_v9, 4  ;;  %v3543_v20 = vadd.s32 4294967169, %v1758_v19 }
 0x194   : > { %v1734_v35 = vmul.f32 %v1733_v24, %v1731_v60  ;;  %v1888_v48 = vor.u32 %v1887_v3, %v1886_v46  ;;  %v1634_v18 = vsub.s32 4, %v5417_v59  ;;  %vm1890_vm10 = vcmp.lt.s32.totalorder %v1870_v9, 2 }
 0x195   : > { %v3536_v58 = vmin.u32 %v1614_v47, %v5427_v57  ;;  %vm1891_vm6 = vcmp.lt.s32.totalorder %v1870_v9, 3  ;;  %v1893_v36 = vsel %vm1889_vm14, %v1873_v54, %v1876_v12  ;;  %v1894_v11 = vsel %vm1892_vm15, %v1882_v51, 2102212464 }
 0x196   : > { %v1735_v44 = vxor.u32 2147483648, %v1734_v35  ;;  %v1897_v49 = vsel %vm1889_vm14, %v1876_v12, %v1879_v41  ;;  %v1895_v21 = vsel %vm1891_vm6, %v1879_v41, %v1894_v11  ;;  %v1898_v0 = vsel %vm1892_vm15, %v1885_v4, 920167782 }
 0x197   : > { %v1616_v55 = vclz %v3536_v58  ;;  %v1901_v50 = vsel %vm1889_vm14, %v1879_v41, %v1882_v51  ;;  %v1896_v40 = vsel %vm1890_vm10, %v1893_v36, %v1895_v21  ;;  %v1899_v15 = vsel %vm1891_vm6, %v1882_v51, %v1898_v0 }
 0x198   : > { %v1736_v45 = vsel %vm1653_vm4, %v1735_v44, %v1734_v35  ;;  %v1902_v16 = vsel %vm1892_vm15, %v1888_v48, 1326507024  ;;  %v1900_v27 = vsel %vm1890_vm10, %v1897_v49, %v1899_v15  ;;  %vm1550_vm1 = vcmp.lt.s32.totalorder %v6449_v10, 0 }
 0x199   : > { %v1739_v39 = vsel %vm5386_vm3, %v6446_v14, %v1736_v45  ;;  %v3537_v53 = vadd.s32 4294967294, %v1616_v55  ;;  %v1903_v29 = vsel %vm1891_vm6, %v1885_v4, %v1902_v16  ;;  %v1754_v8 = vand.u32 2147483647, %v5391_v1 }
 0x19a   : > { %4081 = vcosq.f32 %v1739_v39  ;;  %v1904_v5 = vsel %vm1890_vm10, %v1901_v50, %v1903_v29  ;;  %v5454_v25 = vmul.u32.u64.low %v5406_v52, %v1900_v27  ;;  %v5455_v56 = vmul.u32.u64.high %v5406_v52, %v1900_v27, %v5454_v25 }
 0x19b   : > { %4083 = vsinq.f32 %v1739_v39  ;;  %vm3538_vm0 = vcmp.lt.s32.totalorder %v3537_v53, 0  ;;  %v5459_v7 = vmul.u32.u64.low %v5406_v52, %v1904_v5  ;;  %v5460_v42 = vmul.u32.u64.high %v5406_v52, %v1904_v5, %v5459_v7 }
 0x19c   : > { %v1619_v37 = vsel %vm3538_vm0, 0, %v3537_v53  ;;  %v1764_v34 = vadd.s32 1, %v3543_v20  ;;  %v1912_v24 = vmul.u32 %v5406_v52, %v1896_v40  ;;  %v1744_v19 = vand.u32 3, %v1740_v62 }
 0x19d   : > { %v1620_v13 = vsub.s32 32, %v1619_v37  ;;  %v1621_v9 = vshll.u32 %v5427_v57, %v1619_v37  ;;  %v1624_v22 = vsub.s32 4294967266, %v1619_v37  ;;  %v1635_v54 = vsel %vm1550_vm1, %v1634_v18, %v5417_v59 }
 0x19e   : > { %v1915_v43 = vadd.s32 1, %v5455_v56  ;;  %vm1765_vm2 = vcmp.gt.s32.totalorder %v1764_v34, 0  ;;  %vm5477_vm4 = vcmp.le.f32.partialorder %v1548_v28, 0.7853982  ;;  %vm1914_vm3 = vc.u32 %v5460_v42, %v5454_v25 }
 0x19f   : > { %v1622_v52 = vshrl.u32 %v5412_v17, %v1620_v13  ;;  %v1625_v46 = vadd.s32 127, %v1624_v22  ;;  %v1761_v30 = vand.u32 8388607, %v1754_v8  ;;  %v1766_v62 = vsel %vm1765_vm2, %v1764_v34, 0 }
 0x1a0   : > { %v1916_v6 = vsel %vm1914_vm3, %v1915_v43, %v5455_v56  ;;  %v5487_v59 = vmul.f32 0.31415927, %v1113_v31  ;;  %v1637_v28 = vsel %vm5477_vm4, 0, %v1635_v54  ;;  %vm1743_vm5 = vweird.f32 %v6446_v14 }
 0x1a1   : > { %v1623_v60 = vor.u32 %v1622_v52, %v1621_v9  ;;  %v1626_v12 = vshll.u32 %v1625_v46, 23  ;;  %v1917_v41 = vadd.s32 %v1916_v6, %v1912_v24  ;;  %vm1745_vm7 = vcmp.lt.s32.totalorder %v1744_v19, 2 }
 0x1a2   : > { %vm1746_vm8 = vcmp.eq.s32.totalorder %v1744_v19, 0  ;;  %v1768_v17 = vand.u32 31, %v1766_v62  ;;  %vm1749_vm11 = vcmp.eq.s32.totalorder %v1744_v19, 2  ;;  %v5492_v35 = vand.u32 3, %v1637_v28 }
 0x1a3   : > { %v1627_v3 = vor.u32 4788187, %v1626_v12  ;;  %v1630_v47 = vcvt.s32.f32 %v1623_v60  ;;  %v1918_v51 = vadd.s32 536870912, %v1917_v41  ;;  %v1762_v48 = vor.u32 8388608, %v1761_v30 }
 0x1a4   : > { %v4082_v4 = vpop.eup %4081  ;;  %v1769_v20 = vsub.s32 32, %v1768_v17  ;;  %v2066_v58 = vand.u32 2139095040, %v5487_v59  ;;  %v5497_v49 = vshrl.u32 %v1766_v62, 5  ;;  %v1771_v21 = vshll.u32 %v6452_v61, %v1768_v17 }
 0x1a5   : > { %v4084_v18 = vpop.eup %4083  ;;  %v1750_v44 = vxor.u32 2147483648, %v4082_v4  ;;  %v1628_v36 = vand.u32 2147483647, %v1627_v3  ;;  %v5495_v11 = vshrl.u32 %v1918_v51, 30  ;;  %v1774_v50 = vshll.u32 %v6453_v23, %v1768_v17 }
 0x1a6   : > { %v1747_v55 = vxor.u32 2147483648, %v4084_v18  ;;  %v1772_v0 = vshrl.u32 %v6453_v23, %v1769_v20  ;;  %v1775_v16 = vshrl.u32 %v6454_v38, %v1769_v20  ;;  %v1777_v53 = vshll.u32 %v6454_v38, %v1768_v17 }
 0x1a7   : > { %v1751_v45 = vsel %vm1749_vm11, %v1750_v44, %v4084_v18  ;;  %v1631_v40 = vmul.f32 %v1630_v47, %v1628_v36  ;;  %v1920_v15 = vshll.u32 %v5495_v11, 30  ;;  %v1780_v27 = vshll.u32 %v6455_v2, %v1768_v17 }
 0x1a8   : > { %v1748_v39 = vsel %vm1746_vm8, %v4082_v4, %v1747_v55  ;;  %v2067_v29 = vshrl.u32 %v2066_v58, 23  ;;  %v1778_v37 = vshrl.u32 %v6455_v2, %v1769_v20  ;;  %v1773_v13 = vor.u32 %v1772_v0, %v1771_v21 }
 0x1a9   : > { %v1752_v5 = vsel %vm1745_vm7, %v1748_v39, %v1751_v45  ;;  %v1632_v56 = vxor.u32 2147483648, %v1631_v40  ;;  %v5509_v7 = vsub.s32 %v1917_v41, %v1920_v15  ;;  %v1781_v9 = vshrl.u32 %v6457_v32, %v1769_v20 }
 0x1aa   : > { %v1753_v34 = vsel %vm1743_vm5, nan, %v1752_v5  ;;  %vm1786_vm9 = vcmp.lt.s32.totalorder %v5497_v49, 1  ;;  %v1776_v19 = vor.u32 %v1775_v16, %v1774_v50  ;;  %v1783_v14 = vshll.u32 %v6457_v32, %v1768_v17 }
 0x1ab   : > { %v2789_v22 = vadd.f32 1.0, %v1753_v34  ;;  %v1633_v24 = vsel %vm1550_vm1, %v1632_v56, %v1631_v40  ;;  %v1923_v31 = vsub.s32 0, %v5509_v7  ;;  %v1782_v43 = vor.u32 %v1781_v9, %v1780_v27 }
 0x1ac   : > { %v1636_v54 = vsel %vm5477_vm4, %v6449_v10, %v1633_v24  ;;  %v1784_v52 = vshrl.u32 %v6458_v33, %v1769_v20  ;;  %v1779_v30 = vor.u32 %v1778_v37, %v1777_v53  ;;  %v1770_v62 = vshrl.u32 %v6452_v61, %v1769_v20 }
 0x1ad   : > { %v2805_v46 = vmul.f32 0.5, %v2789_v22  ;;  %4085 = vcosq.f32 %v1636_v54  ;;  %v3548_v6 = vmin.u32 %v1923_v31, %v5509_v7  ;;  %v1802_v12 = vshll.u32 %v1762_v48, 8 }
 0x1ae   : > { %4087 = vsinq.f32 %v1636_v54  ;;  %v1785_v60 = vor.u32 %v1784_v52, %v1783_v14  ;;  %vm1787_vm13 = vcmp.lt.s32.totalorder %v5497_v49, 2  ;;  %vm1788_vm14 = vcmp.lt.s32.totalorder %v5497_v49, 3 }
 0x1af   : > { %2843 = vperm.xlu1 %4000, %v2805_v46   ;;  %v1925_v28 = vclz %v3548_v6  ;;  %vm1789_vm15 = vcmp.lt.s32.totalorder %v5497_v49, 4  ;;  %v1794_v41 = vsel %vm1786_vm9, %v1773_v13, %v1776_v19  ;;  %v3555_v3 = vadd.s32 4294967169, %v2067_v29 }
 0x1b0   : > { %v1791_v57 = vsel %vm1789_vm15, %v1779_v30, 2102212464  ;;  %v1795_v17 = vsel %vm1789_vm15, %v1782_v43, 920167782  ;;  %v1913_v47 = vadd.s32 %v5454_v25, %v5460_v42  ;;  %v1798_v48 = vsel %vm1786_vm9, %v1776_v19, %v1779_v30 }
 0x1b1   : > { %v3549_v51 = vadd.s32 4294967294, %v1925_v28  ;;  %v1796_v4 = vsel %vm1788_vm14, %v1779_v30, %v1795_v17  ;;  %vm1640_vm10 = vweird.f32 %v6449_v10  ;;  %v1790_v20 = vsel %vm1786_vm9, %v1770_v62, %v1773_v13 }
 0x1b2   : > { %v1792_v58 = vsel %vm1788_vm14, %v1776_v19, %v1791_v57  ;;  %v1797_v18 = vsel %vm1787_vm13, %v1794_v41, %v1796_v4  ;;  %v1799_v44 = vsel %vm1789_vm15, %v1785_v60, 1326507024  ;;  %vm1643_vm0 = vcmp.eq.s32.totalorder %v5492_v35, 0 }
 0x1b3   : > { %vm3550_vm6 = vcmp.lt.s32.totalorder %v3549_v51, 0  ;;  %v1800_v25 = vsel %vm1788_vm14, %v1782_v43, %v1799_v44  ;;  %v5546_v42 = vmul.u32.u64.low %v1802_v12, %v1797_v18  ;;  %v5547_v36 = vmul.u32.u64.high %v1802_v12, %v1797_v18, %v5546_v42 }
 0x1b4   : > { %v1928_v55 = vsel %vm3550_vm6, 0, %v3549_v51  ;;  %v1801_v21 = vsel %vm1787_vm13, %v1798_v48, %v1800_v25  ;;  %v2073_v0 = vadd.s32 1, %v3555_v3  ;;  %v1793_v15 = vsel %vm1787_vm13, %v1790_v20, %v1792_v58 }
 0x1b5   : > { %v1929_v50 = vsub.s32 32, %v1928_v55  ;;  %v1930_v45 = vshll.u32 %v5509_v7, %v1928_v55  ;;  %v1933_v40 = vsub.s32 4294967266, %v1928_v55  ;;  %vm1646_vm1 = vcmp.eq.s32.totalorder %v5492_v35, 2 }
 0x1b6   : > { %v5557_v16 = vmul.u32.u64.low %v1802_v12, %v1801_v21  ;;  %v5558_v39 = vmul.u32.u64.high %v1802_v12, %v1801_v21, %v5557_v16  ;;  %vm2074_vm2 = vcmp.gt.s32.totalorder %v2073_v0, 0  ;;  %v1812_v5 = vadd.s32 1, %v5547_v36 }
 0x1b7   : > { %v4086_v53 = vpop.eup %4085  ;;  %v1931_v27 = vshrl.u32 %v1913_v47, %v1929_v50  ;;  %v1934_v29 = vadd.s32 127, %v1933_v40  ;;  %v2075_v56 = vsel %vm2074_vm2, %v2073_v0, 0  ;;  %vm1859_vm4 = vcmp.lt.s32.totalorder %v5254_v63, 0 }
 0x1b8   : > { %v4088_v37 = vpop.eup %4087  ;;  %v1647_v34 = vxor.u32 2147483648, %v4086_v53  ;;  %v1809_v7 = vmul.u32 %v1802_v12, %v1793_v15  ;;  %v2063_v49 = vand.u32 2147483647, %v5487_v59  ;;  %v2077_v13 = vand.u32 31, %v2075_v56 }
 0x1b9   : > { %vm1642_vm3 = vcmp.lt.s32.totalorder %v5492_v35, 2  ;;  %v1644_v9 = vxor.u32 2147483648, %v4088_v37  ;;  %v1932_v22 = vor.u32 %v1931_v27, %v1930_v45  ;;  %v1935_v24 = vshll.u32 %v1934_v29, 23  ;;  %v1112_v27 = vld [vmem:[%s4368_s21 + $0x40] sm:$0xff] }
 0x1ba   : > { %v1648_v31 = vsel %vm1646_vm1, %v1647_v34, %v4088_v37  ;;  %vm5568_vm5 = vcmp.le.f32.partialorder %v1857_v26, 0.7853982  ;;  %vm1811_vm7 = vc.u32 %v5558_v39, %v5546_v42  ;;  %v2078_v54 = vsub.s32 32, %v2077_v13 }
 0x1bb   : > { %v1645_v43 = vsel %vm1643_vm0, %v4086_v53, %v1644_v9  ;;  %v1936_v14 = vor.u32 4788187, %v1935_v24  ;;  %v1939_v52 = vcvt.s32.f32 %v1932_v22  ;;  %v1813_v46 = vsel %vm1811_vm7, %v1812_v5, %v5547_v36 }
 0x1bc   : > { %v1649_v6 = vsel %vm1642_vm3, %v1645_v43, %v1648_v31  ;;  %v1943_v30 = vsub.s32 4, %v5495_v11  ;;  %v1814_v62 = vadd.s32 %v1813_v46, %v1809_v7  ;;  %v2070_v26 = vand.u32 8388607, %v2063_v49 }
 0x1bd   : > { %v1650_v60 = vsel %vm1640_vm10, nan, %v1649_v6  ;;  %v1937_v12 = vand.u32 2147483647, %v1936_v14  ;;  %v2080_v28 = vshll.u32 %v6452_v61, %v2077_v13  ;;  %v2081_v35 = vshrl.u32 %v6453_v23, %v2078_v54 }
 0x1be   : > { %v2788_v57 = vadd.f32 1.0, %v1650_v60  ;;  %v1815_v41 = vadd.s32 536870912, %v1814_v62  ;;  %v2083_v17 = vshll.u32 %v6453_v23, %v2077_v13  ;;  %v2084_v3 = vshrl.u32 %v6454_v38, %v2078_v54 }
 0x1bf   : > { %v1940_v47 = vmul.f32 %v1939_v52, %v1937_v12  ;;  %v2086_v51 = vshll.u32 %v6454_v38, %v2077_v13  ;;  %v2087_v4 = vshrl.u32 %v6455_v2, %v2078_v54  ;;  %v2089_v48 = vshll.u32 %v6455_v2, %v2077_v13 }
 0x1c0   : > { %v2804_v10 = vmul.f32 0.5, %v2788_v57  ;;  %v5589_v20 = vshrl.u32 %v1815_v41, 30  ;;  %v2076_v58 = vshrl.u32 %v2075_v56, 5  ;;  %v2090_v18 = vshrl.u32 %v6457_v32, %v2078_v54 }
 0x1c1   : > { %v1941_v44 = vxor.u32 2147483648, %v1940_v47  ;;  %v1944_v25 = vsel %vm1859_vm4, %v1943_v30, %v5495_v11  ;;  %v2092_v36 = vshll.u32 %v6457_v32, %v2077_v13  ;;  %v2093_v55 = vshrl.u32 %v6458_v33, %v2078_v54 }
 0x1c2   : > { %2838 = vperm.xlu0 %3999, %v2804_v10   ;;  %v1817_v21 = vshll.u32 %v5589_v20, 30  ;;  %v2071_v0 = vor.u32 8388608, %v2070_v26  ;;  %v2079_v50 = vshrl.u32 %v6452_v61, %v2078_v54  ;;  %v2082_v45 = vor.u32 %v2081_v35, %v2080_v28 }
 0x1c3   : > { %v1942_v40 = vsel %vm1859_vm4, %v1941_v44, %v1940_v47  ;;  %v2085_v15 = vor.u32 %v2084_v3, %v2083_v17  ;;  %v2088_v16 = vor.u32 %v2087_v4, %v2086_v51  ;;  %v2091_v53 = vor.u32 %v2090_v18, %v2089_v48 }
 0x1c4   : > { %v1945_v11 = vsel %vm5568_vm5, %v5254_v63, %v1942_v40  ;;  %v5605_v29 = vsub.s32 %v1814_v62, %v1817_v21  ;;  %vm2095_vm8 = vcmp.lt.s32.totalorder %v2076_v58, 1  ;;  %vm2098_vm11 = vcmp.lt.s32.totalorder %v2076_v58, 4 }
 0x1c5   : > { %v1946_v5 = vsel %vm5568_vm5, 0, %v1944_v25  ;;  %4089 = vcosq.f32 %v1945_v11  ;;  %v2094_v56 = vor.u32 %v2093_v55, %v2092_v36  ;;  %v2100_v37 = vsel %vm2098_vm11, %v2088_v16, 2102212464 }
 0x1c6   : > { %4091 = vsinq.f32 %v1945_v11  ;;  %v1820_v34 = vsub.s32 0, %v5605_v29  ;;  %vm2097_vm9 = vcmp.lt.s32.totalorder %v2076_v58, 3  ;;  %v5611_v7 = vmul.f32 0.31415927, %v1112_v27 }
 0x1c7   : > { %vm2096_vm13 = vcmp.lt.s32.totalorder %v2076_v58, 2  ;;  %v2103_v13 = vsel %vm2095_vm8, %v2082_v45, %v2085_v15  ;;  %v2104_v9 = vsel %vm2098_vm11, %v2091_v53, 920167782  ;;  %v2111_v22 = vshll.u32 %v2071_v0, 8 }
 0x1c8   : > { %v3544_v24 = vmin.u32 %v1820_v34, %v5605_v29  ;;  %v2099_v31 = vsel %vm2095_vm8, %v2079_v50, %v2082_v45  ;;  %v2101_v19 = vsel %vm2097_vm9, %v2085_v15, %v2100_v37  ;;  %v2107_v54 = vsel %vm2095_vm8, %v2085_v15, %v2088_v16 }
 0x1c9   : > { %v1950_v43 = vand.u32 3, %v1946_v5  ;;  %v2105_v14 = vsel %vm2097_vm9, %v2088_v16, %v2104_v9  ;;  %v2108_v52 = vsel %vm2098_vm11, %v2094_v56, 1326507024  ;;  %vm1949_vm14 = vweird.f32 %v5254_v63 }
 0x1ca   : > { %v1822_v46 = vclz %v3544_v24  ;;  %v2106_v6 = vsel %vm2096_vm13, %v2103_v13, %v2105_v14  ;;  %v2109_v30 = vsel %vm2097_vm9, %v2091_v53, %v2108_v52  ;;  %v1963_v62 = vand.u32 2139095040, %v5611_v7 }
 0x1cb   : > { %v2102_v26 = vsel %vm2096_vm13, %v2099_v31, %v2101_v19  ;;  %v2110_v60 = vsel %vm2096_vm13, %v2107_v54, %v2109_v30  ;;  %v5627_v12 = vmul.u32.u64.low %v2111_v22, %v2106_v6  ;;  %v5628_v28 = vmul.u32.u64.high %v2111_v22, %v2106_v6, %v5627_v12  ;;  %v1115_v6 = vld [vmem:[%s4368_s21 + $0x58] sm:$0xff] }
 0x1cc   : > { %v3545_v35 = vadd.s32 4294967294, %v1822_v46  ;;  %v5631_v57 = vmul.u32.u64.low %v2111_v22, %v2110_v60  ;;  %v5632_v41 = vmul.u32.u64.high %v2111_v22, %v2110_v60, %v5631_v57  ;;  %v1964_v17 = vshrl.u32 %v1963_v62, 23 }
 0x1cd   : > { %vm1951_vm15 = vcmp.lt.s32.totalorder %v1950_v43, 2  ;;  %vm1952_vm10 = vcmp.eq.s32.totalorder %v1950_v43, 0  ;;  %vm1756_vm6 = vcmp.lt.s32.totalorder %v5391_v1, 0  ;;  %v1840_v3 = vsub.s32 4, %v5589_v20 }
 0x1ce   : > { %vm1955_vm0 = vcmp.eq.s32.totalorder %v1950_v43, 2  ;;  %v1810_v47 = vadd.s32 %v5546_v42, %v5558_v39  ;;  %vm3546_vm1 = vcmp.lt.s32.totalorder %v3545_v35, 0  ;;  %v3551_v51 = vadd.s32 4294967169, %v1964_v17 }
 0x1cf   : > { %v4090_v4 = vpop.eup %4089  ;;  %v1825_v48 = vsel %vm3546_vm1, 0, %v3545_v35  ;;  %v2118_v10 = vmul.u32 %v2111_v22, %v2102_v26  ;;  %v2121_v58 = vadd.s32 1, %v5628_v28  ;;  %v1960_v18 = vand.u32 2147483647, %v5611_v7 }
 0x1d0   : > { %v4092_v44 = vpop.eup %4091  ;;  %v1956_v25 = vxor.u32 2147483648, %v4090_v4  ;;  %v1826_v36 = vsub.s32 32, %v1825_v48  ;;  %v1827_v55 = vshll.u32 %v5605_v29, %v1825_v48  ;;  %v1830_v21 = vsub.s32 4294967266, %v1825_v48 }
 0x1d1   : > { %v1953_v0 = vxor.u32 2147483648, %v4092_v44  ;;  %v1841_v42 = vsel %vm1756_vm6, %v1840_v3, %v5589_v20  ;;  %vm2120_vm2 = vc.u32 %v5632_v41, %v5627_v12  ;;  %v1970_v39 = vadd.s32 1, %v3551_v51 }
 0x1d2   : > { %v1957_v50 = vsel %vm1955_vm0, %v1956_v25, %v4092_v44  ;;  %v1828_v45 = vshrl.u32 %v1810_v47, %v1826_v36  ;;  %v1831_v40 = vadd.s32 127, %v1830_v21  ;;  %v2122_v15 = vsel %vm2120_vm2, %v2121_v58, %v5628_v28 }
 0x1d3   : > { %v1954_v16 = vsel %vm1952_vm10, %v4090_v4, %v1953_v0  ;;  %v2123_v53 = vadd.s32 %v2122_v15, %v2118_v10  ;;  %v1967_v27 = vand.u32 8388607, %v1960_v18  ;;  %vm1971_vm4 = vcmp.gt.s32.totalorder %v1970_v39, 0 }
 0x1d4   : > { %v1958_v11 = vsel %vm1951_vm15, %v1954_v16, %v1957_v50  ;;  %v1829_v20 = vor.u32 %v1828_v45, %v1827_v55  ;;  %v1832_v29 = vshll.u32 %v1831_v40, 23  ;;  %v1972_v5 = vsel %vm1971_vm4, %v1970_v39, 0 }
 0x1d5   : > { %v1959_v56 = vsel %vm1949_vm14, nan, %v1958_v11  ;;  %v2124_v37 = vadd.s32 536870912, %v2123_v53  ;;  %v1974_v34 = vand.u32 31, %v1972_v5  ;;  %vm5656_vm3 = vcmp.le.f32.partialorder %v1754_v8, 0.7853982 }
 0x1d6   : > { %v2791_v13 = vadd.f32 1.0, %v1959_v56  ;;  %v1833_v22 = vor.u32 4788187, %v1832_v29  ;;  %v1836_v24 = vcvt.s32.f32 %v1829_v20  ;;  %v1843_v31 = vsel %vm5656_vm3, 0, %v1841_v42 }
 0x1d7   : > { %v5662_v19 = vshrl.u32 %v2124_v37, 30  ;;  %v1968_v54 = vor.u32 8388608, %v1967_v27  ;;  %v1975_v63 = vsub.s32 32, %v1974_v34  ;;  %v1977_v52 = vshll.u32 %v6452_v61, %v1974_v34 }
 0x1d8   : > { %v2807_v43 = vmul.f32 0.5, %v2791_v13  ;;  %v1834_v14 = vand.u32 2147483647, %v1833_v22  ;;  %v1980_v46 = vshll.u32 %v6453_v23, %v1974_v34  ;;  %v1983_v62 = vshll.u32 %v6454_v38, %v1974_v34 }
 0x1d9   : > { %v2126_v8 = vshll.u32 %v5662_v19, 30  ;;  %v1978_v30 = vshrl.u32 %v6453_v23, %v1975_v63  ;;  %v1986_v26 = vshll.u32 %v6455_v2, %v1974_v34  ;;  %v1981_v28 = vshrl.u32 %v6454_v38, %v1975_v63 }
 0x1da   : > { %2853 = vperm.xlu1 %4000, %v2807_v43   ;;  %v1837_v60 = vmul.f32 %v1836_v24, %v1834_v14  ;;  %v1984_v35 = vshrl.u32 %v6455_v2, %v1975_v63  ;;  %v1987_v57 = vshrl.u32 %v6457_v32, %v1975_v63  ;;  %v5674_v17 = vand.u32 3, %v1843_v31 }
 0x1db   : > { %v5676_v3 = vsub.s32 %v2123_v53, %v2126_v8  ;;  %v1973_v47 = vshrl.u32 %v1972_v5, 5  ;;  %v5678_v51 = vmul.f32 0.31415927, %v1115_v6  ;;  %v2119_v48 = vadd.s32 %v5627_v12, %v5632_v41 }
 0x1dc   : > { %v1838_v4 = vxor.u32 2147483648, %v1837_v60  ;;  %v1989_v10 = vshll.u32 %v6457_v32, %v1974_v34  ;;  %v5683_v58 = vshll.u32 %v1968_v54, 8  ;;  %v1976_v25 = vshrl.u32 %v6452_v61, %v1975_v63 }
 0x1dd   : > { %v2129_v44 = vsub.s32 0, %v5676_v3  ;;  %v1979_v36 = vor.u32 %v1978_v30, %v1977_v52  ;;  %v1990_v55 = vshrl.u32 %v6458_v33, %v1975_v63  ;;  %v1982_v0 = vor.u32 %v1981_v28, %v1980_v46 }
 0x1de   : > { %v1839_v21 = vsel %vm1756_vm6, %v1838_v4, %v1837_v60  ;;  %v1985_v42 = vor.u32 %v1984_v35, %v1983_v62  ;;  %v1988_v39 = vor.u32 %v1987_v57, %v1986_v26  ;;  %vm1992_vm5 = vcmp.lt.s32.totalorder %v1973_v47, 1 }
 0x1df   : > { %v1842_v12 = vsel %vm5656_vm3, %v5391_v1, %v1839_v21  ;;  %v3556_v41 = vmin.u32 %v2129_v44, %v5676_v3  ;;  %vm1993_vm7 = vcmp.lt.s32.totalorder %v1973_v47, 2  ;;  %v1991_v50 = vor.u32 %v1990_v55, %v1989_v10 }
 0x1e0   : > { %4093 = vcosq.f32 %v1842_v12  ;;  %vm1994_vm8 = vcmp.lt.s32.totalorder %v1973_v47, 3  ;;  %vm1995_vm11 = vcmp.lt.s32.totalorder %v1973_v47, 4  ;;  %v1996_v40 = vsel %vm1992_vm5, %v1976_v25, %v1979_v36 }
 0x1e1   : > { %4095 = vsinq.f32 %v1842_v12  ;;  %v2131_v45 = vclz %v3556_v41  ;;  %v1997_v15 = vsel %vm1995_vm11, %v1985_v42, 2102212464  ;;  %v2000_v53 = vsel %vm1992_vm5, %v1979_v36, %v1982_v0  ;;  %v1114_v36 = vld [vmem:[%s4368_s21 + $0x50] sm:$0xff] }
 0x1e2   : > { %v1998_v16 = vsel %vm1994_vm8, %v1982_v0, %v1997_v15  ;;  %v2001_v27 = vsel %vm1995_vm11, %v1988_v39, 920167782  ;;  %v2004_v11 = vsel %vm1992_vm5, %v1982_v0, %v1985_v42  ;;  %v2149_v29 = vsub.s32 4, %v5662_v19 }
 0x1e3   : > { %v3557_v20 = vadd.s32 4294967294, %v2131_v45  ;;  %v2002_v5 = vsel %vm1994_vm8, %v1985_v42, %v2001_v27  ;;  %v2005_v56 = vsel %vm1995_vm11, %v1991_v50, 1326507024  ;;  %v1999_v37 = vsel %vm1993_vm7, %v1996_v40, %v1998_v16 }
 0x1e4   : > { %v2003_v34 = vsel %vm1993_vm7, %v2000_v53, %v2002_v5  ;;  %v2006_v13 = vsel %vm1994_vm8, %v1988_v39, %v2005_v56  ;;  %v2272_v9 = vand.u32 2139095040, %v5678_v51  ;;  %vm1846_vm9 = vweird.f32 %v5391_v1 }
 0x1e5   : > { %vm3558_vm13 = vcmp.lt.s32.totalorder %v3557_v20, 0  ;;  %v2007_v22 = vsel %vm1993_vm7, %v2004_v11, %v2006_v13  ;;  %v5704_v24 = vmul.u32.u64.low %v5683_v58, %v2003_v34  ;;  %v5705_v31 = vmul.u32.u64.high %v5683_v58, %v2003_v34, %v5704_v24 }
 0x1e6   : > { %v2134_v54 = vsel %vm3558_vm13, 0, %v3557_v20  ;;  %v5708_v63 = vmul.u32.u64.low %v5683_v58, %v2007_v22  ;;  %v5709_v43 = vmul.u32.u64.high %v5683_v58, %v2007_v22, %v5708_v63  ;;  %v2273_v14 = vshrl.u32 %v2272_v9, 23 }
 0x1e7   : > { %vm2065_vm14 = vcmp.lt.s32.totalorder %v5487_v59, 0  ;;  %v2135_v52 = vsub.s32 32, %v2134_v54  ;;  %v2136_v46 = vshll.u32 %v5676_v3, %v2134_v54  ;;  %v2139_v6 = vsub.s32 4294967266, %v2134_v54 }
 0x1e8   : > { %vm1848_vm15 = vcmp.lt.s32.totalorder %v5674_v17, 2  ;;  %vm5716_vm10 = vcmp.le.f32.partialorder %v2063_v49, 0.7853982  ;;  %v2015_v30 = vmul.u32 %v5683_v58, %v1999_v37  ;;  %v3563_v62 = vadd.s32 4294967169, %v2273_v14 }
 0x1e9   : > { %vm1849_vm6 = vcmp.eq.s32.totalorder %v5674_v17, 0  ;;  %v2137_v26 = vshrl.u32 %v2119_v48, %v2135_v52  ;;  %v2140_v60 = vadd.s32 127, %v2139_v6  ;;  %v2018_v28 = vadd.s32 1, %v5705_v31 }
 0x1ea   : > { %v4094_v35 = vpop.eup %4093  ;;  %vm1852_vm0 = vcmp.eq.s32.totalorder %v5674_v17, 2  ;;  %v2150_v49 = vsel %vm2065_vm14, %v2149_v29, %v5662_v19  ;;  %vm2017_vm1 = vc.u32 %v5709_v43, %v5704_v24  ;;  %v2279_v57 = vadd.s32 1, %v3563_v62 }
 0x1eb   : > { %v4096_v3 = vpop.eup %4095  ;;  %v1853_v47 = vxor.u32 2147483648, %v4094_v35  ;;  %v2138_v4 = vor.u32 %v2137_v26, %v2136_v46  ;;  %v2141_v10 = vshll.u32 %v2140_v60, 23  ;;  %v2019_v48 = vsel %vm2017_vm1, %v2018_v28, %v5705_v31 }
 0x1ec   : > { %v1850_v58 = vxor.u32 2147483648, %v4096_v3  ;;  %v2020_v44 = vadd.s32 %v2019_v48, %v2015_v30  ;;  %v2269_v25 = vand.u32 2147483647, %v5678_v51  ;;  %vm2280_vm2 = vcmp.gt.s32.totalorder %v2279_v57, 0 }
 0x1ed   : > { %v1854_v55 = vsel %vm1852_vm0, %v1853_v47, %v4096_v3  ;;  %v2142_v21 = vor.u32 4788187, %v2141_v10  ;;  %v2145_v0 = vcvt.s32.f32 %v2138_v4  ;;  %v2281_v42 = vsel %vm2280_vm2, %v2279_v57, 0 }
 0x1ee   : > { %v1851_v19 = vsel %vm1849_vm6, %v4094_v35, %v1850_v58  ;;  %v2152_v39 = vsel %vm5716_vm10, 0, %v2150_v49  ;;  %v2021_v12 = vadd.s32 536870912, %v2020_v44  ;;  %v2283_v41 = vand.u32 31, %v2281_v42 }
 0x1ef   : > { %v1855_v50 = vsel %vm1848_vm15, %v1851_v19, %v1854_v55  ;;  %v2143_v45 = vand.u32 2147483647, %v2142_v21  ;;  %v5737_v40 = vmul.f32 0.31415927, %v1114_v36  ;;  %v2276_v53 = vand.u32 8388607, %v2269_v25 }
 0x1f0   : > { %v1856_v15 = vsel %vm1846_vm9, nan, %v1855_v50  ;;  %v5741_v16 = vshrl.u32 %v2021_v12, 30  ;;  %v2284_v27 = vsub.s32 32, %v2283_v41  ;;  %v5745_v29 = vand.u32 3, %v2152_v39 }
 0x1f1   : > { %v2790_v11 = vadd.f32 1.0, %v1856_v15  ;;  %v2146_v20 = vmul.f32 %v2145_v0, %v2143_v45  ;;  %v2286_v5 = vshll.u32 %v6452_v61, %v2283_v41  ;;  %v2289_v37 = vshll.u32 %v6453_v23, %v2283_v41 }
 0x1f2   : > { %v2023_v17 = vshll.u32 %v5741_v16, 30  ;;  %v2287_v56 = vshrl.u32 %v6453_v23, %v2284_v27  ;;  %v2292_v1 = vshll.u32 %v6454_v38, %v2283_v41  ;;  %v2290_v9 = vshrl.u32 %v6454_v38, %v2284_v27 }
 0x1f3   : > { %v2806_v34 = vmul.f32 0.5, %v2790_v11  ;;  %v2147_v13 = vxor.u32 2147483648, %v2146_v20  ;;  %v2293_v22 = vshrl.u32 %v6455_v2, %v2284_v27  ;;  %v5755_v31 = vadd.s32 %v5704_v24, %v5709_v43 }
 0x1f4   : > { %v5757_v54 = vsub.s32 %v2020_v44, %v2023_v17  ;;  %v2277_v63 = vor.u32 8388608, %v2276_v53  ;;  %v2282_v14 = vshrl.u32 %v2281_v42, 5  ;;  %v2285_v46 = vshrl.u32 %v6452_v61, %v2284_v27 }
 0x1f5   : > { %2848 = vperm.xlu0 %3999, %v2806_v34   ;;  %v2148_v52 = vsel %vm2065_vm14, %v2147_v13, %v2146_v20  ;;  %v2288_v6 = vor.u32 %v2287_v56, %v2286_v5  ;;  %v2295_v30 = vshll.u32 %v6455_v2, %v2283_v41  ;;  %v2291_v43 = vor.u32 %v2290_v9, %v2289_v37 }
 0x1f6   : > { %v2151_v62 = vsel %vm5716_vm10, %v5487_v59, %v2148_v52  ;;  %v2026_v24 = vsub.s32 0, %v5757_v54  ;;  %v2296_v26 = vshrl.u32 %v6457_v32, %v2284_v27  ;;  %v2294_v60 = vor.u32 %v2293_v22, %v2292_v1 }
 0x1f7   : > { %4097 = vcosq.f32 %v2151_v62  ;;  %v2298_v28 = vshll.u32 %v6457_v32, %v2283_v41  ;;  %v2299_v35 = vshrl.u32 %v6458_v33, %v2284_v27  ;;  %vm2301_vm4 = vcmp.lt.s32.totalorder %v2282_v14, 1 }
 0x1f8   : > { %4099 = vsinq.f32 %v2151_v62  ;;  %v3552_v49 = vmin.u32 %v2026_v24, %v5757_v54  ;;  %v2317_v57 = vshll.u32 %v2277_v63, 8  ;;  %v2297_v3 = vor.u32 %v2296_v26, %v2295_v30 }
 0x1f9   : > { %v2300_v47 = vor.u32 %v2299_v35, %v2298_v28  ;;  %vm2302_vm3 = vcmp.lt.s32.totalorder %v2282_v14, 2  ;;  %v2169_v8 = vand.u32 2139095040, %v5737_v40  ;;  %vm2303_vm5 = vcmp.lt.s32.totalorder %v2282_v14, 3 }
 0x1fa   : > { %v2028_v4 = vclz %v3552_v49  ;;  %vm2304_vm7 = vcmp.lt.s32.totalorder %v2282_v14, 4  ;;  %v2305_v10 = vsel %vm2301_vm4, %v2285_v46, %v2288_v6  ;;  %v2309_v58 = vsel %vm2301_vm4, %v2288_v6, %v2291_v43 }
 0x1fb   : > { %v2306_v48 = vsel %vm2304_vm7, %v2294_v60, 2102212464  ;;  %v2310_v44 = vsel %vm2304_vm7, %v2297_v3, 920167782  ;;  %v2313_v36 = vsel %vm2301_vm4, %v2291_v43, %v2294_v60  ;;  %vm2155_vm8 = vweird.f32 %v5487_v59 }
 0x1fc   : > { %vm1962_vm11 = vcmp.lt.s32.totalorder %v5611_v7, 0  ;;  %v3553_v55 = vadd.s32 4294967294, %v2028_v4  ;;  %v2307_v21 = vsel %vm2303_vm5, %v2291_v43, %v2306_v48  ;;  %v2311_v0 = vsel %vm2303_vm5, %v2294_v60, %v2310_v44  ;;  %v1117_v43 = vld [vmem:[%s4368_s21 + $0x68] sm:$0xff] }
 0x1fd   : > { %v2314_v42 = vsel %vm2304_vm7, %v2300_v47, 1326507024  ;;  %v2308_v19 = vsel %vm2302_vm3, %v2305_v10, %v2307_v21  ;;  %v2312_v39 = vsel %vm2302_vm3, %v2309_v58, %v2311_v0  ;;  %v2170_v41 = vshrl.u32 %v2169_v8, 23 }
 0x1fe   : > { %v2315_v12 = vsel %vm2303_vm5, %v2297_v3, %v2314_v42  ;;  %vm3554_vm9 = vcmp.lt.s32.totalorder %v3553_v55, 0  ;;  %v5777_v45 = vmul.u32.u64.low %v2317_v57, %v2312_v39  ;;  %v5778_v15 = vmul.u32.u64.high %v2317_v57, %v2312_v39, %v5777_v45  ;;  %v1116_v42 = vld [vmem:[%s4368_s21 + $0x60] sm:$0xff] }
 0x1ff   : > { %v2316_v50 = vsel %vm2302_vm3, %v2313_v36, %v2315_v12  ;;  %vm2157_vm13 = vcmp.lt.s32.totalorder %v5745_v29, 2  ;;  %v2031_v53 = vsel %vm3554_vm9, 0, %v3553_v55  ;;  %vm5787_vm14 = vcmp.le.f32.partialorder %v1960_v18, 0.7853982 }
 0x200   : > { %v5782_v27 = vmul.u32.u64.low %v2317_v57, %v2316_v50  ;;  %v5783_v11 = vmul.u32.u64.high %v2317_v57, %v2316_v50, %v5782_v27  ;;  %v2032_v5 = vsub.s32 32, %v2031_v53  ;;  %v2033_v17 = vshll.u32 %v5757_v54, %v2031_v53 }
 0x201   : > { %v2036_v56 = vsub.s32 4294967266, %v2031_v53  ;;  %v3559_v37 = vadd.s32 4294967169, %v2170_v41  ;;  %v4098_v1 = vpop.eup %4097  ;;  %vm2158_vm15 = vcmp.eq.s32.totalorder %v5745_v29, 0  ;;  %vm2161_vm10 = vcmp.eq.s32.totalorder %v5745_v29, 2 }
 0x202   : > { %v2046_v34 = vsub.s32 4, %v5741_v16  ;;  %v2324_v13 = vmul.u32 %v2317_v57, %v2308_v19  ;;  %v4100_v9 = vpop.eup %4099  ;;  %v2162_v22 = vxor.u32 2147483648, %v4098_v1  ;;  %v2034_v18 = vshrl.u32 %v5755_v31, %v2032_v5 }
 0x203   : > { %v2037_v63 = vadd.s32 127, %v2036_v56  ;;  %v2327_v14 = vadd.s32 1, %v5778_v15  ;;  %v2159_v52 = vxor.u32 2147483648, %v4100_v9  ;;  %vm2326_vm6 = vc.u32 %v5783_v11, %v5777_v45 }
 0x204   : > { %v2166_v54 = vand.u32 2147483647, %v5737_v40  ;;  %v2176_v46 = vadd.s32 1, %v3559_v37  ;;  %v2163_v6 = vsel %vm2161_vm10, %v2162_v22, %v4100_v9  ;;  %v2035_v30 = vor.u32 %v2034_v18, %v2033_v17 }
 0x205   : > { %v2038_v62 = vshll.u32 %v2037_v63, 23  ;;  %v2328_v24 = vsel %vm2326_vm6, %v2327_v14, %v5778_v15  ;;  %v2160_v26 = vsel %vm2158_vm15, %v4098_v1, %v2159_v52  ;;  %v2047_v31 = vsel %vm1962_vm11, %v2046_v34, %v5741_v16 }
 0x206   : > { %v2329_v60 = vadd.s32 %v2328_v24, %v2324_v13  ;;  %vm2177_vm0 = vcmp.gt.s32.totalorder %v2176_v46, 0  ;;  %v2164_v28 = vsel %vm2157_vm13, %v2160_v26, %v2163_v6  ;;  %v2042_v49 = vcvt.s32.f32 %v2035_v30 }
 0x207   : > { %v2039_v35 = vor.u32 4788187, %v2038_v62  ;;  %v2178_v57 = vsel %vm2177_vm0, %v2176_v46, 0  ;;  %v2165_v3 = vsel %vm2155_vm8, nan, %v2164_v28  ;;  %v5811_v4 = vmul.f32 0.31415927, %v1117_v43 }
 0x208   : > { %v2330_v47 = vadd.s32 536870912, %v2329_v60  ;;  %v2180_v8 = vand.u32 31, %v2178_v57  ;;  %v2793_v10 = vadd.f32 1.0, %v2165_v3  ;;  %v2173_v16 = vand.u32 8388607, %v2166_v54 }
 0x209   : > { %v2040_v48 = vand.u32 2147483647, %v2039_v35  ;;  %v2049_v29 = vsel %vm5787_vm14, 0, %v2047_v31  ;;  %v2179_v44 = vshrl.u32 %v2178_v57, 5  ;;  %v5833_v37 = vmul.f32 0.31415927, %v1116_v42 }
 0x20a   : > { %v5817_v58 = vshrl.u32 %v2330_v47, 30  ;;  %v2181_v36 = vsub.s32 32, %v2180_v8  ;;  %v2809_v55 = vmul.f32 0.5, %v2793_v10  ;;  %v2183_v21 = vshll.u32 %v6452_v61, %v2180_v8 }
 0x20b   : > { %v2043_v59 = vmul.f32 %v2042_v49, %v2040_v48  ;;  %v2186_v0 = vshll.u32 %v6453_v23, %v2180_v8  ;;  %v2189_v12 = vshll.u32 %v6454_v38, %v2180_v8  ;;  %v2192_v41 = vshll.u32 %v6455_v2, %v2180_v8 }
 0x20c   : > { %v2332_v19 = vshll.u32 %v5817_v58, 30  ;;  %v2184_v39 = vshrl.u32 %v6453_v23, %v2181_v36  ;;  %2863 = vperm.xlu1 %4000, %v2809_v55   ;;  %v2187_v15 = vshrl.u32 %v6454_v38, %v2181_v36  ;;  %v2190_v53 = vshrl.u32 %v6455_v2, %v2181_v36 }
 0x20d   : > { %v2044_v50 = vxor.u32 2147483648, %v2043_v59  ;;  %v2193_v27 = vshrl.u32 %v6457_v32, %v2181_v36  ;;  %v5829_v5 = vand.u32 3, %v2049_v29  ;;  %v2174_v56 = vor.u32 8388608, %v2173_v16 }
 0x20e   : > { %v5831_v17 = vsub.s32 %v2329_v60, %v2332_v19  ;;  %v2182_v34 = vshrl.u32 %v6452_v61, %v2181_v36  ;;  %v2185_v13 = vor.u32 %v2184_v39, %v2183_v21  ;;  %v2195_v9 = vshll.u32 %v6457_v32, %v2180_v8 }
 0x20f   : > { %v2045_v1 = vsel %vm1962_vm11, %v2044_v50, %v2043_v59  ;;  %v2188_v63 = vor.u32 %v2187_v15, %v2186_v0  ;;  %v2191_v14 = vor.u32 %v2190_v53, %v2189_v12  ;;  %v2194_v52 = vor.u32 %v2193_v27, %v2192_v41 }
 0x210   : > { %v2048_v22 = vsel %vm5787_vm14, %v5611_v7, %v2045_v1  ;;  %v2335_v18 = vsub.s32 0, %v5831_v17  ;;  %v2196_v46 = vshrl.u32 %v6458_v33, %v2181_v36  ;;  %vm2198_vm1 = vcmp.lt.s32.totalorder %v2179_v44, 1 }
 0x211   : > { %4101 = vcosq.f32 %v2048_v22  ;;  %vm2271_vm2 = vcmp.lt.s32.totalorder %v5678_v51, 0  ;;  %v2214_v30 = vshll.u32 %v2174_v56, 8  ;;  %v2478_v62 = vand.u32 2139095040, %v5811_v4 }
 0x212   : > { %4103 = vsinq.f32 %v2048_v22  ;;  %v3564_v6 = vmin.u32 %v2335_v18, %v5831_v17  ;;  %v2197_v24 = vor.u32 %v2196_v46, %v2195_v9  ;;  %vm2199_vm4 = vcmp.lt.s32.totalorder %v2179_v44, 2 }
 0x213   : > { %vm2200_vm3 = vcmp.lt.s32.totalorder %v2179_v44, 3  ;;  %vm2201_vm5 = vcmp.lt.s32.totalorder %v2179_v44, 4  ;;  %v2202_v43 = vsel %vm2198_vm1, %v2182_v34, %v2185_v13  ;;  %v2206_v31 = vsel %vm2198_vm1, %v2185_v13, %v2188_v63 }
 0x214   : > { %v2337_v20 = vclz %v3564_v6  ;;  %v2203_v26 = vsel %vm2201_vm5, %v2191_v14, 2102212464  ;;  %vm2054_vm7 = vcmp.lt.s32.totalorder %v5829_v5, 2  ;;  %v2207_v28 = vsel %vm2201_vm5, %v2194_v52, 920167782 }
 0x215   : > { %v2204_v60 = vsel %vm2200_vm3, %v2188_v63, %v2203_v26  ;;  %v2210_v35 = vsel %vm2198_vm1, %v2188_v63, %v2191_v14  ;;  %v2211_v49 = vsel %vm2201_vm5, %v2197_v24, 1326507024  ;;  %vm2052_vm8 = vweird.f32 %v5611_v7 }
 0x216   : > { %v2325_v57 = vadd.s32 %v5777_v45, %v5783_v11  ;;  %v3565_v3 = vadd.s32 4294967294, %v2337_v20  ;;  %v2208_v47 = vsel %vm2200_vm3, %v2191_v14, %v2207_v28  ;;  %v2212_v8 = vsel %vm2200_vm3, %v2194_v52, %v2211_v49 }
 0x217   : > { %v2355_v10 = vsub.s32 4, %v5817_v58  ;;  %v2209_v48 = vsel %vm2199_vm4, %v2206_v31, %v2208_v47  ;;  %v2213_v16 = vsel %vm2199_vm4, %v2210_v35, %v2212_v8  ;;  %v2479_v29 = vshrl.u32 %v2478_v62, 23 }
 0x218   : > { %vm3566_vm11 = vcmp.lt.s32.totalorder %v3565_v3, 0  ;;  %v2205_v36 = vsel %vm2199_vm4, %v2202_v43, %v2204_v60  ;;  %v5858_v55 = vmul.u32.u64.low %v2214_v30, %v2213_v16  ;;  %v5859_v59 = vmul.u32.u64.high %v2214_v30, %v2213_v16, %v5858_v55 }
 0x219   : > { %v2340_v21 = vsel %vm3566_vm11, 0, %v3565_v3  ;;  %v5861_v0 = vmul.u32.u64.low %v2214_v30, %v2209_v48  ;;  %v5862_v42 = vmul.u32.u64.high %v2214_v30, %v2209_v48, %v5861_v0  ;;  %v3571_v45 = vadd.s32 4294967169, %v2479_v29 }
 0x21a   : > { %vm2055_vm9 = vcmp.eq.s32.totalorder %v5829_v5, 0  ;;  %v2341_v11 = vsub.s32 32, %v2340_v21  ;;  %v2342_v19 = vshll.u32 %v5831_v17, %v2340_v21  ;;  %v2345_v39 = vsub.s32 4294967266, %v2340_v21 }
 0x21b   : > { %v4102_v12 = vpop.eup %4101  ;;  %vm2058_vm13 = vcmp.eq.s32.totalorder %v5829_v5, 2  ;;  %v2356_v44 = vsel %vm2271_vm2, %v2355_v10, %v5817_v58  ;;  %v2475_v41 = vand.u32 2147483647, %v5811_v4  ;;  %v2485_v50 = vadd.s32 1, %v3571_v45 }
 0x21c   : > { %v4104_v15 = vpop.eup %4103  ;;  %v2059_v53 = vxor.u32 2147483648, %v4102_v12  ;;  %v2343_v27 = vshrl.u32 %v2325_v57, %v2341_v11  ;;  %v2346_v56 = vadd.s32 127, %v2345_v39  ;;  %v2221_v1 = vmul.u32 %v2214_v30, %v2205_v36 }
 0x21d   : > { %v2056_v34 = vxor.u32 2147483648, %v4104_v15  ;;  %vm2223_vm14 = vc.u32 %v5859_v59, %v5861_v0  ;;  %v2224_v17 = vadd.s32 1, %v5862_v42  ;;  %vm2486_vm15 = vcmp.gt.s32.totalorder %v2485_v50, 0 }
 0x21e   : > { %v2060_v13 = vsel %vm2058_vm13, %v2059_v53, %v4104_v15  ;;  %v2344_v9 = vor.u32 %v2343_v27, %v2342_v19  ;;  %v2347_v22 = vshll.u32 %v2346_v56, 23  ;;  %v2487_v18 = vsel %vm2486_vm15, %v2485_v50, 0 }
 0x21f   : > { %v2057_v58 = vsel %vm2055_vm9, %v4102_v12, %v2056_v34  ;;  %vm5879_vm10 = vcmp.le.f32.partialorder %v2269_v25, 0.7853982  ;;  %v2225_v14 = vsel %vm2223_vm14, %v2224_v17, %v5862_v42  ;;  %v2489_v52 = vand.u32 31, %v2487_v18 }
 0x220   : > { %v2061_v46 = vsel %vm2054_vm7, %v2057_v58, %v2060_v13  ;;  %v2348_v6 = vor.u32 4788187, %v2347_v22  ;;  %v2351_v30 = vcvt.s32.f32 %v2344_v9  ;;  %v2226_v62 = vadd.s32 %v2225_v14, %v2221_v1 }
 0x221   : > { %v2062_v24 = vsel %vm2052_vm8, nan, %v2061_v46  ;;  %v2358_v20 = vsel %vm5879_vm10, 0, %v2356_v44  ;;  %v2482_v25 = vand.u32 8388607, %v2475_v41  ;;  %v2490_v43 = vsub.s32 32, %v2489_v52 }
 0x222   : > { %v2792_v26 = vadd.f32 1.0, %v2062_v24  ;;  %v2349_v31 = vand.u32 2147483647, %v2348_v6  ;;  %v2227_v60 = vadd.s32 536870912, %v2226_v62  ;;  %v2488_v28 = vshrl.u32 %v2487_v18, 5 }
 0x223   : > { %v2492_v5 = vshll.u32 %v6452_v61, %v2489_v52  ;;  %v2493_v35 = vshrl.u32 %v6453_v23, %v2490_v43  ;;  %v2495_v49 = vshll.u32 %v6453_v23, %v2489_v52  ;;  %v2496_v7 = vshrl.u32 %v6454_v38, %v2490_v43 }
 0x224   : > { %v2808_v57 = vmul.f32 0.5, %v2792_v26  ;;  %v2352_v3 = vmul.f32 %v2351_v30, %v2349_v31  ;;  %v5896_v47 = vshrl.u32 %v2227_v60, 30  ;;  %v2501_v8 = vshll.u32 %v6455_v2, %v2489_v52  ;;  %v1119_v26 = vld [vmem:[%s4368_s21 + $0x78] sm:$0xff] }
 0x225   : > { %v5899_v10 = vand.u32 3, %v2358_v20  ;;  %v2498_v48 = vshll.u32 %v6454_v38, %v2489_v52  ;;  %v2499_v16 = vshrl.u32 %v6455_v2, %v2490_v43  ;;  %v2502_v29 = vshrl.u32 %v6457_v32, %v2490_v43 }
 0x226   : > { %2858 = vperm.xlu0 %3999, %v2808_v57   ;;  %v2353_v36 = vxor.u32 2147483648, %v2352_v3  ;;  %v2229_v55 = vshll.u32 %v5896_v47, 30  ;;  %v2483_v21 = vor.u32 8388608, %v2482_v25  ;;  %v2504_v42 = vshll.u32 %v6457_v32, %v2489_v52 }
 0x227   : > { %v2494_v45 = vor.u32 %v2493_v35, %v2492_v5  ;;  %v2497_v11 = vor.u32 %v2496_v7, %v2495_v49  ;;  %v2503_v19 = vor.u32 %v2502_v29, %v2501_v8  ;;  %v2505_v39 = vshrl.u32 %v6458_v33, %v2490_v43 }
 0x228   : > { %v2354_v12 = vsel %vm2271_vm2, %v2353_v36, %v2352_v3  ;;  %v5909_v44 = vsub.s32 %v2226_v62, %v2229_v55  ;;  %v2491_v50 = vshrl.u32 %v6452_v61, %v2490_v43  ;;  %vm2507_vm6 = vcmp.lt.s32.totalorder %v2488_v28, 1 }
 0x229   : > { %v2357_v15 = vsel %vm5879_vm10, %v5678_v51, %v2354_v12  ;;  %v2500_v53 = vor.u32 %v2499_v16, %v2498_v48  ;;  %v2506_v27 = vor.u32 %v2505_v39, %v2504_v42  ;;  %vm2510_vm0 = vcmp.lt.s32.totalorder %v2488_v28, 4 }
 0x22a   : > { %4105 = vcosq.f32 %v2357_v15  ;;  %v2232_v56 = vsub.s32 0, %v5909_v44  ;;  %vm2508_vm1 = vcmp.lt.s32.totalorder %v2488_v28, 2  ;;  %vm2509_vm4 = vcmp.lt.s32.totalorder %v2488_v28, 3 }
 0x22b   : > { %4107 = vsinq.f32 %v2357_v15  ;;  %v2512_v1 = vsel %vm2510_vm0, %v2500_v53, 2102212464  ;;  %v2515_v34 = vsel %vm2507_vm6, %v2494_v45, %v2497_v11  ;;  %v2516_v17 = vsel %vm2510_vm0, %v2503_v19, 920167782 }
 0x22c   : > { %v3560_v13 = vmin.u32 %v2232_v56, %v5909_v44  ;;  %v2511_v9 = vsel %vm2507_vm6, %v2491_v50, %v2494_v45  ;;  %v2513_v22 = vsel %vm2509_vm4, %v2497_v11, %v2512_v1  ;;  %v2517_v18 = vsel %vm2509_vm4, %v2500_v53, %v2516_v17 }
 0x22d   : > { %v2519_v58 = vsel %vm2507_vm6, %v2497_v11, %v2500_v53  ;;  %v2520_v63 = vsel %vm2510_vm0, %v2506_v27, 1326507024  ;;  %vm2168_vm2 = vcmp.lt.s32.totalorder %v5737_v40, 0  ;;  %v2518_v52 = vsel %vm2508_vm1, %v2515_v34, %v2517_v18 }
 0x22e   : > { %v2234_v14 = vclz %v3560_v13  ;;  %v2521_v46 = vsel %vm2509_vm4, %v2503_v19, %v2520_v63  ;;  %vm2361_vm3 = vweird.f32 %v5678_v51  ;;  %vm2363_vm5 = vcmp.lt.s32.totalorder %v5899_v10, 2 }
 0x22f   : > { %v2522_v6 = vsel %vm2508_vm1, %v2519_v58, %v2521_v46  ;;  %v2523_v30 = vshll.u32 %v2483_v21, 8  ;;  %v2375_v62 = vand.u32 2139095040, %v5833_v37  ;;  %vm2364_vm7 = vcmp.eq.s32.totalorder %v5899_v10, 0 }
 0x230   : > { %vm5929_vm8 = vcmp.le.f32.partialorder %v2166_v54, 0.7853982  ;;  %v3561_v20 = vadd.s32 4294967294, %v2234_v14  ;;  %v2252_v25 = vsub.s32 4, %v5896_v47  ;;  %v2514_v43 = vsel %vm2508_vm1, %v2511_v9, %v2513_v22 }
 0x231   : > { %v5936_v31 = vmul.u32.u64.low %v2523_v30, %v2522_v6  ;;  %v5937_v60 = vmul.u32.u64.high %v2523_v30, %v2522_v6, %v5936_v31  ;;  %v5939_v5 = vmul.u32.u64.low %v2523_v30, %v2518_v52  ;;  %v5940_v35 = vmul.u32.u64.high %v2523_v30, %v2518_v52, %v5939_v5 }
 0x232   : > { %vm2367_vm11 = vcmp.eq.s32.totalorder %v5899_v10, 2  ;;  %v2222_v54 = vadd.s32 %v5861_v0, %v5859_v59  ;;  %vm3562_vm9 = vcmp.lt.s32.totalorder %v3561_v20, 0  ;;  %v2376_v49 = vshrl.u32 %v2375_v62, 23 }
 0x233   : > { %v2237_v7 = vsel %vm3562_vm9, 0, %v3561_v20  ;;  %v2530_v57 = vmul.u32 %v2523_v30, %v2514_v43  ;;  %v2372_v3 = vand.u32 2147483647, %v5833_v37  ;;  %v5946_v28 = vmul.f32 0.31415927, %v1119_v26 }
 0x234   : > { %v4106_v8 = vpop.eup %4105  ;;  %v2238_v48 = vsub.s32 32, %v2237_v7  ;;  %v2239_v16 = vshll.u32 %v5909_v44, %v2237_v7  ;;  %v2242_v29 = vsub.s32 4294967266, %v2237_v7  ;;  %v3567_v36 = vadd.s32 4294967169, %v2376_v49 }
 0x235   : > { %v4108_v55 = vpop.eup %4107  ;;  %v2368_v21 = vxor.u32 2147483648, %v4106_v8  ;;  %v2253_v59 = vsel %vm2168_vm2, %v2252_v25, %v5896_v47  ;;  %vm2532_vm13 = vc.u32 %v5937_v60, %v5939_v5  ;;  %v2533_v0 = vadd.s32 1, %v5940_v35 }
 0x236   : > { %v2365_v42 = vxor.u32 2147483648, %v4108_v55  ;;  %v2240_v45 = vshrl.u32 %v2222_v54, %v2238_v48  ;;  %v2243_v11 = vadd.s32 127, %v2242_v29  ;;  %v2382_v19 = vadd.s32 1, %v3567_v36 }
 0x237   : > { %v2369_v39 = vsel %vm2367_vm11, %v2368_v21, %v4108_v55  ;;  %v2534_v12 = vsel %vm2532_vm13, %v2533_v0, %v5940_v35  ;;  %v2379_v44 = vand.u32 8388607, %v2372_v3  ;;  %v2684_v50 = vand.u32 2139095040, %v5946_v28 }
 0x238   : > { %v2366_v47 = vsel %vm2364_vm7, %v4106_v8, %v2365_v42  ;;  %v2241_v15 = vor.u32 %v2240_v45, %v2239_v16  ;;  %v2244_v53 = vshll.u32 %v2243_v11, 23  ;;  %v2535_v27 = vadd.s32 %v2534_v12, %v2530_v57 }
 0x239   : > { %v2370_v56 = vsel %vm2363_vm5, %v2366_v47, %v2369_v39  ;;  %v2255_v1 = vsel %vm5929_vm8, 0, %v2253_v59  ;;  %vm2383_vm14 = vcmp.gt.s32.totalorder %v2382_v19, 0  ;;  %v2380_v18 = vor.u32 8388608, %v2379_v44 }
 0x23a   : > { %v2371_v34 = vsel %vm2361_vm3, nan, %v2370_v56  ;;  %v2245_v17 = vor.u32 4788187, %v2244_v53  ;;  %v2248_v13 = vcvt.s32.f32 %v2241_v15  ;;  %v2536_v9 = vadd.s32 536870912, %v2535_v27 }
 0x23b   : > { %v2795_v22 = vadd.f32 1.0, %v2371_v34  ;;  %v2384_v58 = vsel %vm2383_vm14, %v2382_v19, 0  ;;  %v2685_v46 = vshrl.u32 %v2684_v50, 23  ;;  %v5970_v6 = vand.u32 3, %v2255_v1 }
 0x23c   : > { %v2246_v63 = vand.u32 2147483647, %v2245_v17  ;;  %v5968_v14 = vshrl.u32 %v2536_v9, 30  ;;  %v2386_v52 = vand.u32 31, %v2384_v58  ;;  %v2681_v51 = vand.u32 2147483647, %v5946_v28 }
 0x23d   : > { %v2811_v10 = vmul.f32 0.5, %v2795_v22  ;;  %v5975_v25 = vadd.s32 %v5939_v5, %v5937_v60  ;;  %v5979_v31 = vshll.u32 %v2380_v18, 8  ;;  %v3579_v7 = vadd.s32 4294967169, %v2685_v46 }
 0x23e   : > { %v2249_v30 = vmul.f32 %v2248_v13, %v2246_v63  ;;  %v2538_v62 = vshll.u32 %v5968_v14, 30  ;;  %v2387_v20 = vsub.s32 32, %v2386_v52  ;;  %v2389_v43 = vshll.u32 %v6452_v61, %v2386_v52 }
 0x23f   : > { %2873 = vperm.xlu1 %4000, %v2811_v10   ;;  %v2392_v26 = vshll.u32 %v6453_v23, %v2386_v52  ;;  %v2395_v49 = vshll.u32 %v6454_v38, %v2386_v52  ;;  %v2398_v60 = vshll.u32 %v6455_v2, %v2386_v52  ;;  %v2385_v29 = vshrl.u32 %v2384_v58, 5 }
 0x240   : > { %v2250_v35 = vxor.u32 2147483648, %v2249_v30  ;;  %v5981_v54 = vsub.s32 %v2535_v27, %v2538_v62  ;;  %v2390_v57 = vshrl.u32 %v6453_v23, %v2387_v20  ;;  %v2393_v8 = vshrl.u32 %v6454_v38, %v2387_v20 }
 0x241   : > { %v2396_v48 = vshrl.u32 %v6455_v2, %v2387_v20  ;;  %v2399_v36 = vshrl.u32 %v6457_v32, %v2387_v20  ;;  %v2388_v21 = vshrl.u32 %v6452_v61, %v2387_v20  ;;  %v2688_v45 = vand.u32 8388607, %v2681_v51 }
 0x242   : > { %v2251_v5 = vsel %vm2168_vm2, %v2250_v35, %v2249_v30  ;;  %v2541_v16 = vsub.s32 0, %v5981_v54  ;;  %v2391_v59 = vor.u32 %v2390_v57, %v2389_v43  ;;  %v2394_v0 = vor.u32 %v2393_v8, %v2392_v26 }
 0x243   : > { %v2254_v55 = vsel %vm5929_vm8, %v5737_v40, %v2251_v5  ;;  %v2691_v11 = vadd.s32 1, %v3579_v7  ;;  %v2397_v19 = vor.u32 %v2396_v48, %v2395_v49  ;;  %v2400_v39 = vor.u32 %v2399_v36, %v2398_v60 }
 0x244   : > { %4109 = vcosq.f32 %v2254_v55  ;;  %v3572_v42 = vmin.u32 %v2541_v16, %v5981_v54  ;;  %v2401_v12 = vshll.u32 %v6457_v32, %v2386_v52  ;;  %v2402_v24 = vshrl.u32 %v6458_v33, %v2387_v20 }
 0x245   : > { %4111 = vsinq.f32 %v2254_v55  ;;  %vm2404_vm15 = vcmp.lt.s32.totalorder %v2385_v29, 1  ;;  %vm2405_vm10 = vcmp.lt.s32.totalorder %v2385_v29, 2  ;;  %vm2406_vm6 = vcmp.lt.s32.totalorder %v2385_v29, 3 }
 0x246   : > { %v2543_v44 = vclz %v3572_v42  ;;  %vm2407_vm0 = vcmp.lt.s32.totalorder %v2385_v29, 4  ;;  %v2408_v50 = vsel %vm2404_vm15, %v2388_v21, %v2391_v59  ;;  %v2412_v47 = vsel %vm2404_vm15, %v2391_v59, %v2394_v0 }
 0x247   : > { %vm2260_vm1 = vcmp.lt.s32.totalorder %v5970_v6, 2  ;;  %v2403_v53 = vor.u32 %v2402_v24, %v2401_v12  ;;  %v2409_v27 = vsel %vm2407_vm0, %v2397_v19, 2102212464  ;;  %v2413_v56 = vsel %vm2407_vm0, %v2400_v39, 920167782 }
 0x248   : > { %v3573_v15 = vadd.s32 4294967294, %v2543_v44  ;;  %vm2258_vm4 = vweird.f32 %v5737_v40  ;;  %v2410_v1 = vsel %vm2406_vm6, %v2394_v0, %v2409_v27  ;;  %v2414_v34 = vsel %vm2406_vm6, %v2397_v19, %v2413_v56 }
 0x249   : > { %v2416_v17 = vsel %vm2404_vm15, %v2394_v0, %v2397_v19  ;;  %vm2692_vm2 = vcmp.gt.s32.totalorder %v2691_v11, 0  ;;  %v2411_v13 = vsel %vm2405_vm10, %v2408_v50, %v2410_v1  ;;  %v2415_v9 = vsel %vm2405_vm10, %v2412_v47, %v2414_v34 }
 0x24a   : > { %vm3574_vm3 = vcmp.lt.s32.totalorder %v3573_v15, 0  ;;  %v2417_v22 = vsel %vm2407_vm0, %v2403_v53, 1326507024  ;;  %v6012_v63 = vmul.u32.u64.low %v5979_v31, %v2415_v9  ;;  %v6013_v52 = vmul.u32.u64.high %v5979_v31, %v2415_v9, %v6012_v63 }
 0x24b   : > { %v2546_v18 = vsel %vm3574_vm3, 0, %v3573_v15  ;;  %v2418_v58 = vsel %vm2406_vm6, %v2400_v39, %v2417_v22  ;;  %v2689_v26 = vor.u32 8388608, %v2688_v45  ;;  %v2693_v35 = vsel %vm2692_vm2, %v2691_v11, 0 }
 0x24c   : > { %v2547_v46 = vsub.s32 32, %v2546_v18  ;;  %v2548_v10 = vshll.u32 %v5981_v54, %v2546_v18  ;;  %v2551_v30 = vsub.s32 4294967266, %v2546_v18  ;;  %v2419_v62 = vsel %vm2405_vm10, %v2416_v17, %v2418_v58 }
 0x24d   : > { %v6019_v20 = vmul.u32.u64.low %v5979_v31, %v2419_v62  ;;  %v6020_v43 = vmul.u32.u64.high %v5979_v31, %v2419_v62, %v6019_v20  ;;  %vm2264_vm5 = vcmp.eq.s32.totalorder %v5970_v6, 2  ;;  %v2695_v8 = vand.u32 31, %v2693_v35 }
 0x24e   : > { %v4110_v49 = vpop.eup %4109  ;;  %v2549_v7 = vshrl.u32 %v5975_v25, %v2547_v46  ;;  %v2552_v57 = vadd.s32 127, %v2551_v30  ;;  %vm2261_vm7 = vcmp.eq.s32.totalorder %v5970_v6, 0  ;;  %vm2477_vm8 = vcmp.lt.s32.totalorder %v5811_v4, 0 }
 0x24f   : > { %v4112_v48 = vpop.eup %4111  ;;  %v2265_v54 = vxor.u32 2147483648, %v4110_v49  ;;  %v2427_v60 = vmul.u32 %v5979_v31, %v2411_v13  ;;  %v2430_v5 = vadd.s32 1, %v6013_v52  ;;  %v2696_v55 = vsub.s32 32, %v2695_v8 }
 0x250   : > { %v2262_v16 = vxor.u32 2147483648, %v4112_v48  ;;  %v2550_v29 = vor.u32 %v2549_v7, %v2548_v10  ;;  %v2553_v36 = vshll.u32 %v2552_v57, 23  ;;  %vm6030_vm11 = vcmp.le.f32.partialorder %v2475_v41, 0.7853982 }
 0x251   : > { %v2266_v21 = vsel %vm2264_vm5, %v2265_v54, %v4112_v48  ;;  %vm2429_vm9 = vc.u32 %v6020_v43, %v6012_v63  ;;  %v6036_v59 = vshll.u32 %v2689_v26, 8  ;;  %v2561_v19 = vsub.s32 4, %v5968_v14 }
 0x252   : > { %v2263_v0 = vsel %vm2261_vm7, %v4110_v49, %v2262_v16  ;;  %v2554_v31 = vor.u32 4788187, %v2553_v36  ;;  %v2557_v42 = vcvt.s32.f32 %v2550_v29  ;;  %v2431_v45 = vsel %vm2429_vm9, %v2430_v5, %v6013_v52 }
 0x253   : > { %v2267_v11 = vsel %vm2260_vm1, %v2263_v0, %v2266_v21  ;;  %v2432_v39 = vadd.s32 %v2431_v45, %v2427_v60  ;;  %v2698_v41 = vshll.u32 %v6452_v61, %v2695_v8  ;;  %v2699_v24 = vshrl.u32 %v6453_v23, %v2696_v55 }
 0x254   : > { %v2268_v12 = vsel %vm2258_vm4, nan, %v2267_v11  ;;  %v2555_v44 = vand.u32 2147483647, %v2554_v31  ;;  %v2701_v50 = vshll.u32 %v6453_v23, %v2695_v8  ;;  %v2702_v53 = vshrl.u32 %v6454_v38, %v2696_v55 }
 0x255   : > { %v2794_v47 = vadd.f32 1.0, %v2268_v12  ;;  %v2433_v15 = vadd.s32 536870912, %v2432_v39  ;;  %v2704_v6 = vshll.u32 %v6454_v38, %v2695_v8  ;;  %v2694_v56 = vshrl.u32 %v2693_v35, 5 }
 0x256   : > { %v2558_v27 = vmul.f32 %v2557_v42, %v2555_v44  ;;  %v2705_v1 = vshrl.u32 %v6455_v2, %v2696_v55  ;;  %v2707_v34 = vshll.u32 %v6455_v2, %v2695_v8  ;;  %v2708_v13 = vshrl.u32 %v6457_v32, %v2696_v55 }
 0x257   : > { %v2810_v17 = vmul.f32 0.5, %v2794_v47  ;;  %v6051_v40 = vshrl.u32 %v2433_v15, 30  ;;  %v2710_v9 = vshll.u32 %v6457_v32, %v2695_v8  ;;  %v2562_v18 = vsel %vm2477_vm8, %v2561_v19, %v5968_v14  ;;  %v1118_v8 = vld [vmem:[%s4368_s21 + $0x70] sm:$0xff] }
 0x258   : > { %v2559_v22 = vxor.u32 2147483648, %v2558_v27  ;;  %v2697_v58 = vshrl.u32 %v6452_v61, %v2696_v55  ;;  %v2711_v52 = vshrl.u32 %v6458_v33, %v2696_v55  ;;  %v2700_v10 = vor.u32 %v2699_v24, %v2698_v41 }
 0x259   : > { %2868 = vperm.xlu0 %3999, %v2810_v17   ;;  %v2435_v46 = vshll.u32 %v6051_v40, 30  ;;  %v2703_v30 = vor.u32 %v2702_v53, %v2701_v50  ;;  %v2706_v62 = vor.u32 %v2705_v1, %v2704_v6  ;;  %v2709_v26 = vor.u32 %v2708_v13, %v2707_v34 }
 0x25a   : > { %v2560_v20 = vsel %vm2477_vm8, %v2559_v22, %v2558_v27  ;;  %v2712_v35 = vor.u32 %v2711_v52, %v2710_v9  ;;  %vm2713_vm13 = vcmp.lt.s32.totalorder %v2694_v56, 1  ;;  %v2564_v49 = vsel %vm6030_vm11, 0, %v2562_v18 }
 0x25b   : > { %v2563_v14 = vsel %vm6030_vm11, %v5811_v4, %v2560_v20  ;;  %v2436_v7 = vsub.s32 %v2432_v39, %v2435_v46  ;;  %vm2716_vm14 = vcmp.lt.s32.totalorder %v2694_v56, 4  ;;  %vm2714_vm15 = vcmp.lt.s32.totalorder %v2694_v56, 2 }
 0x25c   : > { %4113 = vcosq.f32 %v2563_v14  ;;  %vm2715_vm10 = vcmp.lt.s32.totalorder %v2694_v56, 3  ;;  %v2718_v57 = vsel %vm2716_vm14, %v2706_v62, 2102212464  ;;  %v2717_v54 = vsel %vm2713_vm13, %v2697_v58, %v2700_v10 }
 0x25d   : > { %4115 = vsinq.f32 %v2563_v14  ;;  %v2438_v48 = vsub.s32 0, %v2436_v7  ;;  %v2721_v60 = vsel %vm2713_vm13, %v2700_v10, %v2703_v30  ;;  %v2719_v5 = vsel %vm2715_vm10, %v2703_v30, %v2718_v57 }
 0x25e   : > { %v2722_v16 = vsel %vm2716_vm14, %v2709_v26, 920167782  ;;  %v2725_v29 = vsel %vm2713_vm13, %v2703_v30, %v2706_v62  ;;  %v2726_v36 = vsel %vm2716_vm14, %v2712_v35, 1326507024  ;;  %v6072_v21 = vmul.f32 0.31415927, %v1118_v8 }
 0x25f   : > { %v3568_v55 = vmin.u32 %v2438_v48, %v2436_v7  ;;  %v2568_v25 = vand.u32 3, %v2564_v49  ;;  %v2723_v0 = vsel %vm2715_vm10, %v2706_v62, %v2722_v16  ;;  %v2727_v31 = vsel %vm2715_vm10, %v2709_v26, %v2726_v36 }
 0x260   : > { %v2720_v45 = vsel %vm2714_vm15, %v2717_v54, %v2719_v5  ;;  %v2724_v11 = vsel %vm2714_vm15, %v2721_v60, %v2723_v0  ;;  %v2728_v19 = vsel %vm2714_vm15, %v2725_v29, %v2727_v31  ;;  %v2581_v50 = vand.u32 2139095040, %v6072_v21 }
 0x261   : > { %v2440_v42 = vclz %v3568_v55  ;;  %v6078_v39 = vmul.u32.u64.low %v6036_v59, %v2728_v19  ;;  %v6079_v41 = vmul.u32.u64.high %v6036_v59, %v2728_v19, %v6078_v39  ;;  %vm2567_vm6 = vweird.f32 %v5811_v4 }
 0x262   : > { %v6082_v12 = vmul.u32.u64.low %v6036_v59, %v2724_v11  ;;  %v6083_v44 = vmul.u32.u64.high %v6036_v59, %v2724_v11, %v6082_v12  ;;  %vm2569_vm0 = vcmp.lt.s32.totalorder %v2568_v25, 2  ;;  %vm2570_vm1 = vcmp.eq.s32.totalorder %v2568_v25, 0 }
 0x263   : > { %v3569_v24 = vadd.s32 4294967294, %v2440_v42  ;;  %v2428_v47 = vadd.s32 %v6012_v63, %v6020_v43  ;;  %v2736_v15 = vmul.u32 %v6036_v59, %v2720_v45  ;;  %v2582_v53 = vshrl.u32 %v2581_v50, 23 }
 0x264   : > { %vm2573_vm2 = vcmp.eq.s32.totalorder %v2568_v25, 2  ;;  %vm2738_vm3 = vc.u32 %v6079_v41, %v6082_v12  ;;  %v2739_v56 = vadd.s32 1, %v6083_v44  ;;  %v2578_v43 = vand.u32 2147483647, %v6072_v21 }
 0x265   : > { %vm3570_vm4 = vcmp.lt.s32.totalorder %v3569_v24, 0  ;;  %v3575_v59 = vadd.s32 4294967169, %v2582_v53  ;;  %v2458_v49 = vsub.s32 4, %v6051_v40  ;;  %vm2374_vm7 = vcmp.lt.s32.totalorder %v5833_v37, 0 }
 0x266   : > { %v4114_v6 = vpop.eup %4113  ;;  %v2443_v27 = vsel %vm3570_vm4, 0, %v3569_v24  ;;  %v2740_v63 = vsel %vm2738_vm3, %v2739_v56, %v6083_v44  ;;  %vm6112_vm8 = vcmp.le.f32.partialorder %v2372_v3, 0.7853982  ;;  %v2737_v24 = vadd.s32 %v6082_v12, %v6079_v41 }
 0x267   : > { %v4116_v1 = vpop.eup %4115  ;;  %v2574_v34 = vxor.u32 2147483648, %v4114_v6  ;;  %v2444_v17 = vsub.s32 32, %v2443_v27  ;;  %v2445_v13 = vshll.u32 %v2436_v7, %v2443_v27  ;;  %v2448_v9 = vsub.s32 4294967266, %v2443_v27 }
 0x268   : > { %v2571_v22 = vxor.u32 2147483648, %v4116_v1  ;;  %v2741_v46 = vadd.s32 %v2740_v63, %v2736_v15  ;;  %v2588_v30 = vadd.s32 1, %v3575_v59  ;;  %v2585_v7 = vand.u32 8388607, %v2578_v43 }
 0x269   : > { %v2575_v18 = vsel %vm2573_vm2, %v2574_v34, %v4116_v1  ;;  %v2446_v58 = vshrl.u32 %v2428_v47, %v2444_v17  ;;  %v2449_v52 = vadd.s32 127, %v2448_v9  ;;  %v2459_v4 = vsel %vm2374_vm7, %v2458_v49, %v6051_v40 }
 0x26a   : > { %v2572_v10 = vsel %vm2570_vm1, %v4114_v6, %v2571_v22  ;;  %v2742_v35 = vadd.s32 536870912, %v2741_v46  ;;  %vm2589_vm5 = vcmp.gt.s32.totalorder %v2588_v30, 0  ;;  %v2586_v0 = vor.u32 8388608, %v2585_v7 }
 0x26b   : > { %v2576_v62 = vsel %vm2569_vm0, %v2572_v10, %v2575_v18  ;;  %v2447_v20 = vor.u32 %v2446_v58, %v2445_v13  ;;  %v2450_v26 = vshll.u32 %v2449_v52, 23  ;;  %v2590_v60 = vsel %vm2589_vm5, %v2588_v30, 0 }
 0x26c   : > { %v2577_v14 = vsel %vm2567_vm6, nan, %v2576_v62  ;;  %v6103_v54 = vshrl.u32 %v2742_v35, 30  ;;  %v2592_v36 = vand.u32 31, %v2590_v60  ;;  %v2461_v40 = vsel %vm6112_vm8, 0, %v2459_v4 }
 0x26d   : > { %v2797_v57 = vadd.f32 1.0, %v2577_v14  ;;  %v2451_v8 = vor.u32 4788187, %v2450_v26  ;;  %v2454_v48 = vcvt.s32.f32 %v2447_v20  ;;  %v2591_v6 = vshrl.u32 %v2590_v60, 5 }
 0x26e   : > { %v2744_v29 = vshll.u32 %v6103_v54, 30  ;;  %v2593_v42 = vsub.s32 32, %v2592_v36  ;;  %v2595_v45 = vshll.u32 %v6452_v61, %v2592_v36  ;;  %v2598_v11 = vshll.u32 %v6453_v23, %v2592_v36 }
 0x26f   : > { %v2813_v5 = vmul.f32 0.5, %v2797_v57  ;;  %v2452_v16 = vand.u32 2147483647, %v2451_v8  ;;  %v2601_v44 = vshll.u32 %v6454_v38, %v2592_v36  ;;  %v6128_v27 = vshll.u32 %v2586_v0, 8 }
 0x270   : > { %v2745_v25 = vsub.s32 %v2741_v46, %v2744_v29  ;;  %v2596_v3 = vshrl.u32 %v6453_v23, %v2593_v42  ;;  %v2599_v50 = vshrl.u32 %v6454_v38, %v2593_v42  ;;  %v2602_v47 = vshrl.u32 %v6455_v2, %v2593_v42 }
 0x271   : > { %2883 = vperm.xlu1 %4000, %v2813_v5   ;;  %v2455_v55 = vmul.f32 %v2454_v48, %v2452_v16  ;;  %v2594_v1 = vshrl.u32 %v6452_v61, %v2593_v42  ;;  %v2604_v34 = vshll.u32 %v6455_v2, %v2592_v36  ;;  %v2605_v17 = vshrl.u32 %v6457_v32, %v2593_v42 }
 0x272   : > { %v2747_v39 = vsub.s32 0, %v2745_v25  ;;  %v2597_v41 = vor.u32 %v2596_v3, %v2595_v45  ;;  %v2600_v12 = vor.u32 %v2599_v50, %v2598_v11  ;;  %v2603_v38 = vor.u32 %v2602_v47, %v2601_v44 }
 0x273   : > { %v2456_v19 = vxor.u32 2147483648, %v2455_v55  ;;  %v2607_v13 = vshll.u32 %v6457_v32, %v2592_v36  ;;  %v2608_v9 = vshrl.u32 %v6458_v33, %v2593_v42  ;;  %vm2610_vm11 = vcmp.lt.s32.totalorder %v2591_v6, 1 }
 0x274   : > { %v3580_v53 = vmin.u32 %v2747_v39, %v2745_v25  ;;  %vm2611_vm9 = vcmp.lt.s32.totalorder %v2591_v6, 2  ;;  %vm2612_vm13 = vcmp.lt.s32.totalorder %v2591_v6, 3  ;;  %v2606_v63 = vor.u32 %v2605_v17, %v2604_v34 }
 0x275   : > { %v2457_v15 = vsel %vm2374_vm7, %v2456_v19, %v2455_v55  ;;  %v2609_v61 = vor.u32 %v2608_v9, %v2607_v13  ;;  %vm2613_vm14 = vcmp.lt.s32.totalorder %v2591_v6, 4  ;;  %v2614_v59 = vsel %vm2610_vm11, %v2594_v1, %v2597_v41 }
 0x276   : > { %v2460_v56 = vsel %vm6112_vm8, %v5833_v37, %v2457_v15  ;;  %v2749_v23 = vclz %v3580_v53  ;;  %v2615_v18 = vsel %vm2613_vm14, %v2603_v38, 2102212464  ;;  %v2618_v58 = vsel %vm2610_vm11, %v2597_v41, %v2600_v12 }
 0x277   : > { %4117 = vcosq.f32 %v2460_v56  ;;  %v2622_v52 = vsel %vm2610_vm11, %v2600_v12, %v2603_v38  ;;  %v2616_v46 = vsel %vm2612_vm13, %v2600_v12, %v2615_v18  ;;  %v2619_v10 = vsel %vm2613_vm14, %v2606_v63, 920167782  ;;  %v6165_v12 = vpop.f32.mrb[8].mxu1 }
 0x278   : > { %4119 = vsinq.f32 %v2460_v56  ;;  %v3581_v22 = vadd.s32 4294967294, %v2749_v23  ;;  %v2623_v30 = vsel %vm2613_vm14, %v2609_v61, 1326507024  ;;  %v2465_v32 = vand.u32 3, %v2461_v40 }
 0x279   : > { %v2617_v26 = vsel %vm2611_vm9, %v2614_v59, %v2616_v46  ;;  %v2620_v35 = vsel %vm2612_vm13, %v2603_v38, %v2619_v10  ;;  %v2624_v14 = vsel %vm2612_vm13, %v2606_v63, %v2623_v30  ;;  %vm2464_vm1 = vweird.f32 %v5833_v37  ;;  %v6170_v38 = vpop.f32.mrb[9].mxu1  ;;  %v6187_v37 = vld [vmem:[%s6350_s7] ss:$0 sm:$0xff] }
 0x27a   : > { %vm3582_vm15 = vcmp.lt.s32.totalorder %v3581_v22, 0  ;;  %v2621_v57 = vsel %vm2611_vm9, %v2618_v58, %v2620_v35  ;;  %v2625_v8 = vsel %vm2611_vm9, %v2622_v52, %v2624_v14  ;;  %vm2470_vm10 = vcmp.eq.s32.totalorder %v2465_v32, 2 }
 0x27b   : > { %v2752_v2 = vsel %vm3582_vm15, 0, %v3581_v22  ;;  %v6145_v48 = vmul.u32.u64.low %v6128_v27, %v2625_v8  ;;  %v6146_v60 = vmul.u32.u64.high %v6128_v27, %v2625_v8, %v6145_v48  ;;  %vm2466_vm6 = vcmp.lt.s32.totalorder %v2465_v32, 2 }
 0x27c   : > { %v2753_v62 = vsub.s32 32, %v2752_v2  ;;  %v2754_v33 = vshll.u32 %v2745_v25, %v2752_v2  ;;  %v2757_v20 = vsub.s32 4294967266, %v2752_v2  ;;  %vm2467_vm0 = vcmp.eq.s32.totalorder %v2465_v32, 0  ;;  %v6177_v48 = vpop.permute.xlu1 %2828 }
 0x27d   : > { %v6149_v5 = vmul.u32.u64.low %v6128_v27, %v2621_v57  ;;  %v6150_v16 = vmul.u32.u64.high %v6128_v27, %v2621_v57, %v6149_v5  ;;  %v2633_v45 = vmul.u32 %v6128_v27, %v2617_v26  ;;  %vm2683_vm2 = vcmp.lt.s32.totalorder %v5946_v28, 0 }
 0x27e   : > { %v2755_v49 = vshrl.u32 %v2737_v24, %v2753_v62  ;;  %v2758_v7 = vadd.s32 127, %v2757_v20  ;;  %vm6160_vm3 = vcmp.le.f32.partialorder %v2681_v51, 0.7853982  ;;  %v2767_v6 = vsub.s32 4, %v6103_v54 }
 0x27f   : > { %vm2635_vm4 = vc.u32 %v6146_v60, %v6149_v5  ;;  %v2636_v19 = vadd.s32 1, %v6150_v16  ;;  %vm2773_vm9 = vweird.f32 %v5946_v28  ;;  %vm2580_vm13 = vcmp.lt.s32.totalorder %v6072_v21, 0 }
 0x280   : > { %v2756_v4 = vor.u32 %v2755_v49, %v2754_v33  ;;  %v2759_v36 = vshll.u32 %v2758_v7, 23  ;;  %v2768_v51 = vsel %vm2683_vm2, %v2767_v6, %v6103_v54  ;;  %v2634_v54 = vadd.s32 %v6149_v5, %v6146_v60 }
 0x281   : > { %v4118_v29 = vpop.eup %4117  ;;  %v2637_v24 = vsel %vm2635_vm4, %v2636_v19, %v6150_v16  ;;  %v2770_v13 = vsel %vm6160_vm3, 0, %v2768_v51  ;;  %vm2579_vm14 = vcmp.le.f32.partialorder %v2578_v43, 0.7853982 }
 0x282   : > { %v4120_v55 = vpop.eup %4119  ;;  %v2471_v25 = vxor.u32 2147483648, %v4118_v29  ;;  %v2760_v31 = vor.u32 4788187, %v2759_v36  ;;  %v2763_v42 = vcvt.s32.f32 %v2756_v4  ;;  %v2638_v47 = vadd.s32 %v2637_v24, %v2633_v45  ;;  %v2834_v4 = vpop.permute.xlu1 %2833 }
 0x283   : > { %v2468_v0 = vxor.u32 2147483648, %v4120_v55  ;;  %v2774_v22 = vand.u32 3, %v2770_v13  ;;  %v3745_v13 = vpop.f32.mrb[10].mxu1 }
 0x284   : > { %v2472_v11 = vsel %vm2470_vm10, %v2471_v25, %v4120_v55  ;;  %v2761_v39 = vand.u32 2147483647, %v2760_v31  ;;  %v2639_v27 = vadd.s32 536870912, %v2638_v47 }
 0x285   : > { %v2469_v40 = vsel %vm2467_vm0, %v4118_v29, %v2468_v0  ;;  %vm2779_vm5 = vcmp.eq.s32.totalorder %v2774_v22, 2  ;;  %vm2776_vm7 = vcmp.eq.s32.totalorder %v2774_v22, 0  ;;  %vm2775_vm8 = vcmp.lt.s32.totalorder %v2774_v22, 2  ;;  %v2819_v29 = vpop.permute.xlu0 %2818 }
 0x286   : > { %v2473_v44 = vsel %vm2466_vm6, %v2469_v40, %v2472_v11  ;;  %v2764_v50 = vmul.f32 %v2763_v42, %v2761_v39  ;;  %v2640_v41 = vshrl.u32 %v2639_v27, 30  ;;  %v2844_v45 = vpop.permute.xlu1 %2843  ;;  %vm2670_vm0 = vweird.f32 %v6072_v21 }
 0x287   : > { %v2474_v3 = vsel %vm2464_vm1, nan, %v2473_v44  ;;  %v1041_v22 = vadd.f32 %v3745_v13, %v6187_v37 }
 0x288   : > { %v2796_v15 = vadd.f32 1.0, %v2474_v3  ;;  %v2765_v53 = vxor.u32 2147483648, %v2764_v50  ;;  %v2641_v34 = vshll.u32 %v2640_v41, 30  ;;  %v2664_v55 = vsub.s32 4, %v2640_v41 }
 0x289   : > { %v2824_v42 = vpop.permute.xlu0 %2823 }
 0x28a   : > { %v2812_v56 = vmul.f32 0.5, %v2796_v15  ;;  %v2766_v1 = vsel %vm2683_vm2, %v2765_v53, %v2764_v50  ;;  %v2642_v17 = vsub.s32 %v2638_v47, %v2641_v34  ;;  %v2665_v31 = vsel %vm2580_vm13, %v2664_v55, %v2640_v41  ;;  %v2854_v39 = vpop.permute.xlu1 %2853 }
 0x28b   : > { %v2769_v23 = vsel %vm6160_vm3, %v5946_v28, %v2766_v1  ;;  %v2667_v11 = vsel %vm2579_vm14, 0, %v2665_v31  ;;  %v1026_v1 = vadd.f32 %v6187_v37, %v6170_v38 }
 0x28c   : > { %2878 = vperm.xlu0 %3999, %v2812_v56   ;;  %4121 = vcosq.f32 %v2769_v23  ;;  %v2644_v9 = vsub.s32 0, %v2642_v17  ;;  %v2671_v19 = vand.u32 3, %v2667_v11  ;;  %v1031_v56 = vadd.f32 %v6165_v12, %v6187_v37 }
 0x28d   : > { %4123 = vsinq.f32 %v2769_v23  ;;  %v2839_v40 = vpop.permute.xlu0 %2838 }
 0x28e   : > { %v3576_v63 = vmin.u32 %v2644_v9, %v2642_v17  ;;  %vm2676_vm15 = vcmp.eq.s32.totalorder %v2671_v19, 2  ;;  %vm2673_vm10 = vcmp.eq.s32.totalorder %v2671_v19, 0  ;;  %vm2672_vm6 = vcmp.lt.s32.totalorder %v2671_v19, 2  ;;  %v2864_v15 = vpop.permute.xlu1 %2863 }
 0x28f   : > { %v2897_v34 = vmul.f32 %v2824_v42, %v1031_v56  ;;  %v2896_v9 = vmul.f32 %v2819_v29, %v1026_v1 }
 0x290   : > { %v2646_v61 = vclz %v3576_v63 }
 0x291   : > { %v2849_v47 = vpop.permute.xlu0 %2848 }
 0x292   : > { %v3577_v18 = vadd.s32 4294967294, %v2646_v61  ;;  %v1035_v61 = vpop.f32.mrb[11].mxu1 }
 0x294   : > { %vm3578_vm11 = vcmp.lt.s32.totalorder %v3577_v18, 0 }
 0x295   : > { %v2649_v10 = vsel %vm3578_vm11, 0, %v3577_v18  ;;  %v1036_v18 = vadd.f32 %v6187_v37, %v1035_v61 }
 0x296   : > { %v4122_v59 = vpop.eup %4121  ;;  %v2650_v32 = vsub.s32 32, %v2649_v10  ;;  %v2651_v62 = vshll.u32 %v2642_v17, %v2649_v10  ;;  %v2654_v33 = vsub.s32 4294967266, %v2649_v10  ;;  %v3774_v17 = vpop.f32.mrb[8].mxu0 }
 0x297   : > { %v4124_v58 = vpop.eup %4123  ;;  %v2780_v52 = vxor.u32 2147483648, %v4122_v59  ;;  %v3047_v63 = vpop.f32.mrb[9].mxu0  ;;  %v2898_v10 = vmul.f32 %v6177_v48, %v1036_v18 }
 0x298   : > { %v2777_v2 = vxor.u32 2147483648, %v4124_v58  ;;  %v2652_v35 = vshrl.u32 %v2634_v54, %v2650_v32  ;;  %v2655_v14 = vadd.s32 127, %v2654_v33  ;;  %v3126_v12 = vmul.f32 %v3047_v63, %v2896_v9  ;;  %v3777_v38 = vpop.f32.mrb[10].mxu0 }
 0x299   : > { %v2781_v46 = vsel %vm2779_vm5, %v2780_v52, %v4124_v58  ;;  %v3748_v58 = vpop.f32.mrb[12].mxu1  ;;  %v2899_v52 = vmul.f32 %v2834_v4, %v1041_v22  ;;  %v3057_v54 = vpop.f32.mrb[11].mxu0 }
 0x29a   : > { %v2778_v30 = vsel %vm2776_vm7, %v4122_v59, %v2777_v2  ;;  %v2653_v7 = vor.u32 %v2652_v35, %v2651_v62  ;;  %v2656_v57 = vshll.u32 %v2655_v14, 23  ;;  %v3127_v59 = vmul.f32 %v3774_v17, %v2897_v34  ;;  %3142 = vst.msk [vmem:[%s6197_s27] sm:$0xff] %vm910_vm12, %v3126_v12  ;;  %v3780_v32 = vpop.f32.mrb[12].mxu0 }
 0x29b   : > { %v2782_v20 = vsel %vm2775_vm8, %v2778_v30, %v2781_v46  ;;  %v1051_v2 = vadd.f32 %v3748_v58, %v6187_v37  ;;  %v1045_v46 = vpop.f32.mrb[13].mxu1  ;;  %v3129_v33 = vmul.f32 %v3777_v38, %v2899_v52  ;;  %v3067_v35 = vpop.f32.mrb[13].mxu0 }
 0x29c   : > { %v2783_v26 = vsel %vm2773_vm9, nan, %v2782_v20  ;;  %v2657_v60 = vor.u32 4788187, %v2656_v57  ;;  %v2660_v5 = vcvt.s32.f32 %v2653_v7  ;;  %3143 = vst.msk [vmem:[%s6197_s27 + $0x8] sm:$0xff] %vm910_vm12, %v3127_v59  ;;  %v1046_v30 = vadd.f32 %v6187_v37, %v1045_v46  ;;  %v3751_v62 = vpop.f32.mrb[14].mxu1 }
 0x29d   : > { %v2799_v49 = vadd.f32 1.0, %v2783_v26  ;;  %v2901_v20 = vmul.f32 %v2844_v45, %v1051_v2  ;;  %v1061_v26 = vadd.f32 %v3751_v62, %v6187_v37  ;;  %v1055_v14 = vpop.f32.mrb[15].mxu1  ;;  %3145 = vst.msk [vmem:[%s6197_s27 + $0x18] sm:$0xff] %vm910_vm12, %v3129_v33 }
 0x29e   : > { %v2658_v28 = vand.u32 2147483647, %v2657_v60  ;;  %v2900_v7 = vmul.f32 %v2839_v40, %v1046_v30  ;;  %v1056_v57 = vadd.f32 %v6187_v37, %v1055_v14  ;;  %v3754_v60 = vpop.f32.mrb[16].mxu1 }
 0x29f   : > { %v2815_v8 = vmul.f32 0.5, %v2799_v49  ;;  %v3128_v49 = vmul.f32 %v3057_v54, %v2898_v10  ;;  %v3131_v48 = vmul.f32 %v3780_v32, %v2901_v20  ;;  %v1065_v29 = vpop.f32.mrb[17].mxu1 }
 0x2a0   : > { %v2661_v16 = vmul.f32 %v2660_v5, %v2658_v28  ;;  %v2903_v5 = vmul.f32 %v2854_v39, %v1061_v26  ;;  %v1071_v28 = vadd.f32 %v3754_v60, %v6187_v37  ;;  %v3130_v4 = vmul.f32 %v3067_v35, %v2900_v7 }
 0x2a1   : > { %2893 = vperm.xlu1 %4000, %v2815_v8   ;;  %v3783_v8 = vpop.f32.mrb[14].mxu0  ;;  %3144 = vst.msk [vmem:[%s6197_s27 + $0x10] sm:$0xff] %vm910_vm12, %v3128_v49  ;;  %v1066_v55 = vadd.f32 %v6187_v37, %v1065_v29  ;;  %3147 = vst.msk [vmem:[%s6197_s27 + $0x28] sm:$0xff] %vm910_vm12, %v3131_v48 }
 0x2a2   : > { %v2662_v36 = vxor.u32 2147483648, %v2661_v16  ;;  %v3133_v31 = vmul.f32 %v3783_v8, %v2903_v5  ;;  %v2905_v42 = vmul.f32 %v2864_v15, %v1071_v28  ;;  %3146 = vst.msk [vmem:[%s6197_s27 + $0x20] sm:$0xff] %vm910_vm12, %v3130_v4 }
 0x2a4   : > { %v2663_v25 = vsel %vm2580_vm13, %v2662_v36, %v2661_v16  ;;  %v3077_v16 = vpop.f32.mrb[15].mxu0  ;;  %v2902_v36 = vmul.f32 %v2849_v47, %v1056_v57  ;;  %3149 = vst.msk [vmem:[%s6197_s27 + $0x38] sm:$0xff] %vm910_vm12, %v3133_v31 }
 0x2a5   : > { %v2666_v0 = vsel %vm2579_vm14, %v6072_v21, %v2663_v25  ;;  %v2859_v21 = vpop.permute.xlu0 %2858  ;;  %v3786_v25 = vpop.f32.mrb[16].mxu0 }
 0x2a6   : > { %4125 = vcosq.f32 %v2666_v0  ;;  %v3087_v11 = vpop.f32.mrb[17].mxu0  ;;  %v3132_v40 = vmul.f32 %v3077_v16, %v2902_v36  ;;  %v2904_v39 = vmul.f32 %v2859_v21, %v1066_v55 }
 0x2a7   : > { %4127 = vsinq.f32 %v2666_v0  ;;  %v3757_v0 = vpop.f32.mrb[18].mxu1 }
 0x2a8   : > { %v1081_v45 = vadd.f32 %v3757_v0, %v6187_v37  ;;  %v1075_v19 = vpop.f32.mrb[19].mxu1  ;;  %3148 = vst.msk [vmem:[%s6197_s27 + $0x30] sm:$0xff] %vm910_vm12, %v3132_v40  ;;  %v3134_v15 = vmul.f32 %v3087_v11, %v2904_v39 }
 0x2a9   : > { %v1076_v21 = vadd.f32 %v6187_v37, %v1075_v19 }
 0x2aa   : > { %3150 = vst.msk [vmem:[%s6197_s27 + $0x40] sm:$0xff] %vm910_vm12, %v3134_v15 }
 0x2b0   : > { %v4126_v44 = vpop.eup %4125 }
 0x2b1   : > { %v4128_v24 = vpop.eup %4127  ;;  %v2677_v3 = vxor.u32 2147483648, %v4126_v44 }
 0x2b2   : > { %v2674_v43 = vxor.u32 2147483648, %v4128_v24 }
 0x2b3   : > { %v2678_v50 = vsel %vm2676_vm15, %v2677_v3, %v4128_v24  ;;  %v3760_v24 = vpop.f32.mrb[20].mxu1  ;;  %v3135_v3 = vmul.f32 %v3786_v25, %v2905_v42 }
 0x2b4   : > { %v2675_v53 = vsel %vm2673_vm10, %v4126_v44, %v2674_v43  ;;  %v3789_v44 = vpop.f32.mrb[18].mxu0  ;;  %v1085_v47 = vpop.f32.mrb[21].mxu1  ;;  %v1091_v13 = vadd.f32 %v3760_v24, %v6187_v37 }
 0x2b5   : > { %v2679_v6 = vsel %vm2672_vm6, %v2675_v53, %v2678_v50  ;;  %v3097_v50 = vpop.f32.mrb[19].mxu0  ;;  %3151 = vst.msk [vmem:[%s6197_s27 + $0x48] sm:$0xff] %vm910_vm12, %v3135_v3  ;;  %v1086_v61 = vadd.f32 %v6187_v37, %v1085_v47 }
 0x2b6   : > { %v2680_v27 = vsel %vm2670_vm0, nan, %v2679_v6  ;;  %v3792_v53 = vpop.f32.mrb[20].mxu0  ;;  %v3763_v6 = vpop.f32.mrb[22].mxu1 }
 0x2b7   : > { %v2798_v41 = vadd.f32 1.0, %v2680_v27  ;;  %v3107_v56 = vpop.f32.mrb[21].mxu0  ;;  %v1095_v1 = vpop.f32.mrb[23].mxu1  ;;  %v1101_v38 = vadd.f32 %v3763_v6, %v6187_v37 }
 0x2b8   : > { %v1096_v54 = vadd.f32 %v6187_v37, %v1095_v1 }
 0x2b9   : > { %v2814_v23 = vmul.f32 0.5, %v2798_v41  ;;  %v3795_v41 = vpop.f32.mrb[22].mxu0 }
 0x2bb   : > { %2888 = vperm.xlu0 %3999, %v2814_v23   ;;  %v3117_v23 = vpop.f32.mrb[23].mxu0 }
 0x2be   : > { %v2874_v51 = vpop.permute.xlu1 %2873 }
 0x2bf   : > { %v2907_v43 = vmul.f32 %v2874_v51, %v1081_v45 }
 0x2c1   : > { %v3137_v27 = vmul.f32 %v3789_v44, %v2907_v43 }
 0x2c3   : > { %3153 = vst.msk [vmem:[%s6197_s27 + $0x58] sm:$0xff] %vm910_vm12, %v3137_v27 }
 0x2d8   : > { %v2869_v51 = vpop.permute.xlu0 %2868 }
 0x2d9   : > { %v2906_v34 = vmul.f32 %v2869_v51, %v1076_v21 }
 0x2db   : > { %v3136_v17 = vmul.f32 %v3097_v50, %v2906_v34 }
 0x2dd   : > { %3152 = vst.msk [vmem:[%s6197_s27 + $0x50] sm:$0xff] %vm910_vm12, %v3136_v17 }
 0x2f0   : > { %v2884_v9 = vpop.permute.xlu1 %2883 }
 0x2f1   : > { %v2909_v22 = vmul.f32 %v2884_v9, %v1091_v13 }
 0x2f3   : > { %v3139_v63 = vmul.f32 %v3792_v53, %v2909_v22 }
 0x2f5   : > { %3155 = vst.msk [vmem:[%s6197_s27 + $0x68] sm:$0xff] %vm910_vm12, %v3139_v63 }
 0x30b   : > { %v2879_v59 = vpop.permute.xlu0 %2878 }
 0x30c   : > { %v2908_v12 = vmul.f32 %v2879_v59, %v1086_v61 }
 0x30e   : > { %v3138_v18 = vmul.f32 %v3107_v56, %v2908_v12 }
 0x310   : > { %3154 = vst.msk [vmem:[%s6197_s27 + $0x60] sm:$0xff] %vm910_vm12, %v3138_v18 }
 0x320   : > { %v2894_v58 = vpop.permute.xlu1 %2893 }
 0x321   : > { %v2911_v52 = vmul.f32 %v2894_v58, %v1101_v38 }
 0x323   : > { %v3141_v2 = vmul.f32 %v3795_v41, %v2911_v52 }
 0x325   : > { %3157 = vst.msk [vmem:[%s6197_s27 + $0x78] sm:$0xff] %vm910_vm12, %v3141_v2 }
 0x339   : > { %3164 = sbr.rel (!%p4294_p4) target bundleno = 881 (0x371), region = 56 }
 0x33a   : > { %v2889_v46 = vpop.permute.xlu0 %2888 }
 0x33b   : > { %v2910_v10 = vmul.f32 %v2889_v46, %v1096_v54 }
 0x33d   : > { %v3140_v30 = vmul.f32 %v3117_v23, %v2910_v10 }
 0x33f   : > { %3156 = vst.msk [vmem:[%s6197_s27 + $0x70] sm:$0xff] %vm910_vm12, %v3140_v30 }
 0x340   : > { %s6491_s29 = smov (!%p3167_p8, %s3166_s29), 16 }
 0x341   : > { %s3601_s17 = sshll.u32 %s6491_s29, 7 }
 0x342   : > { %p3604_p9 = scmp.eq.s32.totalorder %s3601_s17, 0 }
 0x343   : > { %s6256_s18 = sshrl.u32 (!%p3604_p9), %s6491_s29, 4 }
 0x344   : > { %3175 = sbr.rel (%p3604_p9) target bundleno = 881 (0x371), region = 60  ;;  %p3605_p10 = scmp.le.s32.totalorder (!%p3604_p9), %s6256_s18, 0 }
 0x34b   : > { %3401 = sbr.rel (%p3605_p10) target bundleno = 860 (0x35c), region = 142  ;;  %s6484_s30 = smov (!%p3605_p10), %s6250_s16 }
 0x34c   : > { %s6485_s13 = smov (!%p3605_p10), %s6197_s27  ;;  %s6265_s20 = smov (!%p3605_p10), 0  }
 0x34d   : > { %s6267_s19 = smov (!%p3605_p10), 0  }
 0x352 LB: >> { %v3267_v37 = vld [vmem:[%s4191_s13] sm:$0xff]  ;;  %v3269_v32 = vld [vmem:[%s4191_s13 + $0x8] sm:$0xff]  ;;  %v3271_v62 = vld [vmem:[%s4191_s13 + $0x10] sm:$0xff]  ;;  %s3299_s22 = sadd.s32 1, %s4195_s20  ;;  %s3261_s19 = sadd.s32 1, %s4199_s19   ;;  %s4199_s19 = sphi %s6267_s19, %s3261_s19   ;;  %s4195_s20 = sphi %s6265_s20, %s6486_s20   ;;  %s4191_s13 = sphi %s6485_s13, %s3304_s13   ;;  %s4187_s30 = sphi %s6484_s30, %s3305_s30  }
 0x353   : >> { %3268 = vst [vmem:[%s4187_s30] sm:$0xff] %v3267_v37  ;;  %3270 = vst [vmem:[%s4187_s30 + $0x8] sm:$0xff] %v3269_v32  ;;  %v3273_v33 = vld [vmem:[%s4191_s13 + $0x18] sm:$0xff]  ;;  %v3275_v20 = vld [vmem:[%s4191_s13 + $0x20] sm:$0xff]  ;;  %p3300_p11 = scmp.ge.s32.totalorder %s3299_s22, %s6256_s18  ;;  %p3260_p12 = scmp.ge.s32.totalorder %s3261_s19, %s6256_s18 }
 0x354   : >> { %3272 = vst [vmem:[%s4187_s30 + $0x10] sm:$0xff] %v3271_v62  ;;  %v3277_v26 = vld [vmem:[%s4191_s13 + $0x28] sm:$0xff]  ;;  %3274 = vst [vmem:[%s4187_s30 + $0x18] sm:$0xff] %v3273_v33  ;;  %v3279_v35 = vld [vmem:[%s4191_s13 + $0x30] sm:$0xff] }
 0x355   : >> { %3276 = vst [vmem:[%s4187_s30 + $0x20] sm:$0xff] %v3275_v20  ;;  %3278 = vst [vmem:[%s4187_s30 + $0x28] sm:$0xff] %v3277_v26  ;;  %v3281_v14 = vld [vmem:[%s4191_s13 + $0x38] sm:$0xff]  ;;  %v3283_v49 = vld [vmem:[%s4191_s13 + $0x40] sm:$0xff]  ;;  %s6493_s22 = smov (%p3300_p11, %s3299_s22), 0  ;;  %3263 = sbr.rel (!%p3260_p12) target bundleno = 850 (0x352), region = 148 }
 0x356   : >> { %3280 = vst [vmem:[%s4187_s30 + $0x30] sm:$0xff] %v3279_v35  ;;  %3282 = vst [vmem:[%s4187_s30 + $0x38] sm:$0xff] %v3281_v14  ;;  %v3285_v7 = vld [vmem:[%s4191_s13 + $0x48] sm:$0xff]  ;;  %v3287_v57 = vld [vmem:[%s4191_s13 + $0x50] sm:$0xff]  ;;  %s3606_s10 = sshll.u32 %s6493_s22, 7  ;;  %s6486_s20 = smov %s6493_s22 }
 0x357   : >> { %3284 = vst [vmem:[%s4187_s30 + $0x40] sm:$0xff] %v3283_v49  ;;  %v3289_v8 = vld [vmem:[%s4191_s13 + $0x58] sm:$0xff]  ;;  %3286 = vst [vmem:[%s4187_s30 + $0x48] sm:$0xff] %v3285_v7  ;;  %v3291_v60 = vld [vmem:[%s4191_s13 + $0x60] sm:$0xff] }
 0x358   : >> { %3288 = vst [vmem:[%s4187_s30 + $0x50] sm:$0xff] %v3287_v57  ;;  %3290 = vst [vmem:[%s4187_s30 + $0x58] sm:$0xff] %v3289_v8  ;;  %v3293_v48 = vld [vmem:[%s4191_s13 + $0x68] sm:$0xff]  ;;  %v3295_v5 = vld [vmem:[%s4191_s13 + $0x70] sm:$0xff] }
 0x359   : >> { %3292 = vst [vmem:[%s4187_s30 + $0x60] sm:$0xff] %v3291_v60  ;;  %3294 = vst [vmem:[%s4187_s30 + $0x68] sm:$0xff] %v3293_v48  ;;  %v3297_v28 = vld [vmem:[%s4191_s13 + $0x78] sm:$0xff]  ;;  %s3304_s13 = scalar_lea.vmem %s6197_s27, %s3606_s10 [#allocation2]  }
 0x35a   : >> { %3296 = vst [vmem:[%s4187_s30 + $0x70] sm:$0xff] %v3295_v5  ;;  %3298 = vst [vmem:[%s4187_s30 + $0x78] sm:$0xff] %v3297_v28  ;;  %s3305_s30 = scalar_lea.vmem %s6250_s16, %s3606_s10  }
 0x35c PF: > { %s6325_s23 = sand.u32 15, %s6491_s29   ;;  %s3617_s21 = sshll.u32 %s6256_s18, 7 }
 0x35d   : > { %s3310_s24 = scalar_lea.vmem %s6197_s27, %s3617_s21 [#allocation2]   ;;  %s3312_s25 = scalar_lea.vmem %s6250_s16, %s3617_s21  }
 0x35e   : > { %p3611_p13 = scmp.le.s32.totalorder %s6325_s23, 0 }
 0x35f   : > { %s4201_s26 = smov (!%p3611_p13), %s3312_s25   ;;  %s4205_s11 = smov (!%p3611_p13), %s3310_s24  }
 0x360   : > { %3415 = sbr.rel (%p3611_p13) target bundleno = 881 (0x371), region = 153  ;;  %s4209_s14 = smov (!%p3611_p13), 0  }
 0x361   : > { %s4213_s15 = smov (!%p3611_p13), 0  }
 0x367 LB: >> { %v3322_v16 = vld [vmem:[%s4207_s11] sm:$0xff]  ;;  %s3324_s29 = sadd.s32 1, %s4211_s14  ;;  %s3316_s15 = sadd.s32 1, %s4215_s15   ;;  %s4215_s15 = sphi %s4213_s15, %s3316_s15   ;;  %s4211_s14 = sphi %s4209_s14, %s4210_s14   ;;  %s4207_s11 = sphi %s4205_s11, %s3329_s11   ;;  %s4203_s26 = sphi %s4201_s26, %s3330_s26  }
 0x368   : >> { %3323 = vst [vmem:[%s4203_s26] sm:$0xff] %v3322_v16  ;;  %p3325_p0 = scmp.ge.s32.totalorder %s3324_s29, %s6325_s23  ;;  %p3315_p1 = scmp.ge.s32.totalorder %s3316_s15, %s6325_s23 }
 0x36a   : >> { %s6495_s29 = smov (%p3325_p0, %s3324_s29), 0  ;;  %3318 = sbr.rel (!%p3315_p1) target bundleno = 871 (0x367), region = 159 }
 0x36b   : >> { %s3612_s27 = sshll.u32 %s6495_s29, 3  ;;  %s4210_s14 = smov %s6495_s29  }
 0x36c   : >> { %s3329_s11 = scalar_lea.vmem %s3310_s24, %s3612_s27 [#allocation2]   ;;  %s3330_s26 = scalar_lea.vmem %s3312_s25, %s3612_s27  }
 0x371 PF: > { %p15_p2 = scmp.ge.s32.totalorder %s4284_s9, 4   ;;  %s6487_s27 = smov %s4179_s28 }
 0x372   : > { %s6488_s28 = smov %s4292_s12  ;;  %s6489_s29 = smov %s4284_s9 }
 0x373   :  { %17 = sbr.rel (!%p15_p2) target bundleno = 2 (0x2), region = 170 }

</bundles_post_ra>
